<compile_context>
chip_gen: v7x
topology: tpu7x:2x2x1
jax: 0.10.0
libtpu: 0.0.40
codegen_flags: <defaults>
</compile_context>

<pallas_src>
import math

import jax
import jax.numpy as jnp
import numpy as np
from jax.experimental import pallas as pl
from jax.experimental.pallas import tpu as pltpu


def _build_kernel(koopman_dim, two_h, t_chunk, group_steps, n_inter, T, mask_pad):
    D = koopman_dim
    hp = jax.lax.Precision.HIGHEST

    def kernel(y0_ref, w1_ref, b1_ref, w2_ref, b2_ref, out_ref, y_scr):
        # (Re)initialize the carried latent state at the start of every
        # batch-shard's time sweep (time chunks = minor grid axis).
        @pl.when(pl.program_id(1) == 0)
        def _init():
            y_scr[...] = y0_ref[...]

        w1 = w1_ref[...]                    # (D, 2H + D)   [wc1 | wr1 | P]
        w2 = w2_ref[...]                    # (2H, 3D)      dt/dup/phase folded
        bt = y_scr.shape[0]
        rows = bt // n_inter

        # Hoisted bias broadcasts — done once per chunk, not once per step.
        b1b = jnp.broadcast_to(b1_ref[...], (rows, w1.shape[1]))
        b2b = jnp.broadcast_to(b2_ref[...], (rows, w2.shape[1]))

        if mask_pad:
            chunk_t0 = pl.program_id(1) * t_chunk

        def one_step(y):
            # Fused first layer: [complex hidden | real hidden | pair-swapped y].
            z = jnp.dot(y, w1, precision=hp,
                        preferred_element_type=jnp.float32) + b1b
            h = jnp.tanh(z[:, :two_h])
            y_swap = z[:, two_h:]           # (rows, D) = y @ P  (0 on real lanes)

            # Fused second layer: p = [ a | b_diag | b_off ]
            #   a      = dt*[mu,mu,... | re]            (pair-duplicated)
            #   b_diag = dt*[om,om,... | 0]
            #   b_off  = dt*[om,om,... | 0] +/- pi/2    (sin folded into cos)
            p = jnp.dot(h, w2, precision=hp,
                        preferred_element_type=jnp.float32) + b2b
            ea = jnp.exp(p[:, :D])          # [e | e | rexp]
            tr = jnp.cos(p[:, D:])          # [cos|cos|1  ||  -sin|+sin|~0]
            # y_new = m_diag*y + m_off*(y swapped within complex pairs)
            return ea * (tr[:, :D] * y + tr[:, D:] * y_swap)

        n_groups = (t_chunk + group_steps - 1) // group_steps
        ys = [y_scr[i * rows:(i + 1) * rows, :] for i in range(n_inter)]

        for g in range(n_groups):
            gs = min(group_steps, t_chunk - g * group_steps)
            for i in range(n_inter):
                y = ys[i]
                cols = []
                for u in range(gs):
                    y_new = one_step(y)
                    cols.append(y_new)
                    if mask_pad:
                        valid = (chunk_t0 + (g * group_steps + u)) < T
                        y = jnp.where(valid, y_new, y)   # freeze carry past T
                    else:
                        y = y_new
                ys[i] = y
                # One lane-dense store per group: group_steps*D is a multiple
                # of 128 (full, unmasked vreg-width stores) whenever possible.
                out_ref[i * rows:(i + 1) * rows,
                        g * group_steps * D:(g * group_steps + gs) * D] = (
                    jnp.concatenate(cols, axis=1))

        for i in range(n_inter):
            y_scr[i * rows:(i + 1) * rows, :] = ys[i]

    return kernel


def koopman_operator_forward(x, T, params, *, delta_t, n_com, n_real,
                             max_chunk_steps=128):
    """Pallas implementation of KoopmanOperator.forward(x, T) (oper_arch='mlp')."""
    B, _, D_in = x.shape
    D = 2 * n_com + n_real
    assert D_in == D
    f32 = jnp.float32

    wc1, bc1, wc2, bc2, wr1, br1, wr2, br2 = [
        np.asarray(p, np.float32) for p in params]
    H = wc1.shape[1]
    assert wr1.shape[1] == H

    # ---- Fused first layer: [wc1 | wr1 | P] with P the complex pair-swap.
    P = np.zeros((D, D), np.float32)
    for j in range(n_com):
        P[2 * j, 2 * j + 1] = 1.0
        P[2 * j + 1, 2 * j] = 1.0
    W1 = np.concatenate([wc1, wr1, P], axis=1)                         # (D, 2H+D)
    b1 = np.concatenate([bc1, br1, np.zeros((1, D), np.float32)], 1)   # (1, 2H+D)

    # ---- Fused second layer (2H, 3D): delta_t, pair-duplication, (mu,omega)
    #      de-interleave and the sin->cos phase shift all folded in.
    W2 = np.zeros((2 * H, 3 * D), np.float32)
    b2 = np.zeros((1, 3 * D), np.float32)
    half_pi = np.float32(np.pi / 2.0)
    for j in range(n_com):
        mu_w, om_w = wc2[:, 2 * j], wc2[:, 2 * j + 1]
        mu_b, om_b = bc2[0, 2 * j], bc2[0, 2 * j + 1]
        for k, lane in enumerate((2 * j, 2 * j + 1)):
            W2[:H, lane] = delta_t * mu_w                      # a   -> exp
            b2[0, lane] = delta_t * mu_b
            W2[:H, D + lane] = delta_t * om_w                  # b_diag -> cos
            b2[0, D + lane] = delta_t * om_b
            W2[:H, 2 * D + lane] = delta_t * om_w              # b_off -> -/+ sin
            b2[0, 2 * D + lane] = delta_t * om_b + (half_pi if k == 0 else -half_pi)
    for i in range(n_real):
        lane = 2 * n_com + i
        W2[H:, lane] = delta_t * wr2[:, i]                     # a -> exp(dt*re)
        b2[0, lane] = delta_t * br2[0, i]
        # b_diag stays 0 -> cos(0)=1 ; b_off is irrelevant (y_swap==0 on real
        # lanes) but keep its factor ~0 anyway.
        b2[0, 2 * D + lane] = half_pi

    y0 = x[:, 0, :].astype(f32)

    # ---- Time chunking: last block dim is either the full array dim (small T)
    #      or a multiple of 128 lanes.
    align = 128 // math.gcd(D, 128)
    if T <= max_chunk_steps:
        TC, nc = T, 1
    else:
        TC = max(align, (max_chunk_steps // align) * align)
        nc = -(-T // TC)
    T_pad = nc * TC
    mask_pad = (T_pad != T)
    GS = min(TC, max(1, 128 // D))          # steps per lane-dense group store

    # ---- Batch sharding: keep one shard on single-TensorCore parts; only split
    #      2-way when each shard keeps an MXU-friendly row count (>=128).
    # TODO(synk): gate the split on the actual core count (v7x) via a hardware
    # query instead of the B>=256 heuristic.
    if B >= 256 and (B // 2) % 8 == 0:
        b_tile = B // 2
    else:
        b_tile = B
    nb = B // b_tile
    n_inter = 2 if (b_tile >= 64 and b_tile % 16 == 0) else 1

    kernel = _build_kernel(D, 2 * H, TC, GS, n_inter, T, mask_pad)

    vmem_ws = pl.BlockSpec(memory_space=pltpu.MemorySpace.VMEM)  # resident weights
    grid_spec = pltpu.PrefetchScalarGridSpec(
        num_scalar_prefetch=0,
        grid=(nb, nc),
        in_specs=[
            pl.BlockSpec((b_tile, D), lambda b, c: (b, 0)),      # y0 per shard
            vmem_ws,   # W1
            vmem_ws,   # b1
            vmem_ws,   # W2
            vmem_ws,   # b2
        ],
        out_specs=pl.BlockSpec((b_tile, TC * D), lambda b, c: (b, c)),
        scratch_shapes=[pltpu.VMEM((b_tile, D), f32)],
    )

    out = pl.pallas_call(
        kernel,
        out_shape=jax.ShapeDtypeStruct((B, T_pad * D), f32),
        grid_spec=grid_spec,
        compiler_params=pltpu.CompilerParams(
            dimension_semantics=("parallel", "arbitrary")),
    )(y0, jnp.asarray(W1), jnp.asarray(b1), jnp.asarray(W2), jnp.asarray(b2))

    # Batch-major, lane-dense output: (B, T, D) is a free reshape + slice.
    return out.reshape(B, T_pad, D)[:, :T, :]


def koopman_operator_reference(x, T, params, *, delta_t, n_com, n_real):
    """Pure-JAX reference mirroring the PyTorch forward (interleaved head)."""
    (wc1, bc1, wc2_raw, bc2_raw, wr1, br1, wr2, br2) = params
    D = 2 * n_com + n_real
    hp = jax.lax.Precision.HIGHEST

    def step(y, _):
        h = jnp.tanh(jnp.dot(y, wc1, precision=hp) + bc1)
        c = (jnp.dot(h, wc2_raw, precision=hp) + bc2_raw).reshape(-1, n_com, 2)
        mu, om = c[..., 0], c[..., 1]
        e = jnp.exp(delta_t * mu)
        co = jnp.cos(delta_t * om)
        si = jnp.sin(delta_t * om)
        hr = jnp.tanh(jnp.dot(y, wr1, precision=hp) + br1)
        re = jnp.dot(hr, wr2, precision=hp) + br2
        rexp = jnp.exp(delta_t * re)

        B = y.shape[0]
        K = jnp.zeros((B, D, D), jnp.float32)
        for j in range(n_com):
            i = 2 * j
            K = K.at[:, i, i].set(co[:, j] * e[:, j])
            K = K.at[:, i, i + 1].set(-si[:, j] * e[:, j])
            K = K.at[:, i + 1, i].set(si[:, j] * e[:, j])
            K = K.at[:, i + 1, i + 1].set(co[:, j] * e[:, j])
        for i in range(2 * n_com, D):
            K = K.at[:, i, i].set(rexp[:, i - 2 * n_com])
        y_new = jnp.einsum('bij,bj->bi', K, y, precision=hp)
        return y_new, y_new

    _, Ys = jax.lax.scan(step, x[:, 0, :].astype(jnp.float32), None, length=T)
    return jnp.transpose(Ys, (1, 0, 2))


if __name__ == "__main__":
    # Small config: koopman_dim = 2*n_com + n_real
    n_com, n_real = 3, 2
    D = 2 * n_com + n_real          # 8
    H = 32                          # oper_hidden_dim
    B, T = 8, 8
    delta_t = 0.1

    key = jax.random.PRNGKey(0)
    ks = jax.random.split(key, 9)

    def w(k, shape, scale=0.3):
        return (scale * jax.random.normal(k, shape)).astype(jnp.float32)

    # Synthetic parameters for the two MLP parametrization networks
    # (stored as (in, out); biases as (1, out)).
    params = (
        w(ks[0], (D, H)), w(ks[1], (1, H)),
        w(ks[2], (H, 2 * n_com)), w(ks[3], (1, 2 * n_com)),
        w(ks[4], (D, H)), w(ks[5], (1, H)),
        w(ks[6], (H, n_real)), w(ks[7], (1, n_real)),
    )

    x = jax.random.normal(ks[8], (B, T, D), dtype=jnp.float32)

    y_pallas = jax.block_until_ready(
        koopman_operator_forward(x, T, params, delta_t=delta_t,
                                 n_com=n_com, n_real=n_real))
    y_ref = jax.block_until_ready(
        koopman_operator_reference(x, T, params, delta_t=delta_t,
                                   n_com=n_com, n_real=n_real))
    assert y_pallas.shape == (B, T, D)
    np.testing.assert_allclose(np.asarray(y_pallas), np.asarray(y_ref),
                               rtol=2e-2, atol=2e-2)

    # Second check: exercises the chunked time axis (carry across chunks),
    # grouped full-width stores and masking of padded steps.
    T2 = 40
    x2 = jax.random.normal(jax.random.PRNGKey(1), (B, T2, D), dtype=jnp.float32)
    y2_pallas = jax.block_until_ready(
        koopman_operator_forward(x2, T2, params, delta_t=delta_t,
                                 n_com=n_com, n_real=n_real,
                                 max_chunk_steps=32))
    y2_ref = jax.block_until_ready(
        koopman_operator_reference(x2, T2, params, delta_t=delta_t,
                                   n_com=n_com, n_real=n_real))
    np.testing.assert_allclose(np.asarray(y2_pallas), np.asarray(y2_ref),
                               rtol=2e-2, atol=2e-2)

    print("KERNEL_OK")
</pallas_src>

<mosaic_0001>
module attributes {stable_mosaic.version = 11 : i64} {
  func.func @kernel(%arg0: i32, %arg1: i32, %arg2: memref<8x8xf32, #tpu.memory_space<vmem>>, %arg3: memref<8x72xf32, #tpu.memory_space<vmem>>, %arg4: memref<1x72xf32, #tpu.memory_space<vmem>>, %arg5: memref<64x24xf32, #tpu.memory_space<vmem>>, %arg6: memref<1x24xf32, #tpu.memory_space<vmem>>, %arg7: memref<8x64xf32, #tpu.memory_space<vmem>>, %arg8: memref<8x8xf32, #tpu.memory_space<vmem>>) attributes {dimension_semantics = [#tpu.dimension_semantics<parallel>, #tpu.dimension_semantics<arbitrary>], iteration_bounds = array<i64: 1, 1>, scalar_prefetch = 0 : i64, scratch_operands = 1 : i64, tpu.core_type = #tpu.core_type<tc>, window_params = [{transform_indices = @transform_0, window_bounds = array<i64: 8, 8>}, {pipeline_mode = #tpu.pipeline_mode<synchronous>, transform_indices = @transform_1, window_bounds = array<i64: 8, 72>}, {pipeline_mode = #tpu.pipeline_mode<synchronous>, transform_indices = @transform_2, window_bounds = array<i64: 1, 72>}, {pipeline_mode = #tpu.pipeline_mode<synchronous>, transform_indices = @transform_3, window_bounds = array<i64: 64, 24>}, {pipeline_mode = #tpu.pipeline_mode<synchronous>, transform_indices = @transform_4, window_bounds = array<i64: 1, 24>}, {transform_indices = @transform_5, window_bounds = array<i64: 8, 64>}]} {
    %c0_i32 = arith.constant 0 : i32
    %0 = arith.cmpi eq, %arg1, %c0_i32 : i32
    %1 = arith.extui %0 : i1 to i32
    %c0_i32_0 = arith.constant 0 : i32
    %2 = arith.cmpi ne, %1, %c0_i32_0 : i32
    scf.if %2 {
      %c0_29 = arith.constant 0 : index
      %c0_30 = arith.constant 0 : index
      %151 = vector.load %arg2[%c0_29, %c0_30] : memref<8x8xf32, #tpu.memory_space<vmem>>, vector<8x8xf32>
      %c0_31 = arith.constant 0 : index
      %c0_32 = arith.constant 0 : index
      %152 = vector.load %arg8[%c0_31, %c0_32] : memref<8x8xf32, #tpu.memory_space<vmem>>, vector<8x8xf32>
      tpu.vector_store %arg8[%c0_31, %c0_32], %151 {strides = array<i32>} : memref<8x8xf32, #tpu.memory_space<vmem>>, vector<8x8xf32>,
    } else {
    }
    %c0 = arith.constant 0 : index
    %c0_1 = arith.constant 0 : index
    %3 = vector.load %arg3[%c0, %c0_1] : memref<8x72xf32, #tpu.memory_space<vmem>>, vector<8x72xf32>
    %c0_2 = arith.constant 0 : index
    %c0_3 = arith.constant 0 : index
    %4 = vector.load %arg5[%c0_2, %c0_3] : memref<64x24xf32, #tpu.memory_space<vmem>>, vector<64x24xf32>
    %c0_4 = arith.constant 0 : index
    %c0_5 = arith.constant 0 : index
    %5 = vector.load %arg4[%c0_4, %c0_5] : memref<1x72xf32, #tpu.memory_space<vmem>>, vector<1x72xf32>
    %6 = vector.shape_cast %5 : vector<1x72xf32> to vector<1x72xf32>
    %7 = vector.broadcast %6 : vector<1x72xf32> to vector<8x72xf32>
    %c0_6 = arith.constant 0 : index
    %c0_7 = arith.constant 0 : index
    %8 = vector.load %arg6[%c0_6, %c0_7] : memref<1x24xf32, #tpu.memory_space<vmem>>, vector<1x24xf32>
    %9 = vector.shape_cast %8 : vector<1x24xf32> to vector<1x24xf32>
    %10 = vector.broadcast %9 : vector<1x24xf32> to vector<8x24xf32>
    %c0_8 = arith.constant 0 : index
    %c0_9 = arith.constant 0 : index
    %11 = vector.load %arg8[%c0_8, %c0_9] : memref<8x8xf32, #tpu.memory_space<vmem>>, vector<8x8xf32>
    %cst = arith.constant dense<0.000000e+00> : vector<8x72xf32>
    %12 = tpu.matmul %11, %3, %cst {dimension_numbers = #tpu.dot_dimension_numbers<[1], [0], [0], [1], [0, 0, 1, 1], [], []>, precision = #tpu.contract_precision<fp32>} : vector<8x8xf32>, vector<8x72xf32>, vector<8x72xf32> -> vector<8x72xf32>
    %13 = arith.addf %12, %7 : vector<8x72xf32>
    %14 = vector.extract_strided_slice %13 {offsets = [0, 0], sizes = [8, 64], strides = [1, 1]} : vector<8x72xf32> to vector<8x64xf32>
    %15 = math.tanh %14 : vector<8x64xf32>
    %16 = vector.extract_strided_slice %13 {offsets = [0, 64], sizes = [8, 8], strides = [1, 1]} : vector<8x72xf32> to vector<8x8xf32>
    %cst_10 = arith.constant dense<0.000000e+00> : vector<8x24xf32>
    %17 = tpu.matmul %15, %4, %cst_10 {dimension_numbers = #tpu.dot_dimension_numbers<[1], [0], [0], [1], [0, 0, 1, 1], [], []>, precision = #tpu.contract_precision<fp32>} : vector<8x64xf32>, vector<64x24xf32>, vector<8x24xf32> -> vector<8x24xf32>
    %18 = arith.addf %17, %10 : vector<8x24xf32>
    %19 = vector.extract_strided_slice %18 {offsets = [0, 0], sizes = [8, 8], strides = [1, 1]} : vector<8x24xf32> to vector<8x8xf32>
    %20 = math.exp %19 : vector<8x8xf32>
    %21 = vector.extract_strided_slice %18 {offsets = [0, 8], sizes = [8, 16], strides = [1, 1]} : vector<8x24xf32> to vector<8x16xf32>
    %22 = math.cos %21 : vector<8x16xf32>
    %23 = vector.extract_strided_slice %22 {offsets = [0, 0], sizes = [8, 8], strides = [1, 1]} : vector<8x16xf32> to vector<8x8xf32>
    %24 = arith.mulf %23, %11 : vector<8x8xf32>
    %25 = vector.extract_strided_slice %22 {offsets = [0, 8], sizes = [8, 8], strides = [1, 1]} : vector<8x16xf32> to vector<8x8xf32>
    %26 = arith.mulf %25, %16 : vector<8x8xf32>
    %27 = arith.addf %24, %26 : vector<8x8xf32>
    %28 = arith.mulf %20, %27 : vector<8x8xf32>
    %cst_11 = arith.constant dense<0.000000e+00> : vector<8x72xf32>
    %29 = tpu.matmul %28, %3, %cst_11 {dimension_numbers = #tpu.dot_dimension_numbers<[1], [0], [0], [1], [0, 0, 1, 1], [], []>, precision = #tpu.contract_precision<fp32>} : vector<8x8xf32>, vector<8x72xf32>, vector<8x72xf32> -> vector<8x72xf32>
    %30 = arith.addf %29, %7 : vector<8x72xf32>
    %31 = vector.extract_strided_slice %30 {offsets = [0, 0], sizes = [8, 64], strides = [1, 1]} : vector<8x72xf32> to vector<8x64xf32>
    %32 = math.tanh %31 : vector<8x64xf32>
    %33 = vector.extract_strided_slice %30 {offsets = [0, 64], sizes = [8, 8], strides = [1, 1]} : vector<8x72xf32> to vector<8x8xf32>
    %cst_12 = arith.constant dense<0.000000e+00> : vector<8x24xf32>
    %34 = tpu.matmul %32, %4, %cst_12 {dimension_numbers = #tpu.dot_dimension_numbers<[1], [0], [0], [1], [0, 0, 1, 1], [], []>, precision = #tpu.contract_precision<fp32>} : vector<8x64xf32>, vector<64x24xf32>, vector<8x24xf32> -> vector<8x24xf32>
    %35 = arith.addf %34, %10 : vector<8x24xf32>
    %36 = vector.extract_strided_slice %35 {offsets = [0, 0], sizes = [8, 8], strides = [1, 1]} : vector<8x24xf32> to vector<8x8xf32>
    %37 = math.exp %36 : vector<8x8xf32>
    %38 = vector.extract_strided_slice %35 {offsets = [0, 8], sizes = [8, 16], strides = [1, 1]} : vector<8x24xf32> to vector<8x16xf32>
    %39 = math.cos %38 : vector<8x16xf32>
    %40 = vector.extract_strided_slice %39 {offsets = [0, 0], sizes = [8, 8], strides = [1, 1]} : vector<8x16xf32> to vector<8x8xf32>
    %41 = arith.mulf %40, %28 : vector<8x8xf32>
    %42 = vector.extract_strided_slice %39 {offsets = [0, 8], sizes = [8, 8], strides = [1, 1]} : vector<8x16xf32> to vector<8x8xf32>
    %43 = arith.mulf %42, %33 : vector<8x8xf32>
    %44 = arith.addf %41, %43 : vector<8x8xf32>
    %45 = arith.mulf %37, %44 : vector<8x8xf32>
    %cst_13 = arith.constant dense<0.000000e+00> : vector<8x72xf32>
    %46 = tpu.matmul %45, %3, %cst_13 {dimension_numbers = #tpu.dot_dimension_numbers<[1], [0], [0], [1], [0, 0, 1, 1], [], []>, precision = #tpu.contract_precision<fp32>} : vector<8x8xf32>, vector<8x72xf32>, vector<8x72xf32> -> vector<8x72xf32>
    %47 = arith.addf %46, %7 : vector<8x72xf32>
    %48 = vector.extract_strided_slice %47 {offsets = [0, 0], sizes = [8, 64], strides = [1, 1]} : vector<8x72xf32> to vector<8x64xf32>
    %49 = math.tanh %48 : vector<8x64xf32>
    %50 = vector.extract_strided_slice %47 {offsets = [0, 64], sizes = [8, 8], strides = [1, 1]} : vector<8x72xf32> to vector<8x8xf32>
    %cst_14 = arith.constant dense<0.000000e+00> : vector<8x24xf32>
    %51 = tpu.matmul %49, %4, %cst_14 {dimension_numbers = #tpu.dot_dimension_numbers<[1], [0], [0], [1], [0, 0, 1, 1], [], []>, precision = #tpu.contract_precision<fp32>} : vector<8x64xf32>, vector<64x24xf32>, vector<8x24xf32> -> vector<8x24xf32>
    %52 = arith.addf %51, %10 : vector<8x24xf32>
    %53 = vector.extract_strided_slice %52 {offsets = [0, 0], sizes = [8, 8], strides = [1, 1]} : vector<8x24xf32> to vector<8x8xf32>
    %54 = math.exp %53 : vector<8x8xf32>
    %55 = vector.extract_strided_slice %52 {offsets = [0, 8], sizes = [8, 16], strides = [1, 1]} : vector<8x24xf32> to vector<8x16xf32>
    %56 = math.cos %55 : vector<8x16xf32>
    %57 = vector.extract_strided_slice %56 {offsets = [0, 0], sizes = [8, 8], strides = [1, 1]} : vector<8x16xf32> to vector<8x8xf32>
    %58 = arith.mulf %57, %45 : vector<8x8xf32>
    %59 = vector.extract_strided_slice %56 {offsets = [0, 8], sizes = [8, 8], strides = [1, 1]} : vector<8x16xf32> to vector<8x8xf32>
    %60 = arith.mulf %59, %50 : vector<8x8xf32>
    %61 = arith.addf %58, %60 : vector<8x8xf32>
    %62 = arith.mulf %54, %61 : vector<8x8xf32>
    %cst_15 = arith.constant dense<0.000000e+00> : vector<8x72xf32>
    %63 = tpu.matmul %62, %3, %cst_15 {dimension_numbers = #tpu.dot_dimension_numbers<[1], [0], [0], [1], [0, 0, 1, 1], [], []>, precision = #tpu.contract_precision<fp32>} : vector<8x8xf32>, vector<8x72xf32>, vector<8x72xf32> -> vector<8x72xf32>
    %64 = arith.addf %63, %7 : vector<8x72xf32>
    %65 = vector.extract_strided_slice %64 {offsets = [0, 0], sizes = [8, 64], strides = [1, 1]} : vector<8x72xf32> to vector<8x64xf32>
    %66 = math.tanh %65 : vector<8x64xf32>
    %67 = vector.extract_strided_slice %64 {offsets = [0, 64], sizes = [8, 8], strides = [1, 1]} : vector<8x72xf32> to vector<8x8xf32>
    %cst_16 = arith.constant dense<0.000000e+00> : vector<8x24xf32>
    %68 = tpu.matmul %66, %4, %cst_16 {dimension_numbers = #tpu.dot_dimension_numbers<[1], [0], [0], [1], [0, 0, 1, 1], [], []>, precision = #tpu.contract_precision<fp32>} : vector<8x64xf32>, vector<64x24xf32>, vector<8x24xf32> -> vector<8x24xf32>
    %69 = arith.addf %68, %10 : vector<8x24xf32>
    %70 = vector.extract_strided_slice %69 {offsets = [0, 0], sizes = [8, 8], strides = [1, 1]} : vector<8x24xf32> to vector<8x8xf32>
    %71 = math.exp %70 : vector<8x8xf32>
    %72 = vector.extract_strided_slice %69 {offsets = [0, 8], sizes = [8, 16], strides = [1, 1]} : vector<8x24xf32> to vector<8x16xf32>
    %73 = math.cos %72 : vector<8x16xf32>
    %74 = vector.extract_strided_slice %73 {offsets = [0, 0], sizes = [8, 8], strides = [1, 1]} : vector<8x16xf32> to vector<8x8xf32>
    %75 = arith.mulf %74, %62 : vector<8x8xf32>
    %76 = vector.extract_strided_slice %73 {offsets = [0, 8], sizes = [8, 8], strides = [1, 1]} : vector<8x16xf32> to vector<8x8xf32>
    %77 = arith.mulf %76, %67 : vector<8x8xf32>
    %78 = arith.addf %75, %77 : vector<8x8xf32>
    %79 = arith.mulf %71, %78 : vector<8x8xf32>
    %cst_17 = arith.constant dense<0.000000e+00> : vector<8x72xf32>
    %80 = tpu.matmul %79, %3, %cst_17 {dimension_numbers = #tpu.dot_dimension_numbers<[1], [0], [0], [1], [0, 0, 1, 1], [], []>, precision = #tpu.contract_precision<fp32>} : vector<8x8xf32>, vector<8x72xf32>, vector<8x72xf32> -> vector<8x72xf32>
    %81 = arith.addf %80, %7 : vector<8x72xf32>
    %82 = vector.extract_strided_slice %81 {offsets = [0, 0], sizes = [8, 64], strides = [1, 1]} : vector<8x72xf32> to vector<8x64xf32>
    %83 = math.tanh %82 : vector<8x64xf32>
    %84 = vector.extract_strided_slice %81 {offsets = [0, 64], sizes = [8, 8], strides = [1, 1]} : vector<8x72xf32> to vector<8x8xf32>
    %cst_18 = arith.constant dense<0.000000e+00> : vector<8x24xf32>
    %85 = tpu.matmul %83, %4, %cst_18 {dimension_numbers = #tpu.dot_dimension_numbers<[1], [0], [0], [1], [0, 0, 1, 1], [], []>, precision = #tpu.contract_precision<fp32>} : vector<8x64xf32>, vector<64x24xf32>, vector<8x24xf32> -> vector<8x24xf32>
    %86 = arith.addf %85, %10 : vector<8x24xf32>
    %87 = vector.extract_strided_slice %86 {offsets = [0, 0], sizes = [8, 8], strides = [1, 1]} : vector<8x24xf32> to vector<8x8xf32>
    %88 = math.exp %87 : vector<8x8xf32>
    %89 = vector.extract_strided_slice %86 {offsets = [0, 8], sizes = [8, 16], strides = [1, 1]} : vector<8x24xf32> to vector<8x16xf32>
    %90 = math.cos %89 : vector<8x16xf32>
    %91 = vector.extract_strided_slice %90 {offsets = [0, 0], sizes = [8, 8], strides = [1, 1]} : vector<8x16xf32> to vector<8x8xf32>
    %92 = arith.mulf %91, %79 : vector<8x8xf32>
    %93 = vector.extract_strided_slice %90 {offsets = [0, 8], sizes = [8, 8], strides = [1, 1]} : vector<8x16xf32> to vector<8x8xf32>
    %94 = arith.mulf %93, %84 : vector<8x8xf32>
    %95 = arith.addf %92, %94 : vector<8x8xf32>
    %96 = arith.mulf %88, %95 : vector<8x8xf32>
    %cst_19 = arith.constant dense<0.000000e+00> : vector<8x72xf32>
    %97 = tpu.matmul %96, %3, %cst_19 {dimension_numbers = #tpu.dot_dimension_numbers<[1], [0], [0], [1], [0, 0, 1, 1], [], []>, precision = #tpu.contract_precision<fp32>} : vector<8x8xf32>, vector<8x72xf32>, vector<8x72xf32> -> vector<8x72xf32>
    %98 = arith.addf %97, %7 : vector<8x72xf32>
    %99 = vector.extract_strided_slice %98 {offsets = [0, 0], sizes = [8, 64], strides = [1, 1]} : vector<8x72xf32> to vector<8x64xf32>
    %100 = math.tanh %99 : vector<8x64xf32>
    %101 = vector.extract_strided_slice %98 {offsets = [0, 64], sizes = [8, 8], strides = [1, 1]} : vector<8x72xf32> to vector<8x8xf32>
    %cst_20 = arith.constant dense<0.000000e+00> : vector<8x24xf32>
    %102 = tpu.matmul %100, %4, %cst_20 {dimension_numbers = #tpu.dot_dimension_numbers<[1], [0], [0], [1], [0, 0, 1, 1], [], []>, precision = #tpu.contract_precision<fp32>} : vector<8x64xf32>, vector<64x24xf32>, vector<8x24xf32> -> vector<8x24xf32>
    %103 = arith.addf %102, %10 : vector<8x24xf32>
    %104 = vector.extract_strided_slice %103 {offsets = [0, 0], sizes = [8, 8], strides = [1, 1]} : vector<8x24xf32> to vector<8x8xf32>
    %105 = math.exp %104 : vector<8x8xf32>
    %106 = vector.extract_strided_slice %103 {offsets = [0, 8], sizes = [8, 16], strides = [1, 1]} : vector<8x24xf32> to vector<8x16xf32>
    %107 = math.cos %106 : vector<8x16xf32>
    %108 = vector.extract_strided_slice %107 {offsets = [0, 0], sizes = [8, 8], strides = [1, 1]} : vector<8x16xf32> to vector<8x8xf32>
    %109 = arith.mulf %108, %96 : vector<8x8xf32>
    %110 = vector.extract_strided_slice %107 {offsets = [0, 8], sizes = [8, 8], strides = [1, 1]} : vector<8x16xf32> to vector<8x8xf32>
    %111 = arith.mulf %110, %101 : vector<8x8xf32>
    %112 = arith.addf %109, %111 : vector<8x8xf32>
    %113 = arith.mulf %105, %112 : vector<8x8xf32>
    %cst_21 = arith.constant dense<0.000000e+00> : vector<8x72xf32>
    %114 = tpu.matmul %113, %3, %cst_21 {dimension_numbers = #tpu.dot_dimension_numbers<[1], [0], [0], [1], [0, 0, 1, 1], [], []>, precision = #tpu.contract_precision<fp32>} : vector<8x8xf32>, vector<8x72xf32>, vector<8x72xf32> -> vector<8x72xf32>
    %115 = arith.addf %114, %7 : vector<8x72xf32>
    %116 = vector.extract_strided_slice %115 {offsets = [0, 0], sizes = [8, 64], strides = [1, 1]} : vector<8x72xf32> to vector<8x64xf32>
    %117 = math.tanh %116 : vector<8x64xf32>
    %118 = vector.extract_strided_slice %115 {offsets = [0, 64], sizes = [8, 8], strides = [1, 1]} : vector<8x72xf32> to vector<8x8xf32>
    %cst_22 = arith.constant dense<0.000000e+00> : vector<8x24xf32>
    %119 = tpu.matmul %117, %4, %cst_22 {dimension_numbers = #tpu.dot_dimension_numbers<[1], [0], [0], [1], [0, 0, 1, 1], [], []>, precision = #tpu.contract_precision<fp32>} : vector<8x64xf32>, vector<64x24xf32>, vector<8x24xf32> -> vector<8x24xf32>
    %120 = arith.addf %119, %10 : vector<8x24xf32>
    %121 = vector.extract_strided_slice %120 {offsets = [0, 0], sizes = [8, 8], strides = [1, 1]} : vector<8x24xf32> to vector<8x8xf32>
    %122 = math.exp %121 : vector<8x8xf32>
    %123 = vector.extract_strided_slice %120 {offsets = [0, 8], sizes = [8, 16], strides = [1, 1]} : vector<8x24xf32> to vector<8x16xf32>
    %124 = math.cos %123 : vector<8x16xf32>
    %125 = vector.extract_strided_slice %124 {offsets = [0, 0], sizes = [8, 8], strides = [1, 1]} : vector<8x16xf32> to vector<8x8xf32>
    %126 = arith.mulf %125, %113 : vector<8x8xf32>
    %127 = vector.extract_strided_slice %124 {offsets = [0, 8], sizes = [8, 8], strides = [1, 1]} : vector<8x16xf32> to vector<8x8xf32>
    %128 = arith.mulf %127, %118 : vector<8x8xf32>
    %129 = arith.addf %126, %128 : vector<8x8xf32>
    %130 = arith.mulf %122, %129 : vector<8x8xf32>
    %cst_23 = arith.constant dense<0.000000e+00> : vector<8x72xf32>
    %131 = tpu.matmul %130, %3, %cst_23 {dimension_numbers = #tpu.dot_dimension_numbers<[1], [0], [0], [1], [0, 0, 1, 1], [], []>, precision = #tpu.contract_precision<fp32>} : vector<8x8xf32>, vector<8x72xf32>, vector<8x72xf32> -> vector<8x72xf32>
    %132 = arith.addf %131, %7 : vector<8x72xf32>
    %133 = vector.extract_strided_slice %132 {offsets = [0, 0], sizes = [8, 64], strides = [1, 1]} : vector<8x72xf32> to vector<8x64xf32>
    %134 = math.tanh %133 : vector<8x64xf32>
    %135 = vector.extract_strided_slice %132 {offsets = [0, 64], sizes = [8, 8], strides = [1, 1]} : vector<8x72xf32> to vector<8x8xf32>
    %cst_24 = arith.constant dense<0.000000e+00> : vector<8x24xf32>
    %136 = tpu.matmul %134, %4, %cst_24 {dimension_numbers = #tpu.dot_dimension_numbers<[1], [0], [0], [1], [0, 0, 1, 1], [], []>, precision = #tpu.contract_precision<fp32>} : vector<8x64xf32>, vector<64x24xf32>, vector<8x24xf32> -> vector<8x24xf32>
    %137 = arith.addf %136, %10 : vector<8x24xf32>
    %138 = vector.extract_strided_slice %137 {offsets = [0, 0], sizes = [8, 8], strides = [1, 1]} : vector<8x24xf32> to vector<8x8xf32>
    %139 = math.exp %138 : vector<8x8xf32>
    %140 = vector.extract_strided_slice %137 {offsets = [0, 8], sizes = [8, 16], strides = [1, 1]} : vector<8x24xf32> to vector<8x16xf32>
    %141 = math.cos %140 : vector<8x16xf32>
    %142 = vector.extract_strided_slice %141 {offsets = [0, 0], sizes = [8, 8], strides = [1, 1]} : vector<8x16xf32> to vector<8x8xf32>
    %143 = arith.mulf %142, %130 : vector<8x8xf32>
    %144 = vector.extract_strided_slice %141 {offsets = [0, 8], sizes = [8, 8], strides = [1, 1]} : vector<8x16xf32> to vector<8x8xf32>
    %145 = arith.mulf %144, %135 : vector<8x8xf32>
    %146 = arith.addf %143, %145 : vector<8x8xf32>
    %147 = arith.mulf %139, %146 : vector<8x8xf32>
    %148 = tpu.concatenate %28, %45, %62, %79, %96, %113, %130, %147 in 1 : vector<8x8xf32>, vector<8x8xf32>, vector<8x8xf32>, vector<8x8xf32>, vector<8x8xf32>, vector<8x8xf32>, vector<8x8xf32>, vector<8x8xf32> -> vector<8x64xf32>
    %c0_25 = arith.constant 0 : index
    %c0_26 = arith.constant 0 : index
    %149 = vector.load %arg7[%c0_25, %c0_26] : memref<8x64xf32, #tpu.memory_space<vmem>>, vector<8x64xf32>
    tpu.vector_store %arg7[%c0_25, %c0_26], %148 {strides = array<i32>} : memref<8x64xf32, #tpu.memory_space<vmem>>, vector<8x64xf32>,
    %c0_27 = arith.constant 0 : index
    %c0_28 = arith.constant 0 : index
    %150 = vector.load %arg8[%c0_27, %c0_28] : memref<8x8xf32, #tpu.memory_space<vmem>>, vector<8x8xf32>
    tpu.vector_store %arg8[%c0_27, %c0_28], %147 {strides = array<i32>} : memref<8x8xf32, #tpu.memory_space<vmem>>, vector<8x8xf32>,
    return
  }
  func.func @transform_0(%arg0: i32, %arg1: i32) -> (i32, i32) {
    %c0_i32 = arith.constant 0 : i32
    %c0_i32_0 = arith.constant 0 : i32
    return %arg0, %c0_i32 : i32, i32
  }
  func.func @transform_1(%arg0: i32, %arg1: i32) -> (i32, i32) {
    %c0_i32 = arith.constant 0 : i32
    %c0_i32_0 = arith.constant 0 : i32
    %c0_i32_1 = arith.constant 0 : i32
    return %c0_i32, %c0_i32_0 : i32, i32
  }
  func.func @transform_2(%arg0: i32, %arg1: i32) -> (i32, i32) {
    %c0_i32 = arith.constant 0 : i32
    %c0_i32_0 = arith.constant 0 : i32
    %c0_i32_1 = arith.constant 0 : i32
    return %c0_i32, %c0_i32_0 : i32, i32
  }
  func.func @transform_3(%arg0: i32, %arg1: i32) -> (i32, i32) {
    %c0_i32 = arith.constant 0 : i32
    %c0_i32_0 = arith.constant 0 : i32
    %c0_i32_1 = arith.constant 0 : i32
    return %c0_i32, %c0_i32_0 : i32, i32
  }
  func.func @transform_4(%arg0: i32, %arg1: i32) -> (i32, i32) {
    %c0_i32 = arith.constant 0 : i32
    %c0_i32_0 = arith.constant 0 : i32
    %c0_i32_1 = arith.constant 0 : i32
    return %c0_i32, %c0_i32_0 : i32, i32
  }
  func.func @transform_5(%arg0: i32, %arg1: i32) -> (i32, i32) {
    %c0_i32 = arith.constant 0 : i32
    return %arg0, %arg1 : i32, i32
  }
}

</mosaic_0001>

<bundles_post_ra>
// kernel: tpu_custom_call.1
= control target key start
LH: loop header
LB: loop body
LE: loop exit
PB: predicated region body
PF: predicated region fallthrough
CT: control target
= control target key end

     0   :  { %vm26_vm0 = vcmask 64512   ;;  %v11621_v2 = vmov 0.0   ;;  %vm11622_vm1 = vmmov 0   ;;  %s12828_s0 = inlined_call_operand.vmem [shape: f32[8,8], index: 0, kind: input, shape index: {}]   ;;  %s12829_s1 = inlined_call_operand.vmem [shape: f32[8,72], index: 1, kind: input, shape index: {}]   ;;  %s12830_s2 = inlined_call_operand.vmem [shape: f32[1,72], index: 2, kind: input, shape index: {}]   ;;  %s12831_s3 = inlined_call_operand.vmem [shape: f32[64,24], index: 3, kind: input, shape index: {}]   ;;  %s12832_s4 = inlined_call_operand.vmem [shape: f32[1,24], index: 4, kind: input, shape index: {}]   ;;  %s12833_s5 = inlined_call_operand.hbm [shape: f32[8,64], index: 5, kind: output, shape index: {}]  }
   0x1   :  { %v28_v0 = vld [vmem:[%s12829_s1] sm:$0xff]  ;;  %9586 = vmatprep.subr.mxu0 %v11621_v2  ;;  %9588 = vmatprep.mubr.msk.f32.mxu0 %vm11622_vm1, %v11621_v2 }
   0x2   :  { %v25_v1 = vld [vmem:[%s12828_s0] sm:$0xff]  ;;  %v11677_v3 = vand.u32 4294901760, %v28_v0 }
   0x3   :  { %27 = vst.msk [vmem:[#allocation2] sm:$0xff] %vm26_vm0, %v25_v1 }
   0x4   :  { %10 = vsyncpa [#allocation4], 0  ;;  %9576 = vmatprep.subr.mxu1 %v11621_v2  ;;  %9578 = vmatprep.mubr.msk.f32.mxu1 %vm11622_vm1, %v11621_v2  ;;  %v11686_v4 = vsub.f32 %v28_v0, %v11677_v3  ;;  %v29_v15 = vld [vmem:[%s12831_s3] sm:$0xff]  ;;  %v30_v16 = vld [vmem:[%s12831_s3 + $0x8] sm:$0xff]  ;;  %v11623_v18 = vmov 0.0|0.0   ;;  %s11624_s12 = smov 80  }
   0x5   :  { %9577 = vmatpush3.msra.mxu1 %v11677_v3  ;;  %v31_v17 = vld [vmem:[%s12831_s3 + $0x10] sm:$0xff]  ;;  %v508_v19 = vand.u32 4294901760, %v29_v15  ;;  %v511_v20 = vand.u32 4294901760, %v30_v16  ;;  %v32_v21 = vld [vmem:[%s12831_s3 + $0x18] sm:$0xff]  ;;  %v33_v24 = vld [vmem:[%s12831_s3 + $0x20] sm:$0xff]  ;;  %s11625_s13 = smov 8  }
   0x6   :  { %9581 = vmatprep.subr.mxu1 %v11621_v2  ;;  %9587 = vmatpush3.msra.mxu0 %v11686_v4  ;;  %v11697_v7 = vand.u32 4294901760, %v11686_v4  ;;  %v514_v22 = vand.u32 4294901760, %v31_v17  ;;  %v517_v23 = vand.u32 4294901760, %v32_v21  ;;  %v34_v25 = vld [vmem:[%s12831_s3 + $0x28] sm:$0xff]  ;;  %v520_v28 = vand.u32 4294901760, %v33_v24  ;;  %v35_v30 = vld [vmem:[%s12831_s3 + $0x30] sm:$0xff] }
   0x7   :  { %9591 = vmatprep.subr.mxu0 %v11621_v2  ;;  %v11743_v26 = vpack.c.bf16 %v511_v20, %v508_v19  ;;  %v523_v29 = vand.u32 4294901760, %v34_v25  ;;  %v36_v31 = vld [vmem:[%s12831_s3 + $0x38] sm:$0xff]  ;;  %v526_v33 = vand.u32 4294901760, %v35_v30  ;;  %v592_v35 = vsub.f32 %v29_v15, %v508_v19  ;;  %s11632_s16 = smov 120   ;;  %s11634_s22 = smov 32  }
   0x8   :  { %v136_v10 = vsub.f32 %v11686_v4, %v11697_v7  ;;  %v11746_v27 = vpack.c.bf16 %v517_v23, %v514_v22  ;;  %v529_v34 = vand.u32 4294901760, %v36_v31  ;;  %v599_v36 = vsub.f32 %v30_v16, %v511_v20  ;;  %s11635_s23 = smov 48   ;;  %s11636_s24 = smov 24  }
   0x9   :  { %v11756_v32 = vpack.c.bf16 %v523_v29, %v520_v28  ;;  %v593_v38 = vand.u32 4294901760, %v592_v35  ;;  %v606_v42 = vsub.f32 %v31_v17, %v514_v22  ;;  %v613_v43 = vsub.f32 %v32_v21, %v517_v23  ;;  %s11637_s25 = smov 40   ;;  %s11638_s26 = smov 56  }
   0xa   :  { %v11692_v5 = vld [vmem:[#allocation2] sm:$0xff]  ;;  %v11705_v13 = vand.u32 4294901760, %v136_v10  ;;  %v11760_v37 = vpack.c.bf16 %v529_v34, %v526_v33  ;;  %v600_v39 = vand.u32 4294901760, %v599_v36  ;;  %v620_v51 = vsub.f32 %v33_v24, %v520_v28  ;;  %s11639_s27 = smov [#allocation3]  }
   0xb   :  { %v54_v6 = vsel %vm26_vm0, %v11692_v5, 0  ;;  %v594_v40 = vsub.f32 %v592_v35, %v593_v38  ;;  %v607_v46 = vand.u32 4294901760, %v606_v42  ;;  %v614_v47 = vand.u32 4294901760, %v613_v43  ;;  %s9006_s28 = sshll.u32 %s11639_s27, 4  ;;  %s9007_s28 = int_to_ptr.vmem [resolvable:$true] %s9006_s28 }
   0xc   :  { %v122_v8 = vand.u32 4294901760, %v54_v6  ;;  %v601_v41 = vsub.f32 %v599_v36, %v600_v39  ;;  %v627_v52 = vsub.f32 %v34_v25, %v523_v29  ;;  %v621_v55 = vand.u32 4294901760, %v620_v51  ;;  %v11792_v25 = vld [vmem:[%s12830_s2] ss:$0 sm:$0xff]  ;;  %s11597_s29 = scalar_lea.vmem %s9007_s28, 128  ;;  %p11602_p1 = scmp.lt.s32.totalorder %s9007_s28, %s9007_s28 }
   0xd   :  { %v595_v44 = vand.u32 4294901760, %v594_v40  ;;  %v608_v49 = vsub.f32 %v606_v42, %v607_v46  ;;  %v615_v50 = vsub.f32 %v613_v43, %v614_v47  ;;  %v634_v60 = vsub.f32 %v35_v30, %v526_v33  ;;  %p11598_p0 = scmp.ne.s32.totalorder %s9007_s28, %s11597_s29  ;;  %p11603_p2 = scmp.lt.s32.totalorder %s11597_s29, %s11597_s29 }
   0xe   :  { %v123_v9 = vsub.f32 %v54_v6, %v122_v8  ;;  %v602_v45 = vand.u32 4294901760, %v601_v41  ;;  %v628_v56 = vand.u32 4294901760, %v627_v52  ;;  %v622_v58 = vsub.f32 %v620_v51, %v621_v55 }
   0xf   :  { %v609_v53 = vand.u32 4294901760, %v608_v49  ;;  %v616_v54 = vand.u32 4294901760, %v615_v50  ;;  %v641_v61 = vsub.f32 %v36_v31, %v529_v34  ;;  %v635_v0 = vand.u32 4294901760, %v634_v60  ;;  %p11604_p3 = por %p11603_p2, %p11602_p1 }
  0x10   :  { %9589 = vmatmul.mubr.f32.vlgmr.msra.gmra.mrb[0].mxu0 %v123_v9  ;;  %v124_v11 = vand.u32 4294901760, %v123_v9  ;;  %v11765_v48 = vpack.c.bf16 %v602_v45, %v595_v44  ;;  %v629_v59 = vsub.f32 %v627_v52, %v628_v56  ;;  %v623_v62 = vand.u32 4294901760, %v622_v58 }
  0x11   :  { %9592 = vmatpush3.msra.mxu0 %v11677_v3  ;;  %9593 = vmatprep.mubr.msk.f32.mxu0 %vm11622_vm1, %v11621_v2  ;;  %v11767_v57 = vpack.c.bf16 %v616_v54, %v609_v53  ;;  %v642_v1 = vand.u32 4294901760, %v641_v61  ;;  %v11775_v15 = vpack.c.bf16 %v613_v43, %v606_v42  ;;  %v11777_v16 = vpack.c.bf16 %v627_v52, %v620_v51  ;;  %p11605_p4 = pnand %p11604_p3, %p11598_p0 }
  0x12   :  { %v125_v12 = vsub.f32 %v123_v9, %v124_v11  ;;  %9596 = vmatprep.subr.mxu0 %v11621_v2  ;;  %v630_v63 = vand.u32 4294901760, %v629_v59  ;;  %v11779_v17 = vpack.c.bf16 %v641_v61, %v634_v60  ;;  %v11781_v19 = vpack.c.bf16 %v600_v39, %v593_v38 }
  0x13   :  { %v643_v9 = vsub.f32 %v641_v61, %v642_v1  ;;  %v11783_v20 = vpack.c.bf16 %v614_v47, %v607_v46  ;;  %v11785_v21 = vpack.c.bf16 %v628_v56, %v621_v55  ;;  %v11787_v22 = vpack.c.bf16 %v642_v1, %v635_v0 }
  0x14   :  { %v126_v14 = vand.u32 4294901760, %v125_v12  ;;  %v11769_v6 = vpack.c.bf16 %v630_v63, %v623_v62  ;;  %vm503_vm2 = vcmask 523264   ;;  %v11626_v55 = vmov 683565275  }
  0x15   :  { %v11627_v58 = vmov 2475754826   ;;  %v11628_v61 = vmov 2131351028  }
  0x16   :  { %9579 = vmatmul.mubr.f32.vlgmr.msra.gmra.mrb[0].mxu1 %v126_v14  ;;  %v11773_v14 = vpack.c.bf16 %v599_v36, %v592_v35 }
  0x17   :  { %9582 = vmatpush3.msra.mxu1 %v11705_v13  ;;  %9583 = vmatprep.mubr.msk.f32.mxu1 %vm11622_vm1, %v11621_v2 }
  0x18   :  { %9594 = vmatmul.mubr.f32.vlgmr.msra.gmra.mrb[0].mxu0 %v124_v11  ;;  %10728 = vmatprep.subr.bf16.mxu1 %v11623_v18  ;;  %v644_v11 = vand.u32 4294901760, %v643_v9  ;;  %v12834_v9 = vmov 920167782  }
  0x19   :  { %9597 = vmatpush3.msra.mxu0 %v11697_v7  ;;  %9598 = vmatprep.mubr.msk.f32.mxu0 %vm11622_vm1, %v11621_v2 }
  0x1a   :  { %9601 = vmatprep.subr.mxu0 %v11621_v2 }
  0x1e   :  { %9584 = vmatmul.mubr.f32.vlgmr.msra.gmra.mrb[0].mxu1 %v122_v8 }
  0x1f   :  { %9622 = vmatprep.mubr.msk.f32.mxu1 %vm11622_vm1, %v11621_v2  ;;  %10730 = vmatpush3.bf16.msra.mxu1 %v11743_v26 }
  0x20   :  { %9599 = vmatmul.mubr.f32.vlgmr.msra.gmra.mrb[0].mxu0 %v122_v8  ;;  %10731 = vmatprep.subr.bf16.mxu1 %v11623_v18 }
  0x21   :  { %9602 = vmatpush3.msra.mxu0 %v11677_v3  ;;  %9603 = vmatprep.mubr.msk.f32.mxu0 %vm11622_vm1, %v11621_v2 }
  0x22   :  { %9720 = vmatprep.subr.mxu0 %v11621_v2 }
  0x23   :  { %10733 = vmatpush3.bf16.msra.mxu1 %v11746_v27 }
  0x24   :  { %10734 = vmatprep.subr.bf16.mxu1 %v11623_v18 }
  0x27   :  { %10736 = vmatpush3.bf16.msra.mxu1 %v11756_v32 }
  0x28   :  { %9604 = vmatmul.mubr.f32.vlgmr.msra.gmra.mrb[0].mxu0 %v122_v8  ;;  %10737 = vmatprep.subr.bf16.mxu1 %v11623_v18  ;;  %v636_v8 = vsub.f32 %v634_v60, %v635_v0  ;;  %v11629_v0 = vmov 2102212464  }
  0x29   :  { %9721 = vmatpush3.msra.mxu0 %v11677_v3  ;;  %9722 = vmatprep.mubr.msk.f32.mxu0 %vm11622_vm1, %v11621_v2 }
  0x2a   :  { %9725 = vmatprep.subr.mxu0 %v11621_v2  ;;  %v637_v10 = vand.u32 4294901760, %v636_v8 }
  0x2b   :  { %10739 = vmatpush3.bf16.msra.mxu1 %v11760_v37 }
  0x2c   :  { %10740 = vmatprep.subr.bf16.mxu1 %v11623_v18  ;;  %v11771_v12 = vpack.c.bf16 %v644_v11, %v637_v10 }
  0xf1   :  { %v204_v23 = vpop.f32.mrb[0].mxu1 }
  0xf2   :  { %v9585_v24 = vpop.f32.mrb[1].mxu1  ;;  %v11304_v28 = vadd.f32 %v11792_v25, %v204_v23  ;;  %v12836_v23 = vmov 1326507024  }
  0xfb   :  { %v498_v29 = vpop.f32.mrb[0].mxu0 }
  0xfc   :  { %v11305_v30 = vadd.f32 %v11304_v28, %v498_v29  ;;  %v9605_v31 = vpop.f32.mrb[1].mxu0 }
  0xfe   :  { %11529 = vtanh.f32 %v11305_v30  ;;  %1154 = vrot.lane.b32.xlu0 %v11305_v30, %s11624_s12 }
 0x102   :  { %1149 = vrot.lane.b32.xlu0 %v11692_v5, %s11625_s13  ;;  %v11862_v5 = vld [vmem:[%s12832_s4] ss:$0 sm:$0xff] }
 0x108   :  { %v11530_v33 = vpop.eup %11529 }
 0x109   :  { %v505_v34 = vsel %vm503_vm2, %v11530_v33, 0 }
 0x10a   :  { %v580_v35 = vand.u32 4294901760, %v505_v34 }
 0x10c   :  { %v581_v36 = vsub.f32 %v505_v34, %v580_v35 }
 0x10e   :  { %v582_v38 = vand.u32 4294901760, %v581_v36 }
 0x110   :  { %v583_v39 = vsub.f32 %v581_v36, %v582_v38 }
 0x112   :  { %v584_v40 = vand.u32 4294901760, %v583_v39 }
 0x114   :  { %9623 = vmatmul.mubr.f32.vlgmr.msra.gmra.mrb[2].mxu1 %v584_v40 }
 0x115   :  { %10742 = vmatpush3.bf16.msra.mxu1 %v11765_v48  ;;  %9641 = vmatprep.mubr.msk.f32.mxu1 %vm11622_vm1, %v11621_v2 }
 0x116   :  { %10743 = vmatprep.subr.bf16.mxu1 %v11623_v18 }
 0x119   :  { %10745 = vmatpush3.bf16.msra.mxu1 %v11767_v57 }
 0x11a   :  { %10746 = vmatprep.subr.bf16.mxu1 %v11623_v18 }
 0x11d   :  { %10748 = vmatpush3.bf16.msra.mxu1 %v11769_v6 }
 0x11e   :  { %10749 = vmatprep.subr.bf16.mxu1 %v11623_v18 }
 0x121   :  { %10751 = vmatpush3.bf16.msra.mxu1 %v11771_v12 }
 0x122   :  { %10752 = vmatprep.subr.bf16.mxu1 %v11623_v18 }
 0x124   :  { %9642 = vmatmul.mubr.f32.vlgmr.msra.gmra.mrb[2].mxu1 %v580_v35 }
 0x125   :  { %10754 = vmatpush3.bf16.msra.mxu1 %v11773_v14  ;;  %9660 = vmatprep.mubr.msk.f32.mxu1 %vm11622_vm1, %v11621_v2 }
 0x126   :  { %10755 = vmatprep.subr.bf16.mxu1 %v11623_v18 }
 0x129   :  { %10757 = vmatpush3.bf16.msra.mxu1 %v11775_v15 }
 0x12a   :  { %10758 = vmatprep.subr.bf16.mxu1 %v11623_v18 }
 0x12d   :  { %10760 = vmatpush3.bf16.msra.mxu1 %v11777_v16 }
 0x12e   :  { %10761 = vmatprep.subr.bf16.mxu1 %v11623_v18 }
 0x131   :  { %10763 = vmatpush3.bf16.msra.mxu1 %v11779_v17 }
 0x132   :  { %10764 = vmatprep.subr.bf16.mxu1 %v11623_v18 }
 0x134   :  { %9661 = vmatmul.mubr.f32.vlgmr.msra.gmra.mrb[2].mxu1 %v581_v36 }
 0x135   :  { %10766 = vmatpush3.bf16.msra.mxu1 %v11743_v26  ;;  %9679 = vmatprep.mubr.msk.f32.mxu1 %vm11622_vm1, %v11621_v2 }
 0x136   :  { %10767 = vmatprep.subr.bf16.mxu1 %v11623_v18 }
 0x139   :  { %10769 = vmatpush3.bf16.msra.mxu1 %v11746_v27 }
 0x13a   :  { %10770 = vmatprep.subr.bf16.mxu1 %v11623_v18 }
 0x13d   :  { %10772 = vmatpush3.bf16.msra.mxu1 %v11756_v32 }
 0x13e   :  { %10773 = vmatprep.subr.bf16.mxu1 %v11623_v18 }
 0x141   :  { %10775 = vmatpush3.bf16.msra.mxu1 %v11760_v37 }
 0x142   :  { %10776 = vmatprep.subr.bf16.mxu1 %v11623_v18 }
 0x144   :  { %9680 = vmatmul.mubr.f32.vlgmr.msra.gmra.mrb[2].mxu1 %v582_v38 }
 0x145   :  { %10778 = vmatpush3.bf16.msra.mxu1 %v11781_v19  ;;  %9698 = vmatprep.mubr.msk.f32.mxu1 %vm11622_vm1, %v11621_v2 }
 0x146   :  { %10779 = vmatprep.subr.bf16.mxu1 %v11623_v18 }
 0x149   :  { %10781 = vmatpush3.bf16.msra.mxu1 %v11783_v20 }
 0x14a   :  { %10782 = vmatprep.subr.bf16.mxu1 %v11623_v18 }
 0x14d   :  { %10784 = vmatpush3.bf16.msra.mxu1 %v11785_v21 }
 0x14e   :  { %10785 = vmatprep.subr.bf16.mxu1 %v11623_v18 }
 0x151   :  { %10787 = vmatpush3.bf16.msra.mxu1 %v11787_v22 }
 0x152   :  { %10788 = vmatprep.subr.bf16.mxu1 %v11623_v18 }
 0x154   :  { %9699 = vmatmul.mubr.f32.vlgmr.msra.gmra.mrb[2].mxu1 %v580_v35 }
 0x155   :  { %10790 = vmatpush3.bf16.msra.mxu1 %v11743_v26  ;;  %9717 = vmatprep.mubr.msk.f32.mxu1 %vm11622_vm1, %v11621_v2 }
 0x156   :  { %10791 = vmatprep.subr.bf16.mxu1 %v11623_v18 }
 0x159   :  { %10793 = vmatpush3.bf16.msra.mxu1 %v11746_v27 }
 0x15a   :  { %10794 = vmatprep.subr.bf16.mxu1 %v11623_v18 }
 0x15d   :  { %10796 = vmatpush3.bf16.msra.mxu1 %v11756_v32 }
 0x15e   :  { %10797 = vmatprep.subr.bf16.mxu1 %v11623_v18 }
 0x161   :  { %10799 = vmatpush3.bf16.msra.mxu1 %v11760_v37 }
 0x162   :  { %10800 = vmatprep.subr.bf16.mxu1 %v11623_v18 }
 0x164   :  { %9718 = vmatmul.mubr.f32.vlgmr.msra.gmra.mrb[2].mxu1 %v580_v35 }
 0x165   :  { %10802 = vmatpush3.bf16.msra.mxu1 %v11743_v26  ;;  %9766 = vmatprep.mubr.msk.f32.mxu1 %vm11622_vm1, %v11621_v2 }
 0x166   :  { %10803 = vmatprep.subr.bf16.mxu1 %v11623_v18 }
 0x169   :  { %10805 = vmatpush3.bf16.msra.mxu1 %v11746_v27 }
 0x16a   :  { %10806 = vmatprep.subr.bf16.mxu1 %v11623_v18 }
 0x16d   :  { %10808 = vmatpush3.bf16.msra.mxu1 %v11756_v32 }
 0x16e   :  { %10809 = vmatprep.subr.bf16.mxu1 %v11623_v18 }
 0x171   :  { %10811 = vmatpush3.bf16.msra.mxu1 %v11760_v37 }
 0x172   :  { %9864 = vmatprep.subr.mxu1 %v11621_v2 }
 0x237   :  { %v1040_v41 = vpop.f32.mrb[2].mxu1 }
 0x238   :  { %v11865_v42 = vadd.f32 %v11862_v5, %v1040_v41  ;;  %v9719_v43 = vpop.f32.mrb[3].mxu1 }
 0x23a   :  { %v1049_v44 = vand.u32 2139095040, %v11865_v42  ;;  %v1046_v49 = vand.u32 2147483647, %v11865_v42  ;;  %vm1048_vm10 = vcmp.lt.s32.totalorder %v11865_v42, 0  ;;  %vm1138_vm15 = vweird.f32 %v11865_v42 }
 0x23c   :  { %v1050_v45 = vshrl.u32 %v1049_v44, 23  ;;  %v1053_v53 = vand.u32 8388607, %v1046_v49  ;;  %vm1047_vm11 = vcmp.le.f32.partialorder %v1046_v49, 0.7853982 }
 0x23e   :  { %v9016_v46 = vadd.s32 4294967169, %v1050_v45  ;;  %v1054_v28 = vor.u32 8388608, %v1053_v53 }
 0x240   :  { %v1056_v47 = vadd.s32 1, %v9016_v46  ;;  %v1094_v45 = vshll.u32 %v1054_v28, 8 }
 0x242   :  { %vm1057_vm3 = vcmp.gt.s32.totalorder %v1056_v47, 0 }
 0x243   :  { %v1058_v50 = vsel %vm1057_vm3, %v1056_v47, 0 }
 0x244   :  { %v1060_v51 = vand.u32 31, %v1058_v50  ;;  %v1059_v54 = vshrl.u32 %v1058_v50, 5 }
 0x246   :  { %v1061_v52 = vsub.s32 32, %v1060_v51  ;;  %v1063_v56 = vshll.u32 %v11626_v55, %v1060_v51  ;;  %v1066_v59 = vshll.u32 %v11627_v58, %v1060_v51  ;;  %v1069_v63 = vshll.u32 %v11628_v61, %v1060_v51 }
 0x247   :  { %v1072_v8 = vshll.u32 %v11629_v0, %v1060_v51  ;;  %v1075_v11 = vshll.u32 %v12834_v9, %v1060_v51  ;;  %vm1078_vm4 = vcmp.lt.s32.totalorder %v1059_v54, 1  ;;  %vm1081_vm5 = vcmp.lt.s32.totalorder %v1059_v54, 4 }
 0x248   :  { %v1064_v60 = vshrl.u32 %v11627_v58, %v1061_v52  ;;  %v1067_v62 = vshrl.u32 %v11628_v61, %v1061_v52  ;;  %v1070_v1 = vshrl.u32 %v11629_v0, %v1061_v52  ;;  %v1073_v10 = vshrl.u32 %v12834_v9, %v1061_v52 }
 0x249   :  { %v1076_v24 = vshrl.u32 %v12836_v23, %v1061_v52  ;;  %v1062_v39 = vshrl.u32 %v11626_v55, %v1061_v52  ;;  %vm1080_vm6 = vcmp.lt.s32.totalorder %v1059_v54, 3  ;;  %vm1079_vm7 = vcmp.lt.s32.totalorder %v1059_v54, 2 }
 0x24a   :  { %v1065_v29 = vor.u32 %v1064_v60, %v1063_v56  ;;  %v1068_v30 = vor.u32 %v1067_v62, %v1066_v59  ;;  %v1071_v31 = vor.u32 %v1070_v1, %v1069_v63  ;;  %v1074_v33 = vor.u32 %v1073_v10, %v1072_v8 }
 0x24b   :  { %v1077_v34 = vor.u32 %v1076_v24, %v1075_v11 }
 0x24c   :  { %v1083_v35 = vsel %vm1081_vm5, %v1071_v31, 2102212464  ;;  %v1086_v36 = vsel %vm1078_vm4, %v1065_v29, %v1068_v30  ;;  %v1090_v38 = vsel %vm1078_vm4, %v1068_v30, %v1071_v31  ;;  %v1087_v40 = vsel %vm1081_vm5, %v1074_v33, 920167782 }
 0x24d   :  { %v1091_v41 = vsel %vm1081_vm5, %v1077_v34, 1326507024  ;;  %v1088_v43 = vsel %vm1080_vm6, %v1071_v31, %v1087_v40  ;;  %v1082_v46 = vsel %vm1078_vm4, %v1062_v39, %v1065_v29  ;;  %v1084_v47 = vsel %vm1080_vm6, %v1068_v30, %v1083_v35 }
 0x24e   :  { %v1092_v44 = vsel %vm1080_vm6, %v1074_v33, %v1091_v41  ;;  %v1089_v50 = vsel %vm1079_vm7, %v1086_v36, %v1088_v43  ;;  %v1085_v62 = vsel %vm1079_vm7, %v1082_v46, %v1084_v47 }
 0x24f   :  { %v1093_v51 = vsel %vm1079_vm7, %v1090_v38, %v1092_v44  ;;  %v11885_v59 = vmul.u32.u64.low %v1094_v45, %v1089_v50  ;;  %v11886_v60 = vmul.u32.u64.high %v1094_v45, %v1089_v50, %v11885_v59  ;;  %v1101_v63 = vmul.u32 %v1094_v45, %v1085_v62 }
 0x250   :  { %v11882_v53 = vmul.u32.u64.low %v1094_v45, %v1093_v51  ;;  %v11883_v56 = vmul.u32.u64.high %v1094_v45, %v1093_v51, %v11882_v53 }
 0x251   :  { %v1104_v52 = vadd.s32 1, %v11886_v60 }
 0x252   :  { %vm1103_vm8 = vc.u32 %v11883_v56, %v11885_v59  ;;  %v1102_v34 = vadd.s32 %v11885_v59, %v11883_v56 }
 0x253   :  { %v1105_v54 = vsel %vm1103_vm8, %v1104_v52, %v11886_v60 }
 0x254   :  { %v1106_v1 = vadd.s32 %v1105_v54, %v1101_v63 }
 0x256   :  { %v1107_v8 = vadd.s32 536870912, %v1106_v1 }
 0x258   :  { %v1108_v10 = vshrl.u32 %v1107_v8, 30 }
 0x25a   :  { %v1109_v11 = vshll.u32 %v1108_v10, 30  ;;  %v1132_v53 = vsub.s32 4, %v1108_v10 }
 0x25c   :  { %v1110_v24 = vsub.s32 %v1106_v1, %v1109_v11  ;;  %v1133_v59 = vsel %vm1048_vm10, %v1132_v53, %v1108_v10 }
 0x25d   :  { %v1135_v60 = vsel %vm1047_vm11, 0, %v1133_v59 }
 0x25e   :  { %v1112_v28 = vsub.s32 0, %v1110_v24  ;;  %v1139_v62 = vand.u32 3, %v1135_v60 }
 0x260   :  { %v9017_v29 = vmin.u32 %v1112_v28, %v1110_v24  ;;  %vm1144_vm12 = vcmp.eq.s32.totalorder %v1139_v62, 2  ;;  %vm1141_vm13 = vcmp.eq.s32.totalorder %v1139_v62, 0  ;;  %vm1140_vm14 = vcmp.lt.s32.totalorder %v1139_v62, 2 }
 0x262   :  { %v1114_v30 = vclz %v9017_v29 }
 0x264   :  { %v9018_v31 = vadd.s32 4294967294, %v1114_v30 }
 0x266   :  { %vm9019_vm9 = vcmp.lt.s32.totalorder %v9018_v31, 0 }
 0x267   :  { %v1117_v33 = vsel %vm9019_vm9, 0, %v9018_v31 }
 0x268   :  { %v1118_v35 = vsub.s32 32, %v1117_v33  ;;  %v1122_v36 = vsub.s32 4294967266, %v1117_v33  ;;  %v1119_v38 = vshll.u32 %v1110_v24, %v1117_v33  ;;  %v1155_v24 = vpop.permute.xlu0 %1154 }
 0x26a   :  { %v1120_v39 = vshrl.u32 %v1102_v34, %v1118_v35  ;;  %v1123_v40 = vadd.s32 127, %v1122_v36  ;;  %v1044_v34 = vmul.f32 1.442695, %v11865_v42 }
 0x26c   :  { %v1121_v41 = vor.u32 %v1120_v39, %v1119_v38  ;;  %v1124_v43 = vshll.u32 %v1123_v40, 23  ;;  %v1150_v10 = vpop.permute.xlu0 %1149 }
 0x26e   :  { %v1125_v44 = vor.u32 4788187, %v1124_v43  ;;  %v1128_v46 = vcvt.s32.f32 %v1121_v41 }
 0x270   :  { %v1126_v45 = vand.u32 2147483647, %v1125_v44 }
 0x272   :  { %v1129_v47 = vmul.f32 %v1128_v46, %v1126_v45 }
 0x274   :  { %v1130_v50 = vxor.u32 2147483648, %v1129_v47 }
 0x276   :  { %v1131_v51 = vsel %vm1048_vm10, %v1130_v50, %v1129_v47 }
 0x277   :  { %v1134_v56 = vsel %vm1047_vm11, %v11865_v42, %v1131_v51 }
 0x278   :  { %11531 = vcosq.f32 %v1134_v56 }
 0x279   :  { %11533 = vsinq.f32 %v1134_v56 }
 0x27a   :  { %11535 = vpow2.f32 %v1044_v34 }
 0x282   :  { %v11532_v52 = vpop.eup %11531 }
 0x283   :  { %v11534_v63 = vpop.eup %11533  ;;  %v1145_v54 = vxor.u32 2147483648, %v11532_v52 }
 0x284   :  { %v1142_v1 = vxor.u32 2147483648, %v11534_v63  ;;  %v11536_v35 = vpop.eup %11535 }
 0x285   :  { %v1146_v8 = vsel %vm1144_vm12, %v1145_v54, %v11534_v63 }
 0x286   :  { %v1143_v11 = vsel %vm1141_vm13, %v11532_v52, %v1142_v1 }
 0x287   :  { %v1147_v49 = vsel %vm1140_vm14, %v1143_v11, %v1146_v8 }
 0x288   :  { %v1148_v28 = vsel %vm1138_vm15, nan, %v1147_v49 }
 0x289   :  { %v1157_v29 = vmul.f32 %v1155_v24, %v1148_v28  ;;  %v1152_v30 = vmul.f32 %v1150_v10, %v1148_v28 }
 0x28b   :  { %1159 = vrot.lane.b32.xlu1 %v1157_v29, %s11632_s16 }
 0x2fd   :  { %v1160_v31 = vpop.permute.xlu1 %1159 }
 0x2fe   :  { %v1162_v33 = vadd.f32 %v1160_v31, %v1152_v30 }
 0x300   :  { %1164 = vrot.lane.b32.xlu1 %v1162_v33, %s11632_s16 }
 0x372   :  { %v1165_v36 = vpop.permute.xlu1 %1164 }
 0x373   :  { %v11900_v38 = vmul.f32 %v11536_v35, %v1165_v36 }
 0x375   :  { %v1169_v39 = vsel %vm26_vm0, %v11900_v38, 0  ;;  %2263 = vrot.lane.b32.xlu1 %v11900_v38, %s11625_s13 }
 0x376   :  { %v1237_v40 = vand.u32 4294901760, %v1169_v39 }
 0x378   :  { %v1238_v41 = vsub.f32 %v1169_v39, %v1237_v40 }
 0x37a   :  { %v1239_v43 = vand.u32 4294901760, %v1238_v41 }
 0x37c   :  { %v1240_v44 = vsub.f32 %v1238_v41, %v1239_v43 }
 0x37e   :  { %v1241_v45 = vand.u32 4294901760, %v1240_v44 }
 0x380   :  { %9723 = vmatmul.mubr.f32.vlgmr.msra.gmra.mrb[2].mxu0 %v1241_v45 }
 0x381   :  { %9726 = vmatpush3.msra.mxu0 %v11705_v13  ;;  %9727 = vmatprep.mubr.msk.f32.mxu0 %vm11622_vm1, %v11621_v2 }
 0x382   :  { %9730 = vmatprep.subr.mxu0 %v11621_v2 }
 0x388   :  { %9728 = vmatmul.mubr.f32.vlgmr.msra.gmra.mrb[2].mxu0 %v1237_v40 }
 0x389   :  { %9731 = vmatpush3.msra.mxu0 %v11686_v4  ;;  %9732 = vmatprep.mubr.msk.f32.mxu0 %vm11622_vm1, %v11621_v2 }
 0x38a   :  { %9735 = vmatprep.subr.mxu0 %v11621_v2 }
 0x390   :  { %9733 = vmatmul.mubr.f32.vlgmr.msra.gmra.mrb[2].mxu0 %v1238_v41 }
 0x391   :  { %9736 = vmatpush3.msra.mxu0 %v11677_v3  ;;  %9737 = vmatprep.mubr.msk.f32.mxu0 %vm11622_vm1, %v11621_v2 }
 0x392   :  { %9740 = vmatprep.subr.mxu0 %v11621_v2 }
 0x398   :  { %9738 = vmatmul.mubr.f32.vlgmr.msra.gmra.mrb[2].mxu0 %v1239_v43 }
 0x399   :  { %9741 = vmatpush3.msra.mxu0 %v11697_v7  ;;  %9742 = vmatprep.mubr.msk.f32.mxu0 %vm11622_vm1, %v11621_v2 }
 0x39a   :  { %9745 = vmatprep.subr.mxu0 %v11621_v2 }
 0x3a0   :  { %9743 = vmatmul.mubr.f32.vlgmr.msra.gmra.mrb[2].mxu0 %v1237_v40 }
 0x3a1   :  { %9746 = vmatpush3.msra.mxu0 %v11677_v3  ;;  %9747 = vmatprep.mubr.msk.f32.mxu0 %vm11622_vm1, %v11621_v2 }
 0x3a2   :  { %10812 = vmatprep.subr.bf16.mxu0 %v11623_v18 }
 0x3a8   :  { %9748 = vmatmul.mubr.f32.vlgmr.msra.gmra.mrb[2].mxu0 %v1237_v40 }
 0x3a9   :  { %10814 = vmatpush3.bf16.msra.mxu0 %v11765_v48  ;;  %9785 = vmatprep.mubr.msk.f32.mxu0 %vm11622_vm1, %v11621_v2 }
 0x3aa   :  { %10815 = vmatprep.subr.bf16.mxu0 %v11623_v18 }
 0x3ad   :  { %10817 = vmatpush3.bf16.msra.mxu0 %v11767_v57 }
 0x3ae   :  { %10818 = vmatprep.subr.bf16.mxu0 %v11623_v18 }
 0x3b1   :  { %10820 = vmatpush3.bf16.msra.mxu0 %v11769_v6 }
 0x3b2   :  { %10821 = vmatprep.subr.bf16.mxu0 %v11623_v18 }
 0x3b5   :  { %10823 = vmatpush3.bf16.msra.mxu0 %v11771_v12 }
 0x3b6   :  { %10824 = vmatprep.subr.bf16.mxu0 %v11623_v18 }
 0x47b   :  { %v1613_v42 = vpop.f32.mrb[2].mxu0 }
 0x47c   :  { %v11307_v46 = vadd.f32 %v11792_v25, %v1613_v42  ;;  %v9749_v47 = vpop.f32.mrb[3].mxu0 }
 0x47e   :  { %11537 = vtanh.f32 %v11307_v46  ;;  %2268 = vrot.lane.b32.xlu0 %v11307_v46, %s11624_s12 }
 0x488   :  { %v11538_v50 = vpop.eup %11537 }
 0x489   :  { %v1619_v51 = vsel %vm503_vm2, %v11538_v50, 0 }
 0x48a   :  { %v1694_v53 = vand.u32 4294901760, %v1619_v51 }
 0x48c   :  { %v1695_v56 = vsub.f32 %v1619_v51, %v1694_v53  ;;  %9786 = vmatmul.mubr.f32.vlgmr.msra.gmra.mrb[4].mxu0 %v1694_v53 }
 0x48d   :  { %10826 = vmatpush3.bf16.msra.mxu0 %v11773_v14  ;;  %9804 = vmatprep.mubr.msk.f32.mxu0 %vm11622_vm1, %v11621_v2 }
 0x48e   :  { %10827 = vmatprep.subr.bf16.mxu0 %v11623_v18  ;;  %v1696_v59 = vand.u32 4294901760, %v1695_v56 }
 0x490   :  { %v1697_v60 = vsub.f32 %v1695_v56, %v1696_v59 }
 0x491   :  { %10829 = vmatpush3.bf16.msra.mxu0 %v11775_v15 }
 0x492   :  { %10830 = vmatprep.subr.bf16.mxu0 %v11623_v18  ;;  %v1698_v62 = vand.u32 4294901760, %v1697_v60 }
 0x494   :  { %9767 = vmatmul.mubr.f32.vlgmr.msra.gmra.mrb[4].mxu1 %v1698_v62 }
 0x495   :  { %10832 = vmatpush3.bf16.msra.mxu0 %v11777_v16  ;;  %9865 = vmatpush3.msra.mxu1 %v11677_v3 }
 0x496   :  { %10833 = vmatprep.subr.bf16.mxu0 %v11623_v18  ;;  %9866 = vmatprep.mubr.msk.f32.mxu1 %vm11622_vm1, %v11621_v2 }
 0x497   :  { %9869 = vmatprep.subr.mxu1 %v11621_v2 }
 0x499   :  { %10835 = vmatpush3.bf16.msra.mxu0 %v11779_v17 }
 0x49a   :  { %10836 = vmatprep.subr.bf16.mxu0 %v11623_v18 }
 0x49c   :  { %9805 = vmatmul.mubr.f32.vlgmr.msra.gmra.mrb[4].mxu0 %v1695_v56 }
 0x49d   :  { %10838 = vmatpush3.bf16.msra.mxu0 %v11743_v26  ;;  %9823 = vmatprep.mubr.msk.f32.mxu0 %vm11622_vm1, %v11621_v2 }
 0x49e   :  { %10839 = vmatprep.subr.bf16.mxu0 %v11623_v18 }
 0x4a1   :  { %10841 = vmatpush3.bf16.msra.mxu0 %v11746_v27 }
 0x4a2   :  { %10842 = vmatprep.subr.bf16.mxu0 %v11623_v18 }
 0x4a5   :  { %10844 = vmatpush3.bf16.msra.mxu0 %v11756_v32 }
 0x4a6   :  { %10845 = vmatprep.subr.bf16.mxu0 %v11623_v18 }
 0x4a9   :  { %10847 = vmatpush3.bf16.msra.mxu0 %v11760_v37 }
 0x4aa   :  { %10848 = vmatprep.subr.bf16.mxu0 %v11623_v18 }
 0x4ac   :  { %9824 = vmatmul.mubr.f32.vlgmr.msra.gmra.mrb[4].mxu0 %v1696_v59 }
 0x4ad   :  { %10850 = vmatpush3.bf16.msra.mxu0 %v11781_v19  ;;  %9842 = vmatprep.mubr.msk.f32.mxu0 %vm11622_vm1, %v11621_v2 }
 0x4ae   :  { %10851 = vmatprep.subr.bf16.mxu0 %v11623_v18 }
 0x4b1   :  { %10853 = vmatpush3.bf16.msra.mxu0 %v11783_v20 }
 0x4b2   :  { %10854 = vmatprep.subr.bf16.mxu0 %v11623_v18 }
 0x4b5   :  { %10856 = vmatpush3.bf16.msra.mxu0 %v11785_v21 }
 0x4b6   :  { %10857 = vmatprep.subr.bf16.mxu0 %v11623_v18 }
 0x4b9   :  { %10859 = vmatpush3.bf16.msra.mxu0 %v11787_v22 }
 0x4ba   :  { %10860 = vmatprep.subr.bf16.mxu0 %v11623_v18 }
 0x4bc   :  { %9843 = vmatmul.mubr.f32.vlgmr.msra.gmra.mrb[4].mxu0 %v1694_v53 }
 0x4bd   :  { %10862 = vmatpush3.bf16.msra.mxu0 %v11743_v26  ;;  %9861 = vmatprep.mubr.msk.f32.mxu0 %vm11622_vm1, %v11621_v2 }
 0x4be   :  { %10863 = vmatprep.subr.bf16.mxu0 %v11623_v18 }
 0x4c1   :  { %10865 = vmatpush3.bf16.msra.mxu0 %v11746_v27 }
 0x4c2   :  { %10866 = vmatprep.subr.bf16.mxu0 %v11623_v18 }
 0x4c5   :  { %10868 = vmatpush3.bf16.msra.mxu0 %v11756_v32 }
 0x4c6   :  { %10869 = vmatprep.subr.bf16.mxu0 %v11623_v18 }
 0x4c9   :  { %10871 = vmatpush3.bf16.msra.mxu0 %v11760_v37 }
 0x4ca   :  { %10008 = vmatprep.subr.mxu0 %v11621_v2 }
 0x4cc   :  { %9862 = vmatmul.mubr.f32.vlgmr.msra.gmra.mrb[4].mxu0 %v1694_v53 }
 0x4cd   :  { %10009 = vmatpush3.msra.mxu0 %v11677_v3  ;;  %10010 = vmatprep.mubr.msk.f32.mxu0 %vm11622_vm1, %v11621_v2 }
 0x4ce   :  { %10013 = vmatprep.subr.mxu0 %v11621_v2 }
 0x567   :  { %v1700_v52 = vpop.f32.mrb[4].mxu1 }
 0x568   :  { %v9768_v63 = vpop.f32.mrb[5].mxu1  ;;  %v1701_v54 = vadd.f32 %v11862_v5, %v1700_v52 }
 0x59f   :  { %v2154_v1 = vpop.f32.mrb[4].mxu0 }
 0x5a0   :  { %v11988_v8 = vadd.f32 %v2154_v1, %v1701_v54  ;;  %v9863_v11 = vpop.f32.mrb[5].mxu0 }
 0x5a2   :  { %v2163_v49 = vand.u32 2139095040, %v11988_v8  ;;  %v2160_v10 = vand.u32 2147483647, %v11988_v8  ;;  %vm2162_vm10 = vcmp.lt.s32.totalorder %v11988_v8, 0  ;;  %vm2252_vm15 = vweird.f32 %v11988_v8 }
 0x5a4   :  { %v2164_v24 = vshrl.u32 %v2163_v49, 23  ;;  %v2167_v34 = vand.u32 8388607, %v2160_v10  ;;  %vm2161_vm11 = vcmp.le.f32.partialorder %v2160_v10, 0.7853982 }
 0x5a6   :  { %v9020_v28 = vadd.s32 4294967169, %v2164_v24  ;;  %v2168_v50 = vor.u32 8388608, %v2167_v34 }
 0x5a8   :  { %v2170_v29 = vadd.s32 1, %v9020_v28  ;;  %v2208_v28 = vshll.u32 %v2168_v50, 8 }
 0x5aa   :  { %vm2171_vm3 = vcmp.gt.s32.totalorder %v2170_v29, 0 }
 0x5ab   :  { %v2172_v30 = vsel %vm2171_vm3, %v2170_v29, 0 }
 0x5ac   :  { %v2174_v31 = vand.u32 31, %v2172_v30  ;;  %v2173_v35 = vshrl.u32 %v2172_v30, 5 }
 0x5ae   :  { %v2175_v33 = vsub.s32 32, %v2174_v31  ;;  %v2177_v36 = vshll.u32 %v11626_v55, %v2174_v31  ;;  %v2180_v39 = vshll.u32 %v11627_v58, %v2174_v31  ;;  %v2183_v43 = vshll.u32 %v11628_v61, %v2174_v31 }
 0x5af   :  { %v2186_v45 = vshll.u32 %v11629_v0, %v2174_v31  ;;  %v2189_v46 = vshll.u32 %v12834_v9, %v2174_v31  ;;  %vm2192_vm4 = vcmp.lt.s32.totalorder %v2173_v35, 1  ;;  %vm2195_vm5 = vcmp.lt.s32.totalorder %v2173_v35, 4 }
 0x5b0   :  { %v2178_v40 = vshrl.u32 %v11627_v58, %v2175_v33  ;;  %v2181_v41 = vshrl.u32 %v11628_v61, %v2175_v33  ;;  %v2184_v44 = vshrl.u32 %v11629_v0, %v2175_v33  ;;  %v2187_v42 = vshrl.u32 %v12834_v9, %v2175_v33 }
 0x5b1   :  { %v2190_v47 = vshrl.u32 %v12836_v23, %v2175_v33  ;;  %v2176_v54 = vshrl.u32 %v11626_v55, %v2175_v33  ;;  %vm2194_vm6 = vcmp.lt.s32.totalorder %v2173_v35, 3  ;;  %vm2193_vm7 = vcmp.lt.s32.totalorder %v2173_v35, 2 }
 0x5b2   :  { %v2179_v51 = vor.u32 %v2178_v40, %v2177_v36  ;;  %v2182_v53 = vor.u32 %v2181_v41, %v2180_v39  ;;  %v2185_v56 = vor.u32 %v2184_v44, %v2183_v43  ;;  %v2188_v59 = vor.u32 %v2187_v42, %v2186_v45 }
 0x5b3   :  { %v2191_v60 = vor.u32 %v2190_v47, %v2189_v46 }
 0x5b4   :  { %v2197_v62 = vsel %vm2195_vm5, %v2185_v56, 2102212464  ;;  %v2200_v52 = vsel %vm2192_vm4, %v2179_v51, %v2182_v53  ;;  %v2204_v63 = vsel %vm2192_vm4, %v2182_v53, %v2185_v56  ;;  %v2201_v1 = vsel %vm2195_vm5, %v2188_v59, 920167782 }
 0x5b5   :  { %v2205_v11 = vsel %vm2195_vm5, %v2191_v60, 1326507024  ;;  %v2202_v49 = vsel %vm2194_vm6, %v2185_v56, %v2201_v1  ;;  %v2196_v29 = vsel %vm2192_vm4, %v2176_v54, %v2179_v51  ;;  %v2198_v30 = vsel %vm2194_vm6, %v2182_v53, %v2197_v62 }
 0x5b6   :  { %v2206_v24 = vsel %vm2194_vm6, %v2188_v59, %v2205_v11  ;;  %v2203_v31 = vsel %vm2193_vm7, %v2200_v52, %v2202_v49  ;;  %v2199_v43 = vsel %vm2193_vm7, %v2196_v29, %v2198_v30 }
 0x5b7   :  { %v2207_v34 = vsel %vm2193_vm7, %v2204_v63, %v2206_v24  ;;  %v12008_v40 = vmul.u32.u64.low %v2208_v28, %v2203_v31  ;;  %v12009_v41 = vmul.u32.u64.high %v2208_v28, %v2203_v31, %v12008_v40  ;;  %v2215_v44 = vmul.u32 %v2208_v28, %v2199_v43 }
 0x5b8   :  { %v12005_v36 = vmul.u32.u64.low %v2208_v28, %v2207_v34  ;;  %v12006_v39 = vmul.u32.u64.high %v2208_v28, %v2207_v34, %v12005_v36 }
 0x5b9   :  { %v2218_v33 = vadd.s32 1, %v12009_v41 }
 0x5ba   :  { %vm2217_vm8 = vc.u32 %v12006_v39, %v12008_v40  ;;  %v2216_v62 = vadd.s32 %v12008_v40, %v12006_v39 }
 0x5bb   :  { %v2219_v35 = vsel %vm2217_vm8, %v2218_v33, %v12009_v41 }
 0x5bc   :  { %v2220_v45 = vadd.s32 %v2219_v35, %v2215_v44 }
 0x5be   :  { %v2221_v42 = vadd.s32 536870912, %v2220_v45 }
 0x5c0   :  { %v2222_v46 = vshrl.u32 %v2221_v42, 30 }
 0x5c2   :  { %v2223_v47 = vshll.u32 %v2222_v46, 30  ;;  %v2246_v41 = vsub.s32 4, %v2222_v46 }
 0x5c4   :  { %v2224_v50 = vsub.s32 %v2220_v45, %v2223_v47  ;;  %v2247_v40 = vsel %vm2162_vm10, %v2246_v41, %v2222_v46  ;;  %v2264_v46 = vpop.permute.xlu1 %2263 }
 0x5c5   :  { %v2249_v43 = vsel %vm2161_vm11, 0, %v2247_v40 }
 0x5c6   :  { %v2226_v51 = vsub.s32 0, %v2224_v50  ;;  %v2253_v33 = vand.u32 3, %v2249_v43 }
 0x5c8   :  { %v9021_v53 = vmin.u32 %v2226_v51, %v2224_v50  ;;  %vm2258_vm12 = vcmp.eq.s32.totalorder %v2253_v33, 2  ;;  %vm2255_vm13 = vcmp.eq.s32.totalorder %v2253_v33, 0  ;;  %vm2254_vm14 = vcmp.lt.s32.totalorder %v2253_v33, 2  ;;  %v2269_v51 = vpop.permute.xlu0 %2268 }
 0x5ca   :  { %v2228_v56 = vclz %v9021_v53 }
 0x5cc   :  { %v9022_v59 = vadd.s32 4294967294, %v2228_v56 }
 0x5ce   :  { %vm9023_vm9 = vcmp.lt.s32.totalorder %v9022_v59, 0 }
 0x5cf   :  { %v2231_v60 = vsel %vm9023_vm9, 0, %v9022_v59 }
 0x5d0   :  { %v2232_v52 = vsub.s32 32, %v2231_v60  ;;  %v2236_v63 = vsub.s32 4294967266, %v2231_v60  ;;  %v2233_v54 = vshll.u32 %v2224_v50, %v2231_v60 }
 0x5d2   :  { %v2234_v1 = vshrl.u32 %v2216_v62, %v2232_v52  ;;  %v2237_v11 = vadd.s32 127, %v2236_v63  ;;  %v2158_v52 = vmul.f32 1.442695, %v11988_v8 }
 0x5d4   :  { %v2235_v49 = vor.u32 %v2234_v1, %v2233_v54  ;;  %v2238_v24 = vshll.u32 %v2237_v11, 23 }
 0x5d6   :  { %v2239_v28 = vor.u32 4788187, %v2238_v24  ;;  %v2242_v30 = vcvt.s32.f32 %v2235_v49 }
 0x5d8   :  { %v2240_v29 = vand.u32 2147483647, %v2239_v28 }
 0x5da   :  { %v2243_v31 = vmul.f32 %v2242_v30, %v2240_v29 }
 0x5dc   :  { %v2244_v34 = vxor.u32 2147483648, %v2243_v31 }
 0x5de   :  { %v2245_v36 = vsel %vm2162_vm10, %v2244_v34, %v2243_v31 }
 0x5df   :  { %v2248_v39 = vsel %vm2161_vm11, %v11988_v8, %v2245_v36 }
 0x5e0   :  { %11539 = vcosq.f32 %v2248_v39 }
 0x5e1   :  { %11541 = vsinq.f32 %v2248_v39 }
 0x5e2   :  { %11543 = vpow2.f32 %v2158_v52 }
 0x5ea   :  { %v11540_v44 = vpop.eup %11539 }
 0x5eb   :  { %v11542_v35 = vpop.eup %11541  ;;  %v2259_v45 = vxor.u32 2147483648, %v11540_v44 }
 0x5ec   :  { %v2256_v42 = vxor.u32 2147483648, %v11542_v35  ;;  %v11544_v63 = vpop.eup %11543 }
 0x5ed   :  { %v2260_v47 = vsel %vm2258_vm12, %v2259_v45, %v11542_v35 }
 0x5ee   :  { %v2257_v50 = vsel %vm2255_vm13, %v11540_v44, %v2256_v42 }
 0x5ef   :  { %v2261_v10 = vsel %vm2254_vm14, %v2257_v50, %v2260_v47 }
 0x5f0   :  { %v2262_v53 = vsel %vm2252_vm15, nan, %v2261_v10 }
 0x5f1   :  { %v2271_v56 = vmul.f32 %v2269_v51, %v2262_v53  ;;  %v2266_v59 = vmul.f32 %v2264_v46, %v2262_v53 }
 0x5f3   :  { %2273 = vrot.lane.b32.xlu0 %v2271_v56, %s11632_s16 }
 0x665   :  { %v2274_v60 = vpop.permute.xlu0 %2273 }
 0x666   :  { %v2276_v62 = vadd.f32 %v2274_v60, %v2266_v59 }
 0x668   :  { %2278 = vrot.lane.b32.xlu1 %v2276_v62, %s11632_s16 }
 0x6da   :  { %v2279_v54 = vpop.permute.xlu1 %2278 }
 0x6db   :  { %v2281_v1 = vmul.f32 %v11544_v63, %v2279_v54 }
 0x6dd   :  { %v2283_v11 = vsel %vm26_vm0, %v2281_v1, 0  ;;  %3377 = vrot.lane.b32.xlu1 %v2281_v1, %s11625_s13 }
 0x6de   :  { %v2351_v49 = vand.u32 4294901760, %v2283_v11 }
 0x6e0   :  { %v2352_v24 = vsub.f32 %v2283_v11, %v2351_v49 }
 0x6e2   :  { %v2353_v28 = vand.u32 4294901760, %v2352_v24 }
 0x6e4   :  { %v2354_v29 = vsub.f32 %v2352_v24, %v2353_v28 }
 0x6e6   :  { %v2355_v30 = vand.u32 4294901760, %v2354_v29 }
 0x6e8   :  { %9867 = vmatmul.mubr.f32.vlgmr.msra.gmra.mrb[6].mxu1 %v2355_v30 }
 0x6e9   :  { %9870 = vmatpush3.msra.mxu1 %v11705_v13  ;;  %9871 = vmatprep.mubr.msk.f32.mxu1 %vm11622_vm1, %v11621_v2 }
 0x6ea   :  { %9874 = vmatprep.subr.mxu1 %v11621_v2 }
 0x6f0   :  { %9872 = vmatmul.mubr.f32.vlgmr.msra.gmra.mrb[6].mxu1 %v2351_v49 }
 0x6f1   :  { %9875 = vmatpush3.msra.mxu1 %v11686_v4  ;;  %9876 = vmatprep.mubr.msk.f32.mxu1 %vm11622_vm1, %v11621_v2 }
 0x6f2   :  { %9879 = vmatprep.subr.mxu1 %v11621_v2 }
 0x6f8   :  { %9877 = vmatmul.mubr.f32.vlgmr.msra.gmra.mrb[6].mxu1 %v2352_v24 }
 0x6f9   :  { %9880 = vmatpush3.msra.mxu1 %v11677_v3  ;;  %9881 = vmatprep.mubr.msk.f32.mxu1 %vm11622_vm1, %v11621_v2 }
 0x6fa   :  { %9884 = vmatprep.subr.mxu1 %v11621_v2 }
 0x700   :  { %9882 = vmatmul.mubr.f32.vlgmr.msra.gmra.mrb[6].mxu1 %v2353_v28 }
 0x701   :  { %9885 = vmatpush3.msra.mxu1 %v11697_v7  ;;  %9886 = vmatprep.mubr.msk.f32.mxu1 %vm11622_vm1, %v11621_v2 }
 0x702   :  { %9889 = vmatprep.subr.mxu1 %v11621_v2 }
 0x708   :  { %9887 = vmatmul.mubr.f32.vlgmr.msra.gmra.mrb[6].mxu1 %v2351_v49 }
 0x709   :  { %9890 = vmatpush3.msra.mxu1 %v11677_v3  ;;  %9891 = vmatprep.mubr.msk.f32.mxu1 %vm11622_vm1, %v11621_v2 }
 0x70a   :  { %10872 = vmatprep.subr.bf16.mxu1 %v11623_v18 }
 0x710   :  { %9892 = vmatmul.mubr.f32.vlgmr.msra.gmra.mrb[6].mxu1 %v2351_v49 }
 0x711   :  { %10874 = vmatpush3.bf16.msra.mxu1 %v11743_v26  ;;  %9910 = vmatprep.mubr.msk.f32.mxu1 %vm11622_vm1, %v11621_v2 }
 0x712   :  { %10875 = vmatprep.subr.bf16.mxu1 %v11623_v18 }
 0x715   :  { %10877 = vmatpush3.bf16.msra.mxu1 %v11746_v27 }
 0x716   :  { %10878 = vmatprep.subr.bf16.mxu1 %v11623_v18 }
 0x719   :  { %10880 = vmatpush3.bf16.msra.mxu1 %v11756_v32 }
 0x71a   :  { %10881 = vmatprep.subr.bf16.mxu1 %v11623_v18 }
 0x71d   :  { %10883 = vmatpush3.bf16.msra.mxu1 %v11760_v37 }
 0x71e   :  { %10884 = vmatprep.subr.bf16.mxu1 %v11623_v18 }
 0x7e3   :  { %v2727_v8 = vpop.f32.mrb[6].mxu1 }
 0x7e4   :  { %v11310_v31 = vadd.f32 %v11792_v25, %v2727_v8  ;;  %v9893_v34 = vpop.f32.mrb[7].mxu1 }
 0x7e6   :  { %11545 = vtanh.f32 %v11310_v31  ;;  %3382 = vrot.lane.b32.xlu0 %v11310_v31, %s11624_s12 }
 0x7f0   :  { %v11546_v36 = vpop.eup %11545 }
 0x7f1   :  { %v2733_v41 = vsel %vm503_vm2, %v11546_v36, 0 }
 0x7f2   :  { %v2808_v39 = vand.u32 4294901760, %v2733_v41 }
 0x7f4   :  { %v2809_v40 = vsub.f32 %v2733_v41, %v2808_v39 }
 0x7f6   :  { %v2810_v43 = vand.u32 4294901760, %v2809_v40 }
 0x7f8   :  { %v2811_v33 = vsub.f32 %v2809_v40, %v2810_v43 }
 0x7fa   :  { %v2812_v44 = vand.u32 4294901760, %v2811_v33 }
 0x7fc   :  { %9911 = vmatmul.mubr.f32.vlgmr.msra.gmra.mrb[8].mxu1 %v2812_v44 }
 0x7fd   :  { %10886 = vmatpush3.bf16.msra.mxu1 %v11765_v48  ;;  %9929 = vmatprep.mubr.msk.f32.mxu1 %vm11622_vm1, %v11621_v2 }
 0x7fe   :  { %10887 = vmatprep.subr.bf16.mxu1 %v11623_v18 }
 0x801   :  { %10889 = vmatpush3.bf16.msra.mxu1 %v11767_v57 }
 0x802   :  { %10890 = vmatprep.subr.bf16.mxu1 %v11623_v18 }
 0x805   :  { %10892 = vmatpush3.bf16.msra.mxu1 %v11769_v6 }
 0x806   :  { %10893 = vmatprep.subr.bf16.mxu1 %v11623_v18 }
 0x809   :  { %10895 = vmatpush3.bf16.msra.mxu1 %v11771_v12 }
 0x80a   :  { %10896 = vmatprep.subr.bf16.mxu1 %v11623_v18 }
 0x80c   :  { %9930 = vmatmul.mubr.f32.vlgmr.msra.gmra.mrb[8].mxu1 %v2808_v39 }
 0x80d   :  { %10898 = vmatpush3.bf16.msra.mxu1 %v11773_v14  ;;  %9948 = vmatprep.mubr.msk.f32.mxu1 %vm11622_vm1, %v11621_v2 }
 0x80e   :  { %10899 = vmatprep.subr.bf16.mxu1 %v11623_v18 }
 0x811   :  { %10901 = vmatpush3.bf16.msra.mxu1 %v11775_v15 }
 0x812   :  { %10902 = vmatprep.subr.bf16.mxu1 %v11623_v18 }
 0x815   :  { %10904 = vmatpush3.bf16.msra.mxu1 %v11777_v16 }
 0x816   :  { %10905 = vmatprep.subr.bf16.mxu1 %v11623_v18 }
 0x819   :  { %10907 = vmatpush3.bf16.msra.mxu1 %v11779_v17 }
 0x81a   :  { %10908 = vmatprep.subr.bf16.mxu1 %v11623_v18 }
 0x81c   :  { %9949 = vmatmul.mubr.f32.vlgmr.msra.gmra.mrb[8].mxu1 %v2809_v40 }
 0x81d   :  { %10910 = vmatpush3.bf16.msra.mxu1 %v11743_v26  ;;  %9967 = vmatprep.mubr.msk.f32.mxu1 %vm11622_vm1, %v11621_v2 }
 0x81e   :  { %10911 = vmatprep.subr.bf16.mxu1 %v11623_v18 }
 0x821   :  { %10913 = vmatpush3.bf16.msra.mxu1 %v11746_v27 }
 0x822   :  { %10914 = vmatprep.subr.bf16.mxu1 %v11623_v18 }
 0x825   :  { %10916 = vmatpush3.bf16.msra.mxu1 %v11756_v32 }
 0x826   :  { %10917 = vmatprep.subr.bf16.mxu1 %v11623_v18 }
 0x829   :  { %10919 = vmatpush3.bf16.msra.mxu1 %v11760_v37 }
 0x82a   :  { %10920 = vmatprep.subr.bf16.mxu1 %v11623_v18 }
 0x82c   :  { %9968 = vmatmul.mubr.f32.vlgmr.msra.gmra.mrb[8].mxu1 %v2810_v43 }
 0x82d   :  { %10922 = vmatpush3.bf16.msra.mxu1 %v11781_v19  ;;  %9986 = vmatprep.mubr.msk.f32.mxu1 %vm11622_vm1, %v11621_v2 }
 0x82e   :  { %10923 = vmatprep.subr.bf16.mxu1 %v11623_v18 }
 0x831   :  { %10925 = vmatpush3.bf16.msra.mxu1 %v11783_v20 }
 0x832   :  { %10926 = vmatprep.subr.bf16.mxu1 %v11623_v18 }
 0x835   :  { %10928 = vmatpush3.bf16.msra.mxu1 %v11785_v21 }
 0x836   :  { %10929 = vmatprep.subr.bf16.mxu1 %v11623_v18 }
 0x839   :  { %10931 = vmatpush3.bf16.msra.mxu1 %v11787_v22 }
 0x83a   :  { %10932 = vmatprep.subr.bf16.mxu1 %v11623_v18 }
 0x83c   :  { %9987 = vmatmul.mubr.f32.vlgmr.msra.gmra.mrb[8].mxu1 %v2808_v39 }
 0x83d   :  { %10934 = vmatpush3.bf16.msra.mxu1 %v11743_v26  ;;  %10005 = vmatprep.mubr.msk.f32.mxu1 %vm11622_vm1, %v11621_v2 }
 0x83e   :  { %10935 = vmatprep.subr.bf16.mxu1 %v11623_v18 }
 0x841   :  { %10937 = vmatpush3.bf16.msra.mxu1 %v11746_v27 }
 0x842   :  { %10938 = vmatprep.subr.bf16.mxu1 %v11623_v18 }
 0x845   :  { %10940 = vmatpush3.bf16.msra.mxu1 %v11756_v32 }
 0x846   :  { %10941 = vmatprep.subr.bf16.mxu1 %v11623_v18 }
 0x849   :  { %10943 = vmatpush3.bf16.msra.mxu1 %v11760_v37 }
 0x84a   :  { %10152 = vmatprep.subr.mxu1 %v11621_v2 }
 0x84c   :  { %10006 = vmatmul.mubr.f32.vlgmr.msra.gmra.mrb[8].mxu1 %v2808_v39 }
 0x84d   :  { %10153 = vmatpush3.msra.mxu1 %v11677_v3  ;;  %10154 = vmatprep.mubr.msk.f32.mxu1 %vm11622_vm1, %v11621_v2 }
 0x84e   :  { %10157 = vmatprep.subr.mxu1 %v11621_v2 }
 0x91f   :  { %v3268_v25 = vpop.f32.mrb[8].mxu1 }
 0x920   :  { %v12113_v35 = vadd.f32 %v11862_v5, %v3268_v25  ;;  %v10007_v45 = vpop.f32.mrb[9].mxu1 }
 0x922   :  { %v3277_v42 = vand.u32 2139095040, %v12113_v35  ;;  %v3274_v51 = vand.u32 2147483647, %v12113_v35  ;;  %vm3276_vm10 = vcmp.lt.s32.totalorder %v12113_v35, 0  ;;  %vm3366_vm15 = vweird.f32 %v12113_v35 }
 0x924   :  { %v3278_v47 = vshrl.u32 %v3277_v42, 23  ;;  %v3281_v59 = vand.u32 8388607, %v3274_v51  ;;  %vm3275_vm11 = vcmp.le.f32.partialorder %v3274_v51, 0.7853982 }
 0x926   :  { %v9024_v50 = vadd.s32 4294967169, %v3278_v47  ;;  %v3282_v29 = vor.u32 8388608, %v3281_v59 }
 0x928   :  { %v3284_v10 = vadd.s32 1, %v9024_v50  ;;  %v3322_v42 = vshll.u32 %v3282_v29, 8 }
 0x92a   :  { %vm3285_vm3 = vcmp.gt.s32.totalorder %v3284_v10, 0 }
 0x92b   :  { %v3286_v53 = vsel %vm3285_vm3, %v3284_v10, 0 }
 0x92c   :  { %v3288_v56 = vand.u32 31, %v3286_v53  ;;  %v3287_v60 = vshrl.u32 %v3286_v53, 5 }
 0x92e   :  { %v3289_v46 = vsub.s32 32, %v3288_v56  ;;  %v3291_v62 = vshll.u32 %v11626_v55, %v3288_v56  ;;  %v3294_v5 = vshll.u32 %v11627_v58, %v3288_v56  ;;  %v3297_v54 = vshll.u32 %v11628_v61, %v3288_v56 }
 0x92f   :  { %v3300_v11 = vshll.u32 %v11629_v0, %v3288_v56  ;;  %v3303_v24 = vshll.u32 %v12834_v9, %v3288_v56  ;;  %vm3306_vm4 = vcmp.lt.s32.totalorder %v3287_v60, 1  ;;  %vm3309_vm5 = vcmp.lt.s32.totalorder %v3287_v60, 4 }
 0x930   :  { %v3292_v52 = vshrl.u32 %v11627_v58, %v3289_v46  ;;  %v3295_v63 = vshrl.u32 %v11628_v61, %v3289_v46  ;;  %v3298_v1 = vshrl.u32 %v11629_v0, %v3289_v46  ;;  %v3301_v49 = vshrl.u32 %v12834_v9, %v3289_v46 }
 0x931   :  { %v3304_v28 = vshrl.u32 %v12836_v23, %v3289_v46  ;;  %v3290_v43 = vshrl.u32 %v11626_v55, %v3289_v46  ;;  %vm3308_vm6 = vcmp.lt.s32.totalorder %v3287_v60, 3  ;;  %vm3307_vm7 = vcmp.lt.s32.totalorder %v3287_v60, 2 }
 0x932   :  { %v3293_v30 = vor.u32 %v3292_v52, %v3291_v62  ;;  %v3296_v8 = vor.u32 %v3295_v63, %v3294_v5  ;;  %v3299_v31 = vor.u32 %v3298_v1, %v3297_v54  ;;  %v3302_v34 = vor.u32 %v3301_v49, %v3300_v11 }
 0x933   :  { %v3305_v36 = vor.u32 %v3304_v28, %v3303_v24 }
 0x934   :  { %v3311_v41 = vsel %vm3309_vm5, %v3299_v31, 2102212464  ;;  %v3314_v39 = vsel %vm3306_vm4, %v3293_v30, %v3296_v8  ;;  %v3318_v40 = vsel %vm3306_vm4, %v3296_v8, %v3299_v31  ;;  %v3315_v33 = vsel %vm3309_vm5, %v3302_v34, 920167782 }
 0x935   :  { %v3319_v44 = vsel %vm3309_vm5, %v3305_v36, 1326507024  ;;  %v3316_v25 = vsel %vm3308_vm6, %v3299_v31, %v3315_v33  ;;  %v3310_v47 = vsel %vm3306_vm4, %v3290_v43, %v3293_v30  ;;  %v3312_v50 = vsel %vm3308_vm6, %v3296_v8, %v3311_v41 }
 0x936   :  { %v3320_v45 = vsel %vm3308_vm6, %v3302_v34, %v3319_v44  ;;  %v3317_v10 = vsel %vm3307_vm7, %v3314_v39, %v3316_v25  ;;  %v3313_v52 = vsel %vm3307_vm7, %v3310_v47, %v3312_v50 }
 0x937   :  { %v3321_v53 = vsel %vm3307_vm7, %v3318_v40, %v3320_v45  ;;  %v12133_v62 = vmul.u32.u64.low %v3322_v42, %v3317_v10  ;;  %v12134_v5 = vmul.u32.u64.high %v3322_v42, %v3317_v10, %v12133_v62  ;;  %v3329_v63 = vmul.u32 %v3322_v42, %v3313_v52 }
 0x938   :  { %v12130_v56 = vmul.u32.u64.low %v3322_v42, %v3321_v53  ;;  %v12131_v59 = vmul.u32.u64.high %v3322_v42, %v3321_v53, %v12130_v56 }
 0x939   :  { %v3332_v46 = vadd.s32 1, %v12134_v5 }
 0x93a   :  { %vm3331_vm8 = vc.u32 %v12131_v59, %v12133_v62  ;;  %v3330_v34 = vadd.s32 %v12133_v62, %v12131_v59 }
 0x93b   :  { %v3333_v60 = vsel %vm3331_vm8, %v3332_v46, %v12134_v5 }
 0x93c   :  { %v3334_v54 = vadd.s32 %v3333_v60, %v3329_v63 }
 0x93e   :  { %v3335_v1 = vadd.s32 536870912, %v3334_v54 }
 0x940   :  { %v3336_v11 = vshrl.u32 %v3335_v1, 30 }
 0x942   :  { %v3337_v49 = vshll.u32 %v3336_v11, 30  ;;  %v3360_v53 = vsub.s32 4, %v3336_v11 }
 0x944   :  { %v3338_v24 = vsub.s32 %v3334_v54, %v3337_v49  ;;  %v3361_v59 = vsel %vm3276_vm10, %v3360_v53, %v3336_v11  ;;  %v3383_v49 = vpop.permute.xlu0 %3382  ;;  %v12146_v11 = vpop.permute.xlu1 %3377 }
 0x945   :  { %v3363_v62 = vsel %vm3275_vm11, 0, %v3361_v59 }
 0x946   :  { %v3340_v28 = vsub.s32 0, %v3338_v24  ;;  %v3367_v5 = vand.u32 3, %v3363_v62 }
 0x948   :  { %v9025_v29 = vmin.u32 %v3340_v28, %v3338_v24  ;;  %vm3372_vm12 = vcmp.eq.s32.totalorder %v3367_v5, 2  ;;  %vm3369_vm13 = vcmp.eq.s32.totalorder %v3367_v5, 0  ;;  %vm3368_vm14 = vcmp.lt.s32.totalorder %v3367_v5, 2 }
 0x94a   :  { %v3342_v30 = vclz %v9025_v29 }
 0x94c   :  { %v9026_v8 = vadd.s32 4294967294, %v3342_v30 }
 0x94e   :  { %vm9027_vm9 = vcmp.lt.s32.totalorder %v9026_v8, 0 }
 0x94f   :  { %v3345_v31 = vsel %vm9027_vm9, 0, %v9026_v8 }
 0x950   :  { %v3346_v36 = vsub.s32 32, %v3345_v31  ;;  %v3350_v41 = vsub.s32 4294967266, %v3345_v31  ;;  %v3347_v39 = vshll.u32 %v3338_v24, %v3345_v31  ;;  %v3272_v31 = vmul.f32 1.442695, %v12113_v35 }
 0x952   :  { %v3348_v40 = vshrl.u32 %v3330_v34, %v3346_v36  ;;  %v3351_v43 = vadd.s32 127, %v3350_v41 }
 0x954   :  { %v3349_v33 = vor.u32 %v3348_v40, %v3347_v39  ;;  %v3352_v44 = vshll.u32 %v3351_v43, 23 }
 0x956   :  { %v3353_v25 = vor.u32 4788187, %v3352_v44  ;;  %v3356_v42 = vcvt.s32.f32 %v3349_v33 }
 0x958   :  { %v3354_v45 = vand.u32 2147483647, %v3353_v25 }
 0x95a   :  { %v3357_v47 = vmul.f32 %v3356_v42, %v3354_v45  ;;  %v12190_v45 = vld [vmem:[%s12830_s2] ss:$0 sm:$0xff] }
 0x95c   :  { %v3358_v50 = vxor.u32 2147483648, %v3357_v47 }
 0x95e   :  { %v3359_v10 = vsel %vm3276_vm10, %v3358_v50, %v3357_v47 }
 0x95f   :  { %v3362_v56 = vsel %vm3275_vm11, %v12113_v35, %v3359_v10 }
 0x960   :  { %11547 = vcosq.f32 %v3362_v56 }
 0x961   :  { %11549 = vsinq.f32 %v3362_v56 }
 0x962   :  { %11551 = vpow2.f32 %v3272_v31 }
 0x96a   :  { %v11548_v52 = vpop.eup %11547 }
 0x96b   :  { %v11550_v46 = vpop.eup %11549  ;;  %v3373_v63 = vxor.u32 2147483648, %v11548_v52 }
 0x96c   :  { %v3370_v60 = vxor.u32 2147483648, %v11550_v46  ;;  %v11552_v34 = vpop.eup %11551 }
 0x96d   :  { %v3374_v54 = vsel %vm3372_vm12, %v3373_v63, %v11550_v46  ;;  %v12252_v46 = vld [vmem:[%s12832_s4] ss:$0 sm:$0xff] }
 0x96e   :  { %v3371_v1 = vsel %vm3369_vm13, %v11548_v52, %v3370_v60 }
 0x96f   :  { %v3375_v51 = vsel %vm3368_vm14, %v3371_v1, %v3374_v54 }
 0x970   :  { %v3376_v24 = vsel %vm3366_vm15, nan, %v3375_v51 }
 0x971   :  { %v3385_v28 = vmul.f32 %v3383_v49, %v3376_v24  ;;  %v3380_v29 = vmul.f32 %v12146_v11, %v3376_v24 }
 0x973   :  { %3387 = vrot.lane.b32.xlu0 %v3385_v28, %s11632_s16 }
 0x9e5   :  { %v3388_v30 = vpop.permute.xlu0 %3387 }
 0x9e6   :  { %v3390_v8 = vadd.f32 %v3388_v30, %v3380_v29 }
 0x9e8   :  { %3392 = vrot.lane.b32.xlu1 %v3390_v8, %s11632_s16 }
 0xa5a   :  { %v3393_v36 = vpop.permute.xlu1 %3392 }
 0xa5b   :  { %v12151_v41 = vmul.f32 %v11552_v34, %v3393_v36 }
 0xa5d   :  { %v3397_v39 = vsel %vm26_vm0, %v12151_v41, 0  ;;  %4491 = vrot.lane.b32.xlu1 %v12151_v41, %s11625_s13 }
 0xa5e   :  { %v3465_v40 = vand.u32 4294901760, %v3397_v39 }
 0xa60   :  { %v3466_v43 = vsub.f32 %v3397_v39, %v3465_v40 }
 0xa62   :  { %v3467_v33 = vand.u32 4294901760, %v3466_v43 }
 0xa64   :  { %v3468_v44 = vsub.f32 %v3466_v43, %v3467_v33 }
 0xa66   :  { %v3469_v25 = vand.u32 4294901760, %v3468_v44 }
 0xa68   :  { %10011 = vmatmul.mubr.f32.vlgmr.msra.gmra.mrb[6].mxu0 %v3469_v25 }
 0xa69   :  { %10014 = vmatpush3.msra.mxu0 %v11705_v13  ;;  %10015 = vmatprep.mubr.msk.f32.mxu0 %vm11622_vm1, %v11621_v2 }
 0xa6a   :  { %10018 = vmatprep.subr.mxu0 %v11621_v2 }
 0xa70   :  { %10016 = vmatmul.mubr.f32.vlgmr.msra.gmra.mrb[6].mxu0 %v3465_v40 }
 0xa71   :  { %10019 = vmatpush3.msra.mxu0 %v11686_v4  ;;  %10020 = vmatprep.mubr.msk.f32.mxu0 %vm11622_vm1, %v11621_v2 }
 0xa72   :  { %10023 = vmatprep.subr.mxu0 %v11621_v2 }
 0xa78   :  { %10021 = vmatmul.mubr.f32.vlgmr.msra.gmra.mrb[6].mxu0 %v3466_v43 }
 0xa79   :  { %10024 = vmatpush3.msra.mxu0 %v11677_v3  ;;  %10025 = vmatprep.mubr.msk.f32.mxu0 %vm11622_vm1, %v11621_v2 }
 0xa7a   :  { %10028 = vmatprep.subr.mxu0 %v11621_v2 }
 0xa80   :  { %10026 = vmatmul.mubr.f32.vlgmr.msra.gmra.mrb[6].mxu0 %v3467_v33 }
 0xa81   :  { %10029 = vmatpush3.msra.mxu0 %v11697_v7  ;;  %10030 = vmatprep.mubr.msk.f32.mxu0 %vm11622_vm1, %v11621_v2 }
 0xa82   :  { %10033 = vmatprep.subr.mxu0 %v11621_v2 }
 0xa88   :  { %10031 = vmatmul.mubr.f32.vlgmr.msra.gmra.mrb[6].mxu0 %v3465_v40 }
 0xa89   :  { %10034 = vmatpush3.msra.mxu0 %v11677_v3  ;;  %10035 = vmatprep.mubr.msk.f32.mxu0 %vm11622_vm1, %v11621_v2 }
 0xa8a   :  { %10944 = vmatprep.subr.bf16.mxu0 %v11623_v18 }
 0xa90   :  { %10036 = vmatmul.mubr.f32.vlgmr.msra.gmra.mrb[6].mxu0 %v3465_v40 }
 0xa91   :  { %10946 = vmatpush3.bf16.msra.mxu0 %v11743_v26  ;;  %10054 = vmatprep.mubr.msk.f32.mxu0 %vm11622_vm1, %v11621_v2 }
 0xa92   :  { %10947 = vmatprep.subr.bf16.mxu0 %v11623_v18 }
 0xa95   :  { %10949 = vmatpush3.bf16.msra.mxu0 %v11746_v27 }
 0xa96   :  { %10950 = vmatprep.subr.bf16.mxu0 %v11623_v18 }
 0xa99   :  { %10952 = vmatpush3.bf16.msra.mxu0 %v11756_v32 }
 0xa9a   :  { %10953 = vmatprep.subr.bf16.mxu0 %v11623_v18 }
 0xa9d   :  { %10955 = vmatpush3.bf16.msra.mxu0 %v11760_v37 }
 0xa9e   :  { %10956 = vmatprep.subr.bf16.mxu0 %v11623_v18 }
 0xb63   :  { %v3841_v35 = vpop.f32.mrb[6].mxu0 }
 0xb64   :  { %v11312_v42 = vadd.f32 %v12190_v45, %v3841_v35  ;;  %v10037_v47 = vpop.f32.mrb[7].mxu0 }
 0xb66   :  { %11553 = vtanh.f32 %v11312_v42  ;;  %4496 = vrot.lane.b32.xlu0 %v11312_v42, %s11624_s12 }
 0xb70   :  { %v11554_v50 = vpop.eup %11553 }
 0xb71   :  { %v3847_v10 = vsel %vm503_vm2, %v11554_v50, 0 }
 0xb72   :  { %v3922_v53 = vand.u32 4294901760, %v3847_v10 }
 0xb74   :  { %v3923_v56 = vsub.f32 %v3847_v10, %v3922_v53 }
 0xb76   :  { %v3924_v59 = vand.u32 4294901760, %v3923_v56 }
 0xb78   :  { %v3925_v62 = vsub.f32 %v3923_v56, %v3924_v59 }
 0xb7a   :  { %v3926_v5 = vand.u32 4294901760, %v3925_v62 }
 0xb7c   :  { %10055 = vmatmul.mubr.f32.vlgmr.msra.gmra.mrb[8].mxu0 %v3926_v5 }
 0xb7d   :  { %10958 = vmatpush3.bf16.msra.mxu0 %v11765_v48  ;;  %10073 = vmatprep.mubr.msk.f32.mxu0 %vm11622_vm1, %v11621_v2 }
 0xb7e   :  { %10959 = vmatprep.subr.bf16.mxu0 %v11623_v18 }
 0xb81   :  { %10961 = vmatpush3.bf16.msra.mxu0 %v11767_v57 }
 0xb82   :  { %10962 = vmatprep.subr.bf16.mxu0 %v11623_v18 }
 0xb85   :  { %10964 = vmatpush3.bf16.msra.mxu0 %v11769_v6 }
 0xb86   :  { %10965 = vmatprep.subr.bf16.mxu0 %v11623_v18 }
 0xb89   :  { %10967 = vmatpush3.bf16.msra.mxu0 %v11771_v12 }
 0xb8a   :  { %10968 = vmatprep.subr.bf16.mxu0 %v11623_v18 }
 0xb8c   :  { %10074 = vmatmul.mubr.f32.vlgmr.msra.gmra.mrb[8].mxu0 %v3922_v53 }
 0xb8d   :  { %10970 = vmatpush3.bf16.msra.mxu0 %v11773_v14  ;;  %10092 = vmatprep.mubr.msk.f32.mxu0 %vm11622_vm1, %v11621_v2 }
 0xb8e   :  { %10971 = vmatprep.subr.bf16.mxu0 %v11623_v18 }
 0xb91   :  { %10973 = vmatpush3.bf16.msra.mxu0 %v11775_v15 }
 0xb92   :  { %10974 = vmatprep.subr.bf16.mxu0 %v11623_v18 }
 0xb95   :  { %10976 = vmatpush3.bf16.msra.mxu0 %v11777_v16 }
 0xb96   :  { %10977 = vmatprep.subr.bf16.mxu0 %v11623_v18 }
 0xb99   :  { %10979 = vmatpush3.bf16.msra.mxu0 %v11779_v17 }
 0xb9a   :  { %10980 = vmatprep.subr.bf16.mxu0 %v11623_v18 }
 0xb9c   :  { %10093 = vmatmul.mubr.f32.vlgmr.msra.gmra.mrb[8].mxu0 %v3923_v56 }
 0xb9d   :  { %10982 = vmatpush3.bf16.msra.mxu0 %v11743_v26  ;;  %10111 = vmatprep.mubr.msk.f32.mxu0 %vm11622_vm1, %v11621_v2 }
 0xb9e   :  { %10983 = vmatprep.subr.bf16.mxu0 %v11623_v18 }
 0xba1   :  { %10985 = vmatpush3.bf16.msra.mxu0 %v11746_v27 }
 0xba2   :  { %10986 = vmatprep.subr.bf16.mxu0 %v11623_v18 }
 0xba5   :  { %10988 = vmatpush3.bf16.msra.mxu0 %v11756_v32 }
 0xba6   :  { %10989 = vmatprep.subr.bf16.mxu0 %v11623_v18 }
 0xba9   :  { %10991 = vmatpush3.bf16.msra.mxu0 %v11760_v37 }
 0xbaa   :  { %10992 = vmatprep.subr.bf16.mxu0 %v11623_v18 }
 0xbac   :  { %10112 = vmatmul.mubr.f32.vlgmr.msra.gmra.mrb[8].mxu0 %v3924_v59 }
 0xbad   :  { %10994 = vmatpush3.bf16.msra.mxu0 %v11781_v19  ;;  %10130 = vmatprep.mubr.msk.f32.mxu0 %vm11622_vm1, %v11621_v2 }
 0xbae   :  { %10995 = vmatprep.subr.bf16.mxu0 %v11623_v18 }
 0xbb1   :  { %10997 = vmatpush3.bf16.msra.mxu0 %v11783_v20 }
 0xbb2   :  { %10998 = vmatprep.subr.bf16.mxu0 %v11623_v18 }
 0xbb5   :  { %11000 = vmatpush3.bf16.msra.mxu0 %v11785_v21 }
 0xbb6   :  { %11001 = vmatprep.subr.bf16.mxu0 %v11623_v18 }
 0xbb9   :  { %11003 = vmatpush3.bf16.msra.mxu0 %v11787_v22 }
 0xbba   :  { %11004 = vmatprep.subr.bf16.mxu0 %v11623_v18 }
 0xbbc   :  { %10131 = vmatmul.mubr.f32.vlgmr.msra.gmra.mrb[8].mxu0 %v3922_v53 }
 0xbbd   :  { %11006 = vmatpush3.bf16.msra.mxu0 %v11743_v26  ;;  %10149 = vmatprep.mubr.msk.f32.mxu0 %vm11622_vm1, %v11621_v2 }
 0xbbe   :  { %11007 = vmatprep.subr.bf16.mxu0 %v11623_v18 }
 0xbc1   :  { %11009 = vmatpush3.bf16.msra.mxu0 %v11746_v27 }
 0xbc2   :  { %11010 = vmatprep.subr.bf16.mxu0 %v11623_v18 }
 0xbc5   :  { %11012 = vmatpush3.bf16.msra.mxu0 %v11756_v32 }
 0xbc6   :  { %11013 = vmatprep.subr.bf16.mxu0 %v11623_v18 }
 0xbc9   :  { %11015 = vmatpush3.bf16.msra.mxu0 %v11760_v37 }
 0xbca   :  { %10296 = vmatprep.subr.mxu0 %v11621_v2 }
 0xbcc   :  { %10150 = vmatmul.mubr.f32.vlgmr.msra.gmra.mrb[8].mxu0 %v3922_v53 }
 0xbcd   :  { %10297 = vmatpush3.msra.mxu0 %v11677_v3  ;;  %10298 = vmatprep.mubr.msk.f32.mxu0 %vm11622_vm1, %v11621_v2 }
 0xbce   :  { %10301 = vmatprep.subr.mxu0 %v11621_v2 }
 0xc9f   :  { %v4382_v52 = vpop.f32.mrb[8].mxu0 }
 0xca0   :  { %v12255_v63 = vadd.f32 %v12252_v46, %v4382_v52  ;;  %v10151_v60 = vpop.f32.mrb[9].mxu0 }
 0xca2   :  { %v4391_v54 = vand.u32 2139095040, %v12255_v63  ;;  %v4388_v24 = vand.u32 2147483647, %v12255_v63  ;;  %vm4390_vm10 = vcmp.lt.s32.totalorder %v12255_v63, 0  ;;  %vm4480_vm15 = vweird.f32 %v12255_v63 }
 0xca4   :  { %v4392_v1 = vshrl.u32 %v4391_v54, 23  ;;  %v4395_v8 = vand.u32 8388607, %v4388_v24  ;;  %vm4389_vm11 = vcmp.le.f32.partialorder %v4388_v24, 0.7853982 }
 0xca6   :  { %v9028_v51 = vadd.s32 4294967169, %v4392_v1  ;;  %v4396_v47 = vor.u32 8388608, %v4395_v8 }
 0xca8   :  { %v4398_v49 = vadd.s32 1, %v9028_v51 }
 0xcaa   :  { %vm4399_vm3 = vcmp.gt.s32.totalorder %v4398_v49, 0 }
 0xcab   :  { %v4400_v28 = vsel %vm4399_vm3, %v4398_v49, 0 }
 0xcac   :  { %v4402_v29 = vand.u32 31, %v4400_v28  ;;  %v4401_v31 = vshrl.u32 %v4400_v28, 5  ;;  %v4436_v28 = vshll.u32 %v4396_v47, 8 }
 0xcae   :  { %v4403_v30 = vsub.s32 32, %v4402_v29  ;;  %v4405_v34 = vshll.u32 %v11626_v55, %v4402_v29  ;;  %v4408_v36 = vshll.u32 %v11627_v58, %v4402_v29  ;;  %v4411_v43 = vshll.u32 %v11628_v61, %v4402_v29 }
 0xcaf   :  { %v4414_v44 = vshll.u32 %v11629_v0, %v4402_v29  ;;  %v4417_v35 = vshll.u32 %v12834_v9, %v4402_v29  ;;  %vm4420_vm4 = vcmp.lt.s32.totalorder %v4401_v31, 1  ;;  %vm4423_vm5 = vcmp.lt.s32.totalorder %v4401_v31, 4 }
 0xcb0   :  { %v4406_v39 = vshrl.u32 %v11627_v58, %v4403_v30  ;;  %v4409_v40 = vshrl.u32 %v11628_v61, %v4403_v30  ;;  %v4412_v33 = vshrl.u32 %v11629_v0, %v4403_v30  ;;  %v4415_v25 = vshrl.u32 %v12834_v9, %v4403_v30 }
 0xcb1   :  { %v4418_v42 = vshrl.u32 %v12836_v23, %v4403_v30  ;;  %v4404_v60 = vshrl.u32 %v11626_v55, %v4403_v30  ;;  %vm4422_vm6 = vcmp.lt.s32.totalorder %v4401_v31, 3  ;;  %vm4421_vm7 = vcmp.lt.s32.totalorder %v4401_v31, 2 }
 0xcb2   :  { %v4407_v50 = vor.u32 %v4406_v39, %v4405_v34  ;;  %v4410_v10 = vor.u32 %v4409_v40, %v4408_v36  ;;  %v4413_v53 = vor.u32 %v4412_v33, %v4411_v43  ;;  %v4416_v56 = vor.u32 %v4415_v25, %v4414_v44 }
 0xcb3   :  { %v4419_v59 = vor.u32 %v4418_v42, %v4417_v35 }
 0xcb4   :  { %v4425_v62 = vsel %vm4423_vm5, %v4413_v53, 2102212464  ;;  %v4428_v5 = vsel %vm4420_vm4, %v4407_v50, %v4410_v10  ;;  %v4432_v52 = vsel %vm4420_vm4, %v4410_v10, %v4413_v53  ;;  %v4429_v54 = vsel %vm4423_vm5, %v4416_v56, 920167782 }
 0xcb5   :  { %v4433_v1 = vsel %vm4423_vm5, %v4419_v59, 1326507024  ;;  %v4430_v51 = vsel %vm4422_vm6, %v4413_v53, %v4429_v54  ;;  %v4424_v29 = vsel %vm4420_vm4, %v4404_v60, %v4407_v50  ;;  %v4426_v8 = vsel %vm4422_vm6, %v4410_v10, %v4425_v62 }
 0xcb6   :  { %v4434_v49 = vsel %vm4422_vm6, %v4416_v56, %v4433_v1  ;;  %v4431_v34 = vsel %vm4421_vm7, %v4428_v5, %v4430_v51  ;;  %v4427_v44 = vsel %vm4421_vm7, %v4424_v29, %v4426_v8 }
 0xcb7   :  { %v4435_v36 = vsel %vm4421_vm7, %v4432_v52, %v4434_v49  ;;  %v12275_v43 = vmul.u32.u64.low %v4436_v28, %v4431_v34  ;;  %v12276_v33 = vmul.u32.u64.high %v4436_v28, %v4431_v34, %v12275_v43  ;;  %v4443_v25 = vmul.u32 %v4436_v28, %v4427_v44 }
 0xcb8   :  { %v12272_v39 = vmul.u32.u64.low %v4436_v28, %v4435_v36  ;;  %v12273_v40 = vmul.u32.u64.high %v4436_v28, %v4435_v36, %v12272_v39 }
 0xcb9   :  { %v4446_v30 = vadd.s32 1, %v12276_v33 }
 0xcba   :  { %vm4445_vm8 = vc.u32 %v12273_v40, %v12275_v43  ;;  %v4444_v52 = vadd.s32 %v12275_v43, %v12273_v40 }
 0xcbb   :  { %v4447_v31 = vsel %vm4445_vm8, %v4446_v30, %v12276_v33 }
 0xcbc   :  { %v4448_v35 = vadd.s32 %v4447_v31, %v4443_v25 }
 0xcbe   :  { %v4449_v42 = vadd.s32 536870912, %v4448_v35 }
 0xcc0   :  { %v4450_v47 = vshrl.u32 %v4449_v42, 30 }
 0xcc2   :  { %v4451_v50 = vshll.u32 %v4450_v47, 30  ;;  %v4474_v30 = vsub.s32 4, %v4450_v47 }
 0xcc4   :  { %v4452_v10 = vsub.s32 %v4448_v35, %v4451_v50  ;;  %v4475_v43 = vsel %vm4390_vm10, %v4474_v30, %v4450_v47  ;;  %v4492_v47 = vpop.permute.xlu1 %4491 }
 0xcc5   :  { %v4477_v25 = vsel %vm4389_vm11, 0, %v4475_v43 }
 0xcc6   :  { %v4454_v53 = vsub.s32 0, %v4452_v10  ;;  %v4481_v31 = vand.u32 3, %v4477_v25 }
 0xcc8   :  { %v9029_v56 = vmin.u32 %v4454_v53, %v4452_v10  ;;  %vm4486_vm12 = vcmp.eq.s32.totalorder %v4481_v31, 2  ;;  %vm4483_vm13 = vcmp.eq.s32.totalorder %v4481_v31, 0  ;;  %vm4482_vm14 = vcmp.lt.s32.totalorder %v4481_v31, 2 }
 0xcca   :  { %v4456_v59 = vclz %v9029_v56 }
 0xccc   :  { %v9030_v62 = vadd.s32 4294967294, %v4456_v59  ;;  %v4497_v59 = vpop.permute.xlu0 %4496 }
 0xcce   :  { %vm9031_vm9 = vcmp.lt.s32.totalorder %v9030_v62, 0 }
 0xccf   :  { %v4459_v5 = vsel %vm9031_vm9, 0, %v9030_v62 }
 0xcd0   :  { %v4460_v60 = vsub.s32 32, %v4459_v5  ;;  %v4464_v54 = vsub.s32 4294967266, %v4459_v5  ;;  %v4461_v1 = vshll.u32 %v4452_v10, %v4459_v5 }
 0xcd2   :  { %v4462_v51 = vshrl.u32 %v4444_v52, %v4460_v60  ;;  %v4465_v49 = vadd.s32 127, %v4464_v54 }
 0xcd4   :  { %v4463_v28 = vor.u32 %v4462_v51, %v4461_v1  ;;  %v4466_v29 = vshll.u32 %v4465_v49, 23  ;;  %v4386_v1 = vmul.f32 1.442695, %v12255_v63 }
 0xcd6   :  { %v4467_v8 = vor.u32 4788187, %v4466_v29  ;;  %v4470_v36 = vcvt.s32.f32 %v4463_v28 }
 0xcd8   :  { %v4468_v34 = vand.u32 2147483647, %v4467_v8 }
 0xcda   :  { %v4471_v39 = vmul.f32 %v4470_v36, %v4468_v34 }
 0xcdc   :  { %v4472_v33 = vxor.u32 2147483648, %v4471_v39 }
 0xcde   :  { %v4473_v44 = vsel %vm4390_vm10, %v4472_v33, %v4471_v39 }
 0xcdf   :  { %v4476_v40 = vsel %vm4389_vm11, %v12255_v63, %v4473_v44 }
 0xce0   :  { %11555 = vcosq.f32 %v4476_v40 }
 0xce1   :  { %11557 = vsinq.f32 %v4476_v40 }
 0xce2   :  { %11559 = vpow2.f32 %v4386_v1 }
 0xcea   :  { %v11556_v35 = vpop.eup %11555 }
 0xceb   :  { %v11558_v42 = vpop.eup %11557  ;;  %v4487_v50 = vxor.u32 2147483648, %v11556_v35 }
 0xcec   :  { %v4484_v10 = vxor.u32 2147483648, %v11558_v42  ;;  %v11560_v51 = vpop.eup %11559 }
 0xced   :  { %v4488_v53 = vsel %vm4486_vm12, %v4487_v50, %v11558_v42 }
 0xcee   :  { %v4485_v56 = vsel %vm4483_vm13, %v11556_v35, %v4484_v10 }
 0xcef   :  { %v4489_v24 = vsel %vm4482_vm14, %v4485_v56, %v4488_v53 }
 0xcf0   :  { %v4490_v62 = vsel %vm4480_vm15, nan, %v4489_v24 }
 0xcf1   :  { %v4499_v5 = vmul.f32 %v4497_v59, %v4490_v62  ;;  %v4494_v52 = vmul.f32 %v4492_v47, %v4490_v62 }
 0xcf3   :  { %4501 = vrot.lane.b32.xlu0 %v4499_v5, %s11632_s16 }
 0xd65   :  { %v4502_v60 = vpop.permute.xlu0 %4501 }
 0xd66   :  { %v4504_v54 = vadd.f32 %v4502_v60, %v4494_v52 }
 0xd68   :  { %4506 = vrot.lane.b32.xlu1 %v4504_v54, %s11632_s16 }
 0xdda   :  { %v4507_v49 = vpop.permute.xlu1 %4506 }
 0xddb   :  { %v12290_v28 = vmul.f32 %v11560_v51, %v4507_v49 }
 0xddd   :  { %v4511_v29 = vsel %vm26_vm0, %v12290_v28, 0  ;;  %5605 = vrot.lane.b32.xlu1 %v12290_v28, %s11625_s13 }
 0xdde   :  { %v4579_v8 = vand.u32 4294901760, %v4511_v29 }
 0xde0   :  { %v4580_v34 = vsub.f32 %v4511_v29, %v4579_v8 }
 0xde2   :  { %v4581_v36 = vand.u32 4294901760, %v4580_v34 }
 0xde4   :  { %v4582_v39 = vsub.f32 %v4580_v34, %v4581_v36 }
 0xde6   :  { %v4583_v33 = vand.u32 4294901760, %v4582_v39 }
 0xde8   :  { %10155 = vmatmul.mubr.f32.vlgmr.msra.gmra.mrb[10].mxu1 %v4583_v33 }
 0xde9   :  { %10158 = vmatpush3.msra.mxu1 %v11705_v13  ;;  %10159 = vmatprep.mubr.msk.f32.mxu1 %vm11622_vm1, %v11621_v2 }
 0xdea   :  { %10162 = vmatprep.subr.mxu1 %v11621_v2 }
 0xdf0   :  { %10160 = vmatmul.mubr.f32.vlgmr.msra.gmra.mrb[10].mxu1 %v4579_v8 }
 0xdf1   :  { %10163 = vmatpush3.msra.mxu1 %v11686_v4  ;;  %10164 = vmatprep.mubr.msk.f32.mxu1 %vm11622_vm1, %v11621_v2 }
 0xdf2   :  { %10167 = vmatprep.subr.mxu1 %v11621_v2 }
 0xdf8   :  { %10165 = vmatmul.mubr.f32.vlgmr.msra.gmra.mrb[10].mxu1 %v4580_v34 }
 0xdf9   :  { %10168 = vmatpush3.msra.mxu1 %v11677_v3  ;;  %10169 = vmatprep.mubr.msk.f32.mxu1 %vm11622_vm1, %v11621_v2 }
 0xdfa   :  { %10172 = vmatprep.subr.mxu1 %v11621_v2 }
 0xe00   :  { %10170 = vmatmul.mubr.f32.vlgmr.msra.gmra.mrb[10].mxu1 %v4581_v36 }
 0xe01   :  { %10173 = vmatpush3.msra.mxu1 %v11697_v7  ;;  %10174 = vmatprep.mubr.msk.f32.mxu1 %vm11622_vm1, %v11621_v2 }
 0xe02   :  { %10177 = vmatprep.subr.mxu1 %v11621_v2 }
 0xe08   :  { %10175 = vmatmul.mubr.f32.vlgmr.msra.gmra.mrb[10].mxu1 %v4579_v8 }
 0xe09   :  { %10178 = vmatpush3.msra.mxu1 %v11677_v3  ;;  %10179 = vmatprep.mubr.msk.f32.mxu1 %vm11622_vm1, %v11621_v2 }
 0xe0a   :  { %11016 = vmatprep.subr.bf16.mxu1 %v11623_v18 }
 0xe10   :  { %10180 = vmatmul.mubr.f32.vlgmr.msra.gmra.mrb[10].mxu1 %v4579_v8 }
 0xe11   :  { %11018 = vmatpush3.bf16.msra.mxu1 %v11743_v26  ;;  %10198 = vmatprep.mubr.msk.f32.mxu1 %vm11622_vm1, %v11621_v2 }
 0xe12   :  { %11019 = vmatprep.subr.bf16.mxu1 %v11623_v18 }
 0xe15   :  { %11021 = vmatpush3.bf16.msra.mxu1 %v11746_v27 }
 0xe16   :  { %11022 = vmatprep.subr.bf16.mxu1 %v11623_v18 }
 0xe19   :  { %11024 = vmatpush3.bf16.msra.mxu1 %v11756_v32 }
 0xe1a   :  { %11025 = vmatprep.subr.bf16.mxu1 %v11623_v18 }
 0xe1d   :  { %11027 = vmatpush3.bf16.msra.mxu1 %v11760_v37 }
 0xe1e   :  { %11028 = vmatprep.subr.bf16.mxu1 %v11623_v18 }
 0xee3   :  { %v4955_v63 = vpop.f32.mrb[10].mxu1 }
 0xee4   :  { %v11314_v44 = vadd.f32 %v12190_v45, %v4955_v63  ;;  %v10181_v30 = vpop.f32.mrb[11].mxu1 }
 0xee6   :  { %11561 = vtanh.f32 %v11314_v44  ;;  %5610 = vrot.lane.b32.xlu0 %v11314_v44, %s11624_s12 }
 0xef0   :  { %v11562_v40 = vpop.eup %11561 }
 0xef1   :  { %v4961_v43 = vsel %vm503_vm2, %v11562_v40, 0 }
 0xef2   :  { %v5036_v25 = vand.u32 4294901760, %v4961_v43 }
 0xef4   :  { %v5037_v31 = vsub.f32 %v4961_v43, %v5036_v25 }
 0xef6   :  { %v5038_v35 = vand.u32 4294901760, %v5037_v31 }
 0xef8   :  { %v5039_v42 = vsub.f32 %v5037_v31, %v5038_v35 }
 0xefa   :  { %v5040_v50 = vand.u32 4294901760, %v5039_v42 }
 0xefc   :  { %10199 = vmatmul.mubr.f32.vlgmr.msra.gmra.mrb[12].mxu1 %v5040_v50 }
 0xefd   :  { %11030 = vmatpush3.bf16.msra.mxu1 %v11765_v48  ;;  %10217 = vmatprep.mubr.msk.f32.mxu1 %vm11622_vm1, %v11621_v2 }
 0xefe   :  { %11031 = vmatprep.subr.bf16.mxu1 %v11623_v18 }
 0xf01   :  { %11033 = vmatpush3.bf16.msra.mxu1 %v11767_v57 }
 0xf02   :  { %11034 = vmatprep.subr.bf16.mxu1 %v11623_v18 }
 0xf05   :  { %11036 = vmatpush3.bf16.msra.mxu1 %v11769_v6 }
 0xf06   :  { %11037 = vmatprep.subr.bf16.mxu1 %v11623_v18 }
 0xf09   :  { %11039 = vmatpush3.bf16.msra.mxu1 %v11771_v12 }
 0xf0a   :  { %11040 = vmatprep.subr.bf16.mxu1 %v11623_v18 }
 0xf0c   :  { %10218 = vmatmul.mubr.f32.vlgmr.msra.gmra.mrb[12].mxu1 %v5036_v25 }
 0xf0d   :  { %11042 = vmatpush3.bf16.msra.mxu1 %v11773_v14  ;;  %10236 = vmatprep.mubr.msk.f32.mxu1 %vm11622_vm1, %v11621_v2 }
 0xf0e   :  { %11043 = vmatprep.subr.bf16.mxu1 %v11623_v18 }
 0xf11   :  { %11045 = vmatpush3.bf16.msra.mxu1 %v11775_v15 }
 0xf12   :  { %11046 = vmatprep.subr.bf16.mxu1 %v11623_v18 }
 0xf15   :  { %11048 = vmatpush3.bf16.msra.mxu1 %v11777_v16 }
 0xf16   :  { %11049 = vmatprep.subr.bf16.mxu1 %v11623_v18 }
 0xf19   :  { %11051 = vmatpush3.bf16.msra.mxu1 %v11779_v17 }
 0xf1a   :  { %11052 = vmatprep.subr.bf16.mxu1 %v11623_v18 }
 0xf1c   :  { %10237 = vmatmul.mubr.f32.vlgmr.msra.gmra.mrb[12].mxu1 %v5037_v31 }
 0xf1d   :  { %11054 = vmatpush3.bf16.msra.mxu1 %v11743_v26  ;;  %10255 = vmatprep.mubr.msk.f32.mxu1 %vm11622_vm1, %v11621_v2 }
 0xf1e   :  { %11055 = vmatprep.subr.bf16.mxu1 %v11623_v18 }
 0xf21   :  { %11057 = vmatpush3.bf16.msra.mxu1 %v11746_v27 }
 0xf22   :  { %11058 = vmatprep.subr.bf16.mxu1 %v11623_v18 }
 0xf25   :  { %11060 = vmatpush3.bf16.msra.mxu1 %v11756_v32 }
 0xf26   :  { %11061 = vmatprep.subr.bf16.mxu1 %v11623_v18 }
 0xf29   :  { %11063 = vmatpush3.bf16.msra.mxu1 %v11760_v37 }
 0xf2a   :  { %11064 = vmatprep.subr.bf16.mxu1 %v11623_v18 }
 0xf2c   :  { %10256 = vmatmul.mubr.f32.vlgmr.msra.gmra.mrb[12].mxu1 %v5038_v35 }
 0xf2d   :  { %11066 = vmatpush3.bf16.msra.mxu1 %v11781_v19  ;;  %10274 = vmatprep.mubr.msk.f32.mxu1 %vm11622_vm1, %v11621_v2 }
 0xf2e   :  { %11067 = vmatprep.subr.bf16.mxu1 %v11623_v18 }
 0xf31   :  { %11069 = vmatpush3.bf16.msra.mxu1 %v11783_v20 }
 0xf32   :  { %11070 = vmatprep.subr.bf16.mxu1 %v11623_v18 }
 0xf35   :  { %11072 = vmatpush3.bf16.msra.mxu1 %v11785_v21 }
 0xf36   :  { %11073 = vmatprep.subr.bf16.mxu1 %v11623_v18 }
 0xf39   :  { %11075 = vmatpush3.bf16.msra.mxu1 %v11787_v22 }
 0xf3a   :  { %11076 = vmatprep.subr.bf16.mxu1 %v11623_v18 }
 0xf3c   :  { %10275 = vmatmul.mubr.f32.vlgmr.msra.gmra.mrb[12].mxu1 %v5036_v25 }
 0xf3d   :  { %11078 = vmatpush3.bf16.msra.mxu1 %v11743_v26  ;;  %10293 = vmatprep.mubr.msk.f32.mxu1 %vm11622_vm1, %v11621_v2 }
 0xf3e   :  { %11079 = vmatprep.subr.bf16.mxu1 %v11623_v18 }
 0xf41   :  { %11081 = vmatpush3.bf16.msra.mxu1 %v11746_v27 }
 0xf42   :  { %11082 = vmatprep.subr.bf16.mxu1 %v11623_v18 }
 0xf45   :  { %11084 = vmatpush3.bf16.msra.mxu1 %v11756_v32 }
 0xf46   :  { %11085 = vmatprep.subr.bf16.mxu1 %v11623_v18 }
 0xf49   :  { %11087 = vmatpush3.bf16.msra.mxu1 %v11760_v37 }
 0xf4a   :  { %10440 = vmatprep.subr.mxu1 %v11621_v2 }
 0xf4c   :  { %10294 = vmatmul.mubr.f32.vlgmr.msra.gmra.mrb[12].mxu1 %v5036_v25 }
 0xf4d   :  { %10441 = vmatpush3.msra.mxu1 %v11677_v3  ;;  %10442 = vmatprep.mubr.msk.f32.mxu1 %vm11622_vm1, %v11621_v2 }
 0xf4e   :  { %10445 = vmatprep.subr.mxu1 %v11621_v2 }
0x101f   :  { %v5496_v10 = vpop.f32.mrb[12].mxu1 }
0x1020   :  { %v12384_v53 = vadd.f32 %v12252_v46, %v5496_v10  ;;  %v10295_v56 = vpop.f32.mrb[13].mxu1 }
0x1022   :  { %v5505_v24 = vand.u32 2139095040, %v12384_v53  ;;  %v5502_v47 = vand.u32 2147483647, %v12384_v53  ;;  %vm5504_vm10 = vcmp.lt.s32.totalorder %v12384_v53, 0  ;;  %vm5594_vm15 = vweird.f32 %v12384_v53 }
0x1024   :  { %v5506_v59 = vshrl.u32 %v5505_v24, 23  ;;  %v5509_v1 = vand.u32 8388607, %v5502_v47  ;;  %vm5503_vm11 = vcmp.le.f32.partialorder %v5502_v47, 0.7853982 }
0x1026   :  { %v9032_v62 = vadd.s32 4294967169, %v5506_v59  ;;  %v5510_v40 = vor.u32 8388608, %v5509_v1 }
0x1028   :  { %v5512_v5 = vadd.s32 1, %v9032_v62 }
0x102a   :  { %vm5513_vm3 = vcmp.gt.s32.totalorder %v5512_v5, 0 }
0x102b   :  { %v5514_v52 = vsel %vm5513_vm3, %v5512_v5, 0 }
0x102c   :  { %v5516_v60 = vand.u32 31, %v5514_v52  ;;  %v5515_v51 = vshrl.u32 %v5514_v52, 5 }
0x102e   :  { %v5517_v54 = vsub.s32 32, %v5516_v60  ;;  %v5519_v49 = vshll.u32 %v11626_v55, %v5516_v60  ;;  %v5522_v29 = vshll.u32 %v11627_v58, %v5516_v60  ;;  %v5525_v36 = vshll.u32 %v11628_v61, %v5516_v60 }
0x102f   :  { %v5528_v33 = vshll.u32 %v11629_v0, %v5516_v60  ;;  %v5531_v44 = vshll.u32 %v12834_v9, %v5516_v60  ;;  %vm5534_vm4 = vcmp.lt.s32.totalorder %v5515_v51, 1  ;;  %vm5537_vm5 = vcmp.lt.s32.totalorder %v5515_v51, 4 }
0x1030   :  { %v5520_v8 = vshrl.u32 %v11627_v58, %v5517_v54  ;;  %v5523_v34 = vshrl.u32 %v11628_v61, %v5517_v54  ;;  %v5526_v39 = vshrl.u32 %v11629_v0, %v5517_v54  ;;  %v5529_v63 = vshrl.u32 %v12834_v9, %v5517_v54 }
0x1031   :  { %v5532_v30 = vshrl.u32 %v12836_v23, %v5517_v54  ;;  %v5518_v24 = vshrl.u32 %v11626_v55, %v5517_v54  ;;  %vm5536_vm6 = vcmp.lt.s32.totalorder %v5515_v51, 3  ;;  %vm5535_vm7 = vcmp.lt.s32.totalorder %v5515_v51, 2 }
0x1032   :  { %v5521_v43 = vor.u32 %v5520_v8, %v5519_v49  ;;  %v5524_v25 = vor.u32 %v5523_v34, %v5522_v29  ;;  %v5527_v31 = vor.u32 %v5526_v39, %v5525_v36  ;;  %v5530_v35 = vor.u32 %v5529_v63, %v5528_v33 }
0x1033   :  { %v5533_v42 = vor.u32 %v5532_v30, %v5531_v44  ;;  %v5550_v60 = vshll.u32 %v5510_v40, 8 }
0x1034   :  { %v5539_v50 = vsel %vm5537_vm5, %v5527_v31, 2102212464  ;;  %v5542_v10 = vsel %vm5534_vm4, %v5521_v43, %v5524_v25  ;;  %v5546_v56 = vsel %vm5534_vm4, %v5524_v25, %v5527_v31  ;;  %v5543_v59 = vsel %vm5537_vm5, %v5530_v35, 920167782 }
0x1035   :  { %v5547_v62 = vsel %vm5537_vm5, %v5533_v42, 1326507024  ;;  %v5544_v5 = vsel %vm5536_vm6, %v5527_v31, %v5543_v59  ;;  %v5538_v1 = vsel %vm5534_vm4, %v5518_v24, %v5521_v43  ;;  %v5540_v49 = vsel %vm5536_vm6, %v5524_v25, %v5539_v50 }
0x1036   :  { %v5548_v52 = vsel %vm5536_vm6, %v5530_v35, %v5547_v62  ;;  %v5545_v29 = vsel %vm5535_vm7, %v5542_v10, %v5544_v5  ;;  %v5541_v63 = vsel %vm5535_vm7, %v5538_v1, %v5540_v49 }
0x1037   :  { %v5549_v8 = vsel %vm5535_vm7, %v5546_v56, %v5548_v52  ;;  %v12404_v39 = vmul.u32.u64.low %v5550_v60, %v5545_v29  ;;  %v12405_v33 = vmul.u32.u64.high %v5550_v60, %v5545_v29, %v12404_v39  ;;  %v5557_v44 = vmul.u32 %v5550_v60, %v5541_v63 }
0x1038   :  { %v12401_v34 = vmul.u32.u64.low %v5550_v60, %v5549_v8  ;;  %v12402_v36 = vmul.u32.u64.high %v5550_v60, %v5549_v8, %v12401_v34 }
0x1039   :  { %v5560_v54 = vadd.s32 1, %v12405_v33 }
0x103a   :  { %vm5559_vm8 = vc.u32 %v12402_v36, %v12404_v39  ;;  %v5558_v24 = vadd.s32 %v12404_v39, %v12402_v36 }
0x103b   :  { %v5561_v51 = vsel %vm5559_vm8, %v5560_v54, %v12405_v33 }
0x103c   :  { %v5562_v30 = vadd.s32 %v5561_v51, %v5557_v44 }
0x103e   :  { %v5563_v40 = vadd.s32 536870912, %v5562_v30 }
0x1040   :  { %v5564_v43 = vshrl.u32 %v5563_v40, 30 }
0x1042   :  { %v5565_v25 = vshll.u32 %v5564_v43, 30  ;;  %v5588_v44 = vsub.s32 4, %v5564_v43 }
0x1044   :  { %v5566_v31 = vsub.s32 %v5562_v30, %v5565_v25  ;;  %v5589_v39 = vsel %vm5504_vm10, %v5588_v44, %v5564_v43  ;;  %v5606_v43 = vpop.permute.xlu1 %5605 }
0x1045   :  { %v5591_v51 = vsel %vm5503_vm11, 0, %v5589_v39 }
0x1046   :  { %v5568_v35 = vsub.s32 0, %v5566_v31  ;;  %v5595_v30 = vand.u32 3, %v5591_v51 }
0x1048   :  { %v9033_v42 = vmin.u32 %v5568_v35, %v5566_v31  ;;  %vm5600_vm12 = vcmp.eq.s32.totalorder %v5595_v30, 2  ;;  %vm5597_vm13 = vcmp.eq.s32.totalorder %v5595_v30, 0  ;;  %vm5596_vm14 = vcmp.lt.s32.totalorder %v5595_v30, 2 }
0x104a   :  { %v5570_v50 = vclz %v9033_v42 }
0x104c   :  { %v9034_v10 = vadd.s32 4294967294, %v5570_v50 }
0x104e   :  { %vm9035_vm9 = vcmp.lt.s32.totalorder %v9034_v10, 0 }
0x104f   :  { %v5573_v56 = vsel %vm9035_vm9, 0, %v9034_v10  ;;  %v5611_v10 = vpop.permute.xlu0 %5610 }
0x1050   :  { %v5574_v59 = vsub.s32 32, %v5573_v56  ;;  %v5578_v62 = vsub.s32 4294967266, %v5573_v56  ;;  %v5575_v5 = vshll.u32 %v5566_v31, %v5573_v56 }
0x1052   :  { %v5576_v52 = vshrl.u32 %v5558_v24, %v5574_v59  ;;  %v5579_v60 = vadd.s32 127, %v5578_v62 }
0x1054   :  { %v5577_v1 = vor.u32 %v5576_v52, %v5575_v5  ;;  %v5580_v49 = vshll.u32 %v5579_v60, 23  ;;  %v5500_v52 = vmul.f32 1.442695, %v12384_v53 }
0x1056   :  { %v5581_v29 = vor.u32 4788187, %v5580_v49  ;;  %v5584_v34 = vcvt.s32.f32 %v5577_v1 }
0x1058   :  { %v5582_v8 = vand.u32 2147483647, %v5581_v29 }
0x105a   :  { %v5585_v33 = vmul.f32 %v5584_v34, %v5582_v8 }
0x105c   :  { %v5586_v63 = vxor.u32 2147483648, %v5585_v33 }
0x105e   :  { %v5587_v54 = vsel %vm5504_vm10, %v5586_v63, %v5585_v33 }
0x105f   :  { %v5590_v36 = vsel %vm5503_vm11, %v12384_v53, %v5587_v54 }
0x1060   :  { %11563 = vcosq.f32 %v5590_v36 }
0x1061   :  { %11565 = vsinq.f32 %v5590_v36 }
0x1062   :  { %11567 = vpow2.f32 %v5500_v52 }
0x106a   :  { %v11564_v40 = vpop.eup %11563 }
0x106b   :  { %v11566_v25 = vpop.eup %11565  ;;  %v5601_v31 = vxor.u32 2147483648, %v11564_v40 }
0x106c   :  { %v5598_v35 = vxor.u32 2147483648, %v11566_v25  ;;  %v11568_v60 = vpop.eup %11567 }
0x106d   :  { %v5602_v42 = vsel %vm5600_vm12, %v5601_v31, %v11566_v25 }
0x106e   :  { %v5599_v50 = vsel %vm5597_vm13, %v11564_v40, %v5598_v35 }
0x106f   :  { %v5603_v47 = vsel %vm5596_vm14, %v5599_v50, %v5602_v42 }
0x1070   :  { %v5604_v56 = vsel %vm5594_vm15, nan, %v5603_v47 }
0x1071   :  { %v5613_v24 = vmul.f32 %v5611_v10, %v5604_v56  ;;  %v5608_v59 = vmul.f32 %v5606_v43, %v5604_v56 }
0x1073   :  { %5615 = vrot.lane.b32.xlu0 %v5613_v24, %s11632_s16 }
0x10e5   :  { %v5616_v62 = vpop.permute.xlu0 %5615 }
0x10e6   :  { %v5618_v5 = vadd.f32 %v5616_v62, %v5608_v59 }
0x10e8   :  { %5620 = vrot.lane.b32.xlu1 %v5618_v5, %s11632_s16 }
0x115a   :  { %v5621_v1 = vpop.permute.xlu1 %5620 }
0x115b   :  { %v12419_v49 = vmul.f32 %v11568_v60, %v5621_v1 }
0x115d   :  { %v5625_v29 = vsel %vm26_vm0, %v12419_v49, 0  ;;  %6719 = vrot.lane.b32.xlu1 %v12419_v49, %s11625_s13 }
0x115e   :  { %v5693_v8 = vand.u32 4294901760, %v5625_v29 }
0x1160   :  { %v5694_v34 = vsub.f32 %v5625_v29, %v5693_v8 }
0x1162   :  { %v5695_v33 = vand.u32 4294901760, %v5694_v34 }
0x1164   :  { %v5696_v63 = vsub.f32 %v5694_v34, %v5695_v33 }
0x1166   :  { %v5697_v54 = vand.u32 4294901760, %v5696_v63 }
0x1168   :  { %10299 = vmatmul.mubr.f32.vlgmr.msra.gmra.mrb[10].mxu0 %v5697_v54 }
0x1169   :  { %10302 = vmatpush3.msra.mxu0 %v11705_v13  ;;  %10303 = vmatprep.mubr.msk.f32.mxu0 %vm11622_vm1, %v11621_v2 }
0x116a   :  { %10306 = vmatprep.subr.mxu0 %v11621_v2 }
0x1170   :  { %10304 = vmatmul.mubr.f32.vlgmr.msra.gmra.mrb[10].mxu0 %v5693_v8 }
0x1171   :  { %10307 = vmatpush3.msra.mxu0 %v11686_v4  ;;  %10308 = vmatprep.mubr.msk.f32.mxu0 %vm11622_vm1, %v11621_v2 }
0x1172   :  { %10311 = vmatprep.subr.mxu0 %v11621_v2 }
0x1178   :  { %10309 = vmatmul.mubr.f32.vlgmr.msra.gmra.mrb[10].mxu0 %v5694_v34 }
0x1179   :  { %10312 = vmatpush3.msra.mxu0 %v11677_v3  ;;  %10313 = vmatprep.mubr.msk.f32.mxu0 %vm11622_vm1, %v11621_v2 }
0x117a   :  { %10316 = vmatprep.subr.mxu0 %v11621_v2 }
0x1180   :  { %10314 = vmatmul.mubr.f32.vlgmr.msra.gmra.mrb[10].mxu0 %v5695_v33 }
0x1181   :  { %10317 = vmatpush3.msra.mxu0 %v11697_v7  ;;  %10318 = vmatprep.mubr.msk.f32.mxu0 %vm11622_vm1, %v11621_v2 }
0x1182   :  { %10321 = vmatprep.subr.mxu0 %v11621_v2 }
0x1188   :  { %10319 = vmatmul.mubr.f32.vlgmr.msra.gmra.mrb[10].mxu0 %v5693_v8 }
0x1189   :  { %10322 = vmatpush3.msra.mxu0 %v11677_v3  ;;  %10323 = vmatprep.mubr.msk.f32.mxu0 %vm11622_vm1, %v11621_v2 }
0x118a   :  { %11088 = vmatprep.subr.bf16.mxu0 %v11623_v18 }
0x1190   :  { %10324 = vmatmul.mubr.f32.vlgmr.msra.gmra.mrb[10].mxu0 %v5693_v8 }
0x1191   :  { %11090 = vmatpush3.bf16.msra.mxu0 %v11743_v26  ;;  %10342 = vmatprep.mubr.msk.f32.mxu0 %vm11622_vm1, %v11621_v2 }
0x1192   :  { %11091 = vmatprep.subr.bf16.mxu0 %v11623_v18 }
0x1195   :  { %11093 = vmatpush3.bf16.msra.mxu0 %v11746_v27 }
0x1196   :  { %11094 = vmatprep.subr.bf16.mxu0 %v11623_v18 }
0x1199   :  { %11096 = vmatpush3.bf16.msra.mxu0 %v11756_v32 }
0x119a   :  { %11097 = vmatprep.subr.bf16.mxu0 %v11623_v18 }
0x119d   :  { %11099 = vmatpush3.bf16.msra.mxu0 %v11760_v37 }
0x119e   :  { %11100 = vmatprep.subr.bf16.mxu0 %v11623_v18 }
0x1263   :  { %v6069_v53 = vpop.f32.mrb[10].mxu0 }
0x1264   :  { %v11316_v44 = vadd.f32 %v12190_v45, %v6069_v53  ;;  %v10325_v36 = vpop.f32.mrb[11].mxu0 }
0x1266   :  { %11569 = vtanh.f32 %v11316_v44  ;;  %6724 = vrot.lane.b32.xlu0 %v11316_v44, %s11624_s12 }
0x1270   :  { %v11570_v39 = vpop.eup %11569 }
0x1271   :  { %v6075_v51 = vsel %vm503_vm2, %v11570_v39, 0 }
0x1272   :  { %v6150_v30 = vand.u32 4294901760, %v6075_v51 }
0x1274   :  { %v6151_v40 = vsub.f32 %v6075_v51, %v6150_v30 }
0x1276   :  { %v6152_v25 = vand.u32 4294901760, %v6151_v40 }
0x1278   :  { %v6153_v31 = vsub.f32 %v6151_v40, %v6152_v25 }
0x127a   :  { %v6154_v35 = vand.u32 4294901760, %v6153_v31 }
0x127c   :  { %10343 = vmatmul.mubr.f32.vlgmr.msra.gmra.mrb[12].mxu0 %v6154_v35 }
0x127d   :  { %11102 = vmatpush3.bf16.msra.mxu0 %v11765_v48  ;;  %10361 = vmatprep.mubr.msk.f32.mxu0 %vm11622_vm1, %v11621_v2 }
0x127e   :  { %11103 = vmatprep.subr.bf16.mxu0 %v11623_v18 }
0x1281   :  { %11105 = vmatpush3.bf16.msra.mxu0 %v11767_v57 }
0x1282   :  { %11106 = vmatprep.subr.bf16.mxu0 %v11623_v18 }
0x1285   :  { %11108 = vmatpush3.bf16.msra.mxu0 %v11769_v6 }
0x1286   :  { %11109 = vmatprep.subr.bf16.mxu0 %v11623_v18 }
0x1289   :  { %11111 = vmatpush3.bf16.msra.mxu0 %v11771_v12 }
0x128a   :  { %11112 = vmatprep.subr.bf16.mxu0 %v11623_v18 }
0x128c   :  { %10362 = vmatmul.mubr.f32.vlgmr.msra.gmra.mrb[12].mxu0 %v6150_v30 }
0x128d   :  { %11114 = vmatpush3.bf16.msra.mxu0 %v11773_v14  ;;  %10380 = vmatprep.mubr.msk.f32.mxu0 %vm11622_vm1, %v11621_v2 }
0x128e   :  { %11115 = vmatprep.subr.bf16.mxu0 %v11623_v18 }
0x1291   :  { %11117 = vmatpush3.bf16.msra.mxu0 %v11775_v15 }
0x1292   :  { %11118 = vmatprep.subr.bf16.mxu0 %v11623_v18 }
0x1295   :  { %11120 = vmatpush3.bf16.msra.mxu0 %v11777_v16 }
0x1296   :  { %11121 = vmatprep.subr.bf16.mxu0 %v11623_v18 }
0x1299   :  { %11123 = vmatpush3.bf16.msra.mxu0 %v11779_v17 }
0x129a   :  { %11124 = vmatprep.subr.bf16.mxu0 %v11623_v18 }
0x129c   :  { %10381 = vmatmul.mubr.f32.vlgmr.msra.gmra.mrb[12].mxu0 %v6151_v40 }
0x129d   :  { %11126 = vmatpush3.bf16.msra.mxu0 %v11743_v26  ;;  %10399 = vmatprep.mubr.msk.f32.mxu0 %vm11622_vm1, %v11621_v2 }
0x129e   :  { %11127 = vmatprep.subr.bf16.mxu0 %v11623_v18 }
0x12a1   :  { %11129 = vmatpush3.bf16.msra.mxu0 %v11746_v27 }
0x12a2   :  { %11130 = vmatprep.subr.bf16.mxu0 %v11623_v18 }
0x12a5   :  { %11132 = vmatpush3.bf16.msra.mxu0 %v11756_v32 }
0x12a6   :  { %11133 = vmatprep.subr.bf16.mxu0 %v11623_v18 }
0x12a9   :  { %11135 = vmatpush3.bf16.msra.mxu0 %v11760_v37 }
0x12aa   :  { %11136 = vmatprep.subr.bf16.mxu0 %v11623_v18 }
0x12ac   :  { %10400 = vmatmul.mubr.f32.vlgmr.msra.gmra.mrb[12].mxu0 %v6152_v25 }
0x12ad   :  { %11138 = vmatpush3.bf16.msra.mxu0 %v11781_v19  ;;  %10418 = vmatprep.mubr.msk.f32.mxu0 %vm11622_vm1, %v11621_v2 }
0x12ae   :  { %11139 = vmatprep.subr.bf16.mxu0 %v11623_v18 }
0x12b1   :  { %11141 = vmatpush3.bf16.msra.mxu0 %v11783_v20 }
0x12b2   :  { %11142 = vmatprep.subr.bf16.mxu0 %v11623_v18 }
0x12b5   :  { %11144 = vmatpush3.bf16.msra.mxu0 %v11785_v21 }
0x12b6   :  { %11145 = vmatprep.subr.bf16.mxu0 %v11623_v18 }
0x12b9   :  { %11147 = vmatpush3.bf16.msra.mxu0 %v11787_v22 }
0x12ba   :  { %11148 = vmatprep.subr.bf16.mxu0 %v11623_v18 }
0x12bc   :  { %10419 = vmatmul.mubr.f32.vlgmr.msra.gmra.mrb[12].mxu0 %v6150_v30 }
0x12bd   :  { %11150 = vmatpush3.bf16.msra.mxu0 %v11743_v26  ;;  %10437 = vmatprep.mubr.msk.f32.mxu0 %vm11622_vm1, %v11621_v2 }
0x12be   :  { %11151 = vmatprep.subr.bf16.mxu0 %v11623_v18 }
0x12c1   :  { %11153 = vmatpush3.bf16.msra.mxu0 %v11746_v27 }
0x12c2   :  { %11154 = vmatprep.subr.bf16.mxu0 %v11623_v18 }
0x12c5   :  { %11156 = vmatpush3.bf16.msra.mxu0 %v11756_v32 }
0x12c6   :  { %11157 = vmatprep.subr.bf16.mxu0 %v11623_v18 }
0x12c9   :  { %11159 = vmatpush3.bf16.msra.mxu0 %v11760_v37 }
0x12ca   :  { %10584 = vmatprep.subr.mxu0 %v11621_v2 }
0x12cc   :  { %10438 = vmatmul.mubr.f32.vlgmr.msra.gmra.mrb[12].mxu0 %v6150_v30 }
0x12cd   :  { %10585 = vmatpush3.msra.mxu0 %v11677_v3  ;;  %10586 = vmatprep.mubr.msk.f32.mxu0 %vm11622_vm1, %v11621_v2 }
0x12ce   :  { %10589 = vmatprep.subr.mxu0 %v11621_v2 }
0x139f   :  { %v6610_v45 = vpop.f32.mrb[12].mxu0 }
0x13a0   :  { %v12513_v42 = vadd.f32 %v12252_v46, %v6610_v45  ;;  %v10439_v50 = vpop.f32.mrb[13].mxu0 }
0x13a2   :  { %v6619_v47 = vand.u32 2139095040, %v12513_v42  ;;  %v6616_v43 = vand.u32 2147483647, %v12513_v42  ;;  %vm6618_vm10 = vcmp.lt.s32.totalorder %v12513_v42, 0  ;;  %vm6708_vm15 = vweird.f32 %v12513_v42 }
0x13a4   :  { %v6620_v10 = vshrl.u32 %v6619_v47, 23  ;;  %v6623_v52 = vand.u32 8388607, %v6616_v43  ;;  %vm6617_vm11 = vcmp.le.f32.partialorder %v6616_v43, 0.7853982 }
0x13a6   :  { %v9036_v56 = vadd.s32 4294967169, %v6620_v10  ;;  %v6624_v36 = vor.u32 8388608, %v6623_v52 }
0x13a8   :  { %v6626_v24 = vadd.s32 1, %v9036_v56 }
0x13aa   :  { %vm6627_vm3 = vcmp.gt.s32.totalorder %v6626_v24, 0 }
0x13ab   :  { %v6628_v59 = vsel %vm6627_vm3, %v6626_v24, 0 }
0x13ac   :  { %v6630_v62 = vand.u32 31, %v6628_v59  ;;  %v6629_v60 = vshrl.u32 %v6628_v59, 5  ;;  %v6664_v59 = vshll.u32 %v6624_v36, 8 }
0x13ae   :  { %v6631_v5 = vsub.s32 32, %v6630_v62  ;;  %v6633_v1 = vshll.u32 %v11626_v55, %v6630_v62  ;;  %v6636_v46 = vshll.u32 %v11627_v58, %v6630_v62  ;;  %v6639_v34 = vshll.u32 %v11628_v61, %v6630_v62 }
0x13af   :  { %v6642_v63 = vshll.u32 %v11629_v0, %v6630_v62  ;;  %v6645_v53 = vshll.u32 %v12834_v9, %v6630_v62  ;;  %vm6648_vm4 = vcmp.lt.s32.totalorder %v6629_v60, 1  ;;  %vm6651_vm5 = vcmp.lt.s32.totalorder %v6629_v60, 4 }
0x13b0   :  { %v6634_v29 = vshrl.u32 %v11627_v58, %v6631_v5  ;;  %v6637_v8 = vshrl.u32 %v11628_v61, %v6631_v5  ;;  %v6640_v33 = vshrl.u32 %v11629_v0, %v6631_v5  ;;  %v6643_v54 = vshrl.u32 %v12834_v9, %v6631_v5 }
0x13b1   :  { %v6646_v44 = vshrl.u32 %v12836_v23, %v6631_v5  ;;  %v6632_v50 = vshrl.u32 %v11626_v55, %v6631_v5  ;;  %vm6650_vm6 = vcmp.lt.s32.totalorder %v6629_v60, 3  ;;  %vm6649_vm7 = vcmp.lt.s32.totalorder %v6629_v60, 2 }
0x13b2   :  { %v6635_v39 = vor.u32 %v6634_v29, %v6633_v1  ;;  %v6638_v51 = vor.u32 %v6637_v8, %v6636_v46  ;;  %v6641_v30 = vor.u32 %v6640_v33, %v6639_v34  ;;  %v6644_v40 = vor.u32 %v6643_v54, %v6642_v63 }
0x13b3   :  { %v6647_v25 = vor.u32 %v6646_v44, %v6645_v53 }
0x13b4   :  { %v6653_v31 = vsel %vm6651_vm5, %v6641_v30, 2102212464  ;;  %v6656_v35 = vsel %vm6648_vm4, %v6635_v39, %v6638_v51  ;;  %v6660_v45 = vsel %vm6648_vm4, %v6638_v51, %v6641_v30  ;;  %v6657_v47 = vsel %vm6651_vm5, %v6644_v40, 920167782 }
0x13b5   :  { %v6661_v10 = vsel %vm6651_vm5, %v6647_v25, 1326507024  ;;  %v6658_v56 = vsel %vm6650_vm6, %v6641_v30, %v6657_v47  ;;  %v6652_v62 = vsel %vm6648_vm4, %v6632_v50, %v6635_v39  ;;  %v6654_v52 = vsel %vm6650_vm6, %v6638_v51, %v6653_v31 }
0x13b6   :  { %v6662_v24 = vsel %vm6650_vm6, %v6644_v40, %v6661_v10  ;;  %v6659_v1 = vsel %vm6649_vm7, %v6656_v35, %v6658_v56  ;;  %v6655_v63 = vsel %vm6649_vm7, %v6652_v62, %v6654_v52 }
0x13b7   :  { %v6663_v46 = vsel %vm6649_vm7, %v6660_v45, %v6662_v24  ;;  %v12533_v34 = vmul.u32.u64.low %v6664_v59, %v6659_v1  ;;  %v12534_v33 = vmul.u32.u64.high %v6664_v59, %v6659_v1, %v12533_v34  ;;  %v6671_v54 = vmul.u32 %v6664_v59, %v6655_v63 }
0x13b8   :  { %v12530_v29 = vmul.u32.u64.low %v6664_v59, %v6663_v46  ;;  %v12531_v8 = vmul.u32.u64.high %v6664_v59, %v6663_v46, %v12530_v29 }
0x13b9   :  { %v6674_v5 = vadd.s32 1, %v12534_v33 }
0x13ba   :  { %vm6673_vm8 = vc.u32 %v12531_v8, %v12533_v34  ;;  %v6672_v45 = vadd.s32 %v12533_v34, %v12531_v8 }
0x13bb   :  { %v6675_v60 = vsel %vm6673_vm8, %v6674_v5, %v12534_v33 }
0x13bc   :  { %v6676_v53 = vadd.s32 %v6675_v60, %v6671_v54 }
0x13be   :  { %v6677_v44 = vadd.s32 536870912, %v6676_v53 }
0x13c0   :  { %v6678_v36 = vshrl.u32 %v6677_v44, 30 }
0x13c2   :  { %v6679_v39 = vshll.u32 %v6678_v36, 30  ;;  %v6702_v5 = vsub.s32 4, %v6678_v36 }
0x13c4   :  { %v6680_v51 = vsub.s32 %v6676_v53, %v6679_v39  ;;  %v6703_v34 = vsel %vm6618_vm10, %v6702_v5, %v6678_v36  ;;  %v6720_v36 = vpop.permute.xlu1 %6719 }
0x13c5   :  { %v6705_v54 = vsel %vm6617_vm11, 0, %v6703_v34 }
0x13c6   :  { %v6682_v30 = vsub.s32 0, %v6680_v51  ;;  %v6709_v60 = vand.u32 3, %v6705_v54 }
0x13c8   :  { %v9037_v40 = vmin.u32 %v6682_v30, %v6680_v51  ;;  %vm6714_vm12 = vcmp.eq.s32.totalorder %v6709_v60, 2  ;;  %vm6711_vm13 = vcmp.eq.s32.totalorder %v6709_v60, 0  ;;  %vm6710_vm14 = vcmp.lt.s32.totalorder %v6709_v60, 2 }
0x13ca   :  { %v6684_v25 = vclz %v9037_v40 }
0x13cc   :  { %v9038_v31 = vadd.s32 4294967294, %v6684_v25  ;;  %v6725_v25 = vpop.permute.xlu0 %6724 }
0x13ce   :  { %vm9039_vm9 = vcmp.lt.s32.totalorder %v9038_v31, 0 }
0x13cf   :  { %v6687_v35 = vsel %vm9039_vm9, 0, %v9038_v31 }
0x13d0   :  { %v6688_v50 = vsub.s32 32, %v6687_v35  ;;  %v6692_v47 = vsub.s32 4294967266, %v6687_v35  ;;  %v6689_v10 = vshll.u32 %v6680_v51, %v6687_v35 }
0x13d2   :  { %v6690_v56 = vshrl.u32 %v6672_v45, %v6688_v50  ;;  %v6693_v24 = vadd.s32 127, %v6692_v47 }
0x13d4   :  { %v6691_v59 = vor.u32 %v6690_v56, %v6689_v10  ;;  %v6694_v62 = vshll.u32 %v6693_v24, 23  ;;  %v6614_v10 = vmul.f32 1.442695, %v12513_v42 }
0x13d6   :  { %v6695_v52 = vor.u32 4788187, %v6694_v62  ;;  %v6698_v46 = vcvt.s32.f32 %v6691_v59 }
0x13d8   :  { %v6696_v1 = vand.u32 2147483647, %v6695_v52 }
0x13da   :  { %v6699_v29 = vmul.f32 %v6698_v46, %v6696_v1 }
0x13dc   :  { %v6700_v33 = vxor.u32 2147483648, %v6699_v29 }
0x13de   :  { %v6701_v63 = vsel %vm6618_vm10, %v6700_v33, %v6699_v29 }
0x13df   :  { %v6704_v8 = vsel %vm6617_vm11, %v12513_v42, %v6701_v63  ;;  %v12587_v63 = vld [vmem:[%s12830_s2] ss:$0 sm:$0xff] }
0x13e0   :  { %11571 = vcosq.f32 %v6704_v8 }
0x13e1   :  { %11573 = vsinq.f32 %v6704_v8 }
0x13e2   :  { %11575 = vpow2.f32 %v6614_v10 }
0x13ea   :  { %v11572_v53 = vpop.eup %11571 }
0x13eb   :  { %v11574_v44 = vpop.eup %11573  ;;  %v6715_v39 = vxor.u32 2147483648, %v11572_v53 }
0x13ec   :  { %v6712_v51 = vxor.u32 2147483648, %v11574_v44  ;;  %v11576_v56 = vpop.eup %11575 }
0x13ed   :  { %v6716_v30 = vsel %vm6714_vm12, %v6715_v39, %v11574_v44 }
0x13ee   :  { %v6713_v40 = vsel %vm6711_vm13, %v11572_v53, %v6712_v51 }
0x13ef   :  { %v6717_v43 = vsel %vm6710_vm14, %v6713_v40, %v6716_v30  ;;  %v12644_v40 = vld [vmem:[%s12832_s4] ss:$0 sm:$0xff]  ;;  %s11633_s4 = smov 16  }
0x13f0   :  { %v6718_v31 = vsel %vm6708_vm15, nan, %v6717_v43 }
0x13f1   :  { %v6727_v35 = vmul.f32 %v6725_v25, %v6718_v31  ;;  %v6722_v45 = vmul.f32 %v6720_v36, %v6718_v31 }
0x13f3   :  { %6729 = vrot.lane.b32.xlu0 %v6727_v35, %s11632_s16 }
0x1465   :  { %v6730_v50 = vpop.permute.xlu0 %6729 }
0x1466   :  { %v6732_v47 = vadd.f32 %v6730_v50, %v6722_v45 }
0x1468   :  { %6734 = vrot.lane.b32.xlu1 %v6732_v47, %s11632_s16 }
0x14da   :  { %v6735_v24 = vpop.permute.xlu1 %6734 }
0x14db   :  { %v12548_v59 = vmul.f32 %v11576_v56, %v6735_v24 }
0x14dd   :  { %v6739_v62 = vsel %vm26_vm0, %v12548_v59, 0  ;;  %7833 = vrot.lane.b32.xlu1 %v12548_v59, %s11625_s13 }
0x14de   :  { %v6807_v52 = vand.u32 4294901760, %v6739_v62 }
0x14e0   :  { %v6808_v1 = vsub.f32 %v6739_v62, %v6807_v52 }
0x14e2   :  { %v6809_v46 = vand.u32 4294901760, %v6808_v1 }
0x14e4   :  { %v6810_v29 = vsub.f32 %v6808_v1, %v6809_v46 }
0x14e6   :  { %v6811_v33 = vand.u32 4294901760, %v6810_v29 }
0x14e8   :  { %10443 = vmatmul.mubr.f32.vlgmr.msra.gmra.mrb[14].mxu1 %v6811_v33 }
0x14e9   :  { %10446 = vmatpush3.msra.mxu1 %v11705_v13  ;;  %10447 = vmatprep.mubr.msk.f32.mxu1 %vm11622_vm1, %v11621_v2 }
0x14ea   :  { %10450 = vmatprep.subr.mxu1 %v11621_v2 }
0x14f0   :  { %10448 = vmatmul.mubr.f32.vlgmr.msra.gmra.mrb[14].mxu1 %v6807_v52 }
0x14f1   :  { %10451 = vmatpush3.msra.mxu1 %v11686_v4  ;;  %10452 = vmatprep.mubr.msk.f32.mxu1 %vm11622_vm1, %v11621_v2 }
0x14f2   :  { %10455 = vmatprep.subr.mxu1 %v11621_v2 }
0x14f8   :  { %10453 = vmatmul.mubr.f32.vlgmr.msra.gmra.mrb[14].mxu1 %v6808_v1 }
0x14f9   :  { %10456 = vmatpush3.msra.mxu1 %v11677_v3  ;;  %10457 = vmatprep.mubr.msk.f32.mxu1 %vm11622_vm1, %v11621_v2 }
0x14fa   :  { %10460 = vmatprep.subr.mxu1 %v11621_v2 }
0x1500   :  { %10458 = vmatmul.mubr.f32.vlgmr.msra.gmra.mrb[14].mxu1 %v6809_v46 }
0x1501   :  { %10461 = vmatpush3.msra.mxu1 %v11697_v7  ;;  %10462 = vmatprep.mubr.msk.f32.mxu1 %vm11622_vm1, %v11621_v2 }
0x1502   :  { %10465 = vmatprep.subr.mxu1 %v11621_v2 }
0x1508   :  { %10463 = vmatmul.mubr.f32.vlgmr.msra.gmra.mrb[14].mxu1 %v6807_v52 }
0x1509   :  { %10466 = vmatpush3.msra.mxu1 %v11677_v3  ;;  %10467 = vmatprep.mubr.msk.f32.mxu1 %vm11622_vm1, %v11621_v2 }
0x150a   :  { %11160 = vmatprep.subr.bf16.mxu1 %v11623_v18 }
0x1510   :  { %10468 = vmatmul.mubr.f32.vlgmr.msra.gmra.mrb[14].mxu1 %v6807_v52 }
0x1511   :  { %11162 = vmatpush3.bf16.msra.mxu1 %v11743_v26  ;;  %10486 = vmatprep.mubr.msk.f32.mxu1 %vm11622_vm1, %v11621_v2 }
0x1512   :  { %11163 = vmatprep.subr.bf16.mxu1 %v11623_v18 }
0x1515   :  { %11165 = vmatpush3.bf16.msra.mxu1 %v11746_v27 }
0x1516   :  { %11166 = vmatprep.subr.bf16.mxu1 %v11623_v18 }
0x1519   :  { %11168 = vmatpush3.bf16.msra.mxu1 %v11756_v32 }
0x151a   :  { %11169 = vmatprep.subr.bf16.mxu1 %v11623_v18 }
0x151d   :  { %11171 = vmatpush3.bf16.msra.mxu1 %v11760_v37 }
0x151e   :  { %11172 = vmatprep.subr.bf16.mxu1 %v11623_v18 }
0x15e3   :  { %v7183_v42 = vpop.f32.mrb[14].mxu1 }
0x15e4   :  { %v11318_v5 = vadd.f32 %v12587_v63, %v7183_v42  ;;  %v10469_v8 = vpop.f32.mrb[15].mxu1 }
0x15e6   :  { %11577 = vtanh.f32 %v11318_v5  ;;  %7838 = vrot.lane.b32.xlu0 %v11318_v5, %s11624_s12 }
0x15f0   :  { %v11578_v34 = vpop.eup %11577 }
0x15f1   :  { %v7189_v54 = vsel %vm503_vm2, %v11578_v34, 0 }
0x15f2   :  { %v7264_v60 = vand.u32 4294901760, %v7189_v54 }
0x15f4   :  { %v7265_v53 = vsub.f32 %v7189_v54, %v7264_v60 }
0x15f6   :  { %v7266_v44 = vand.u32 4294901760, %v7265_v53 }
0x15f8   :  { %v7267_v39 = vsub.f32 %v7265_v53, %v7266_v44 }
0x15fa   :  { %v7268_v51 = vand.u32 4294901760, %v7267_v39 }
0x15fc   :  { %10487 = vmatmul.mubr.f32.vlgmr.msra.gmra.mrb[16].mxu1 %v7268_v51 }
0x15fd   :  { %11174 = vmatpush3.bf16.msra.mxu1 %v11765_v48  ;;  %10505 = vmatprep.mubr.msk.f32.mxu1 %vm11622_vm1, %v11621_v2 }
0x15fe   :  { %11175 = vmatprep.subr.bf16.mxu1 %v11623_v18 }
0x1601   :  { %11177 = vmatpush3.bf16.msra.mxu1 %v11767_v57 }
0x1602   :  { %11178 = vmatprep.subr.bf16.mxu1 %v11623_v18 }
0x1605   :  { %11180 = vmatpush3.bf16.msra.mxu1 %v11769_v6 }
0x1606   :  { %11181 = vmatprep.subr.bf16.mxu1 %v11623_v18 }
0x1609   :  { %11183 = vmatpush3.bf16.msra.mxu1 %v11771_v12 }
0x160a   :  { %11184 = vmatprep.subr.bf16.mxu1 %v11623_v18 }
0x160c   :  { %10506 = vmatmul.mubr.f32.vlgmr.msra.gmra.mrb[16].mxu1 %v7264_v60 }
0x160d   :  { %11186 = vmatpush3.bf16.msra.mxu1 %v11773_v14  ;;  %10524 = vmatprep.mubr.msk.f32.mxu1 %vm11622_vm1, %v11621_v2 }
0x160e   :  { %11187 = vmatprep.subr.bf16.mxu1 %v11623_v18 }
0x1611   :  { %11189 = vmatpush3.bf16.msra.mxu1 %v11775_v15 }
0x1612   :  { %11190 = vmatprep.subr.bf16.mxu1 %v11623_v18 }
0x1615   :  { %11192 = vmatpush3.bf16.msra.mxu1 %v11777_v16 }
0x1616   :  { %11193 = vmatprep.subr.bf16.mxu1 %v11623_v18 }
0x1619   :  { %11195 = vmatpush3.bf16.msra.mxu1 %v11779_v17 }
0x161a   :  { %11196 = vmatprep.subr.bf16.mxu1 %v11623_v18 }
0x161c   :  { %10525 = vmatmul.mubr.f32.vlgmr.msra.gmra.mrb[16].mxu1 %v7265_v53 }
0x161d   :  { %11198 = vmatpush3.bf16.msra.mxu1 %v11743_v26  ;;  %10543 = vmatprep.mubr.msk.f32.mxu1 %vm11622_vm1, %v11621_v2 }
0x161e   :  { %11199 = vmatprep.subr.bf16.mxu1 %v11623_v18 }
0x1621   :  { %11201 = vmatpush3.bf16.msra.mxu1 %v11746_v27 }
0x1622   :  { %11202 = vmatprep.subr.bf16.mxu1 %v11623_v18 }
0x1625   :  { %11204 = vmatpush3.bf16.msra.mxu1 %v11756_v32 }
0x1626   :  { %11205 = vmatprep.subr.bf16.mxu1 %v11623_v18 }
0x1629   :  { %11207 = vmatpush3.bf16.msra.mxu1 %v11760_v37 }
0x162a   :  { %11208 = vmatprep.subr.bf16.mxu1 %v11623_v18 }
0x162c   :  { %10544 = vmatmul.mubr.f32.vlgmr.msra.gmra.mrb[16].mxu1 %v7266_v44 }
0x162d   :  { %11210 = vmatpush3.bf16.msra.mxu1 %v11781_v19  ;;  %10562 = vmatprep.mubr.msk.f32.mxu1 %vm11622_vm1, %v11621_v2 }
0x162e   :  { %11211 = vmatprep.subr.bf16.mxu1 %v11623_v18 }
0x1631   :  { %11213 = vmatpush3.bf16.msra.mxu1 %v11783_v20 }
0x1632   :  { %11214 = vmatprep.subr.bf16.mxu1 %v11623_v18 }
0x1635   :  { %11216 = vmatpush3.bf16.msra.mxu1 %v11785_v21 }
0x1636   :  { %11217 = vmatprep.subr.bf16.mxu1 %v11623_v18 }
0x1639   :  { %11219 = vmatpush3.bf16.msra.mxu1 %v11787_v22 }
0x163a   :  { %11220 = vmatprep.subr.bf16.mxu1 %v11623_v18 }
0x163c   :  { %10563 = vmatmul.mubr.f32.vlgmr.msra.gmra.mrb[16].mxu1 %v7264_v60 }
0x163d   :  { %11222 = vmatpush3.bf16.msra.mxu1 %v11743_v26  ;;  %10581 = vmatprep.mubr.msk.f32.mxu1 %vm11622_vm1, %v11621_v2 }
0x163e   :  { %11223 = vmatprep.subr.bf16.mxu1 %v11623_v18 }
0x1641   :  { %11225 = vmatpush3.bf16.msra.mxu1 %v11746_v27 }
0x1642   :  { %11226 = vmatprep.subr.bf16.mxu1 %v11623_v18 }
0x1645   :  { %11228 = vmatpush3.bf16.msra.mxu1 %v11756_v32 }
0x1646   :  { %11229 = vmatprep.subr.bf16.mxu1 %v11623_v18 }
0x1649   :  { %11231 = vmatpush3.bf16.msra.mxu1 %v11760_v37 }
0x164c   :  { %10582 = vmatmul.mubr.f32.vlgmr.msra.gmra.mrb[16].mxu1 %v7264_v60 }
0x171f   :  { %v7724_v30 = vpop.f32.mrb[16].mxu1 }
0x1720   :  { %v12647_v43 = vadd.f32 %v12644_v40, %v7724_v30  ;;  %v10583_v25 = vpop.f32.mrb[17].mxu1 }
0x1722   :  { %v7733_v31 = vand.u32 2139095040, %v12647_v43  ;;  %v7730_v50 = vand.u32 2147483647, %v12647_v43  ;;  %vm7732_vm10 = vcmp.lt.s32.totalorder %v12647_v43, 0  ;;  %vm7822_vm15 = vweird.f32 %v12647_v43 }
0x1724   :  { %v7734_v35 = vshrl.u32 %v7733_v31, 23  ;;  %v7737_v24 = vand.u32 8388607, %v7730_v50  ;;  %vm7731_vm11 = vcmp.le.f32.partialorder %v7730_v50, 0.7853982 }
0x1726   :  { %v9040_v36 = vadd.s32 4294967169, %v7734_v35  ;;  %v7738_v60 = vor.u32 8388608, %v7737_v24 }
0x1728   :  { %v7740_v45 = vadd.s32 1, %v9040_v36 }
0x172a   :  { %vm7741_vm3 = vcmp.gt.s32.totalorder %v7740_v45, 0 }
0x172b   :  { %v7742_v47 = vsel %vm7741_vm3, %v7740_v45, 0 }
0x172c   :  { %v7744_v10 = vand.u32 31, %v7742_v47  ;;  %v7743_v62 = vshrl.u32 %v7742_v47, 5 }
0x172e   :  { %v7745_v56 = vsub.s32 32, %v7744_v10  ;;  %v7747_v52 = vshll.u32 %v11626_v55, %v7744_v10  ;;  %v7750_v1 = vshll.u32 %v11627_v58, %v7744_v10  ;;  %v7753_v33 = vshll.u32 %v11628_v61, %v7744_v10 }
0x172f   :  { %v7756_v5 = vshll.u32 %v11629_v0, %v7744_v10  ;;  %v7759_v34 = vshll.u32 %v12834_v9, %v7744_v10  ;;  %vm7762_vm4 = vcmp.lt.s32.totalorder %v7743_v62, 1  ;;  %vm7765_vm5 = vcmp.lt.s32.totalorder %v7743_v62, 4 }
0x1730   :  { %v7748_v46 = vshrl.u32 %v11627_v58, %v7745_v56  ;;  %v7751_v29 = vshrl.u32 %v11628_v61, %v7745_v56  ;;  %v7754_v42 = vshrl.u32 %v11629_v0, %v7745_v56  ;;  %v7757_v8 = vshrl.u32 %v12834_v9, %v7745_v56 }
0x1731   :  { %v7760_v54 = vshrl.u32 %v12836_v23, %v7745_v56  ;;  %v7746_v36 = vshrl.u32 %v11626_v55, %v7745_v56  ;;  %vm7764_vm6 = vcmp.lt.s32.totalorder %v7743_v62, 3  ;;  %vm7763_vm7 = vcmp.lt.s32.totalorder %v7743_v62, 2 }
0x1732   :  { %v7749_v53 = vor.u32 %v7748_v46, %v7747_v52  ;;  %v7752_v44 = vor.u32 %v7751_v29, %v7750_v1  ;;  %v7755_v39 = vor.u32 %v7754_v42, %v7753_v33  ;;  %v7758_v51 = vor.u32 %v7757_v8, %v7756_v5 }
0x1733   :  { %v7761_v30 = vor.u32 %v7760_v54, %v7759_v34  ;;  %v7778_v23 = vshll.u32 %v7738_v60, 8 }
0x1734   :  { %v7767_v25 = vsel %vm7765_vm5, %v7755_v39, 2102212464  ;;  %v7770_v31 = vsel %vm7762_vm4, %v7749_v53, %v7752_v44  ;;  %v7774_v35 = vsel %vm7762_vm4, %v7752_v44, %v7755_v39  ;;  %v7771_v45 = vsel %vm7765_vm5, %v7758_v51, 920167782 }
0x1735   :  { %v7775_v47 = vsel %vm7765_vm5, %v7761_v30, 1326507024  ;;  %v7772_v10 = vsel %vm7764_vm6, %v7755_v39, %v7771_v45  ;;  %v7766_v24 = vsel %vm7762_vm4, %v7746_v36, %v7749_v53  ;;  %v7768_v52 = vsel %vm7764_vm6, %v7752_v44, %v7767_v25 }
0x1736   :  { %v7776_v9 = vsel %vm7764_vm6, %v7758_v51, %v7775_v47  ;;  %v7773_v1 = vsel %vm7763_vm7, %v7770_v31, %v7772_v10  ;;  %v7769_v8 = vsel %vm7763_vm7, %v7766_v24, %v7768_v52 }
0x1737   :  { %v7777_v46 = vsel %vm7763_vm7, %v7774_v35, %v7776_v9  ;;  %v12667_v42 = vmul.u32.u64.low %v7778_v23, %v7773_v1  ;;  %v12668_v5 = vmul.u32.u64.high %v7778_v23, %v7773_v1, %v12667_v42  ;;  %v7785_v34 = vmul.u32 %v7778_v23, %v7769_v8 }
0x1738   :  { %v12664_v29 = vmul.u32.u64.low %v7778_v23, %v7777_v46  ;;  %v12665_v33 = vmul.u32.u64.high %v7778_v23, %v7777_v46, %v12664_v29 }
0x1739   :  { %v7788_v56 = vadd.s32 1, %v12668_v5 }
0x173a   :  { %vm7787_vm8 = vc.u32 %v12665_v33, %v12667_v42  ;;  %v7786_v35 = vadd.s32 %v12667_v42, %v12665_v33 }
0x173b   :  { %v7789_v62 = vsel %vm7787_vm8, %v7788_v56, %v12668_v5 }
0x173c   :  { %v7790_v54 = vadd.s32 %v7789_v62, %v7785_v34 }
0x173e   :  { %v7791_v60 = vadd.s32 536870912, %v7790_v54 }
0x1740   :  { %v7792_v53 = vshrl.u32 %v7791_v60, 30 }
0x1742   :  { %v7793_v44 = vshll.u32 %v7792_v53, 30  ;;  %v7816_v34 = vsub.s32 4, %v7792_v53 }
0x1744   :  { %v7794_v39 = vsub.s32 %v7790_v54, %v7793_v44  ;;  %v7817_v42 = vsel %vm7732_vm10, %v7816_v34, %v7792_v53  ;;  %v7834_v53 = vpop.permute.xlu1 %7833 }
0x1745   :  { %v7819_v62 = vsel %vm7731_vm11, 0, %v7817_v42 }
0x1746   :  { %v7796_v9 = vsub.s32 0, %v7794_v39  ;;  %v7823_v54 = vand.u32 3, %v7819_v62 }
0x1748   :  { %v9041_v51 = vmin.u32 %v7796_v9, %v7794_v39  ;;  %vm7828_vm12 = vcmp.eq.s32.totalorder %v7823_v54, 2  ;;  %vm7825_vm13 = vcmp.eq.s32.totalorder %v7823_v54, 0  ;;  %vm7824_vm14 = vcmp.lt.s32.totalorder %v7823_v54, 2 }
0x174a   :  { %v7798_v30 = vclz %v9041_v51 }
0x174c   :  { %v9042_v25 = vadd.s32 4294967294, %v7798_v30 }
0x174e   :  { %vm9043_vm9 = vcmp.lt.s32.totalorder %v9042_v25, 0 }
0x174f   :  { %v7801_v31 = vsel %vm9043_vm9, 0, %v9042_v25  ;;  %v7839_v25 = vpop.permute.xlu0 %7838 }
0x1750   :  { %v7802_v36 = vsub.s32 32, %v7801_v31  ;;  %v7806_v45 = vsub.s32 4294967266, %v7801_v31  ;;  %v7803_v47 = vshll.u32 %v7794_v39, %v7801_v31 }
0x1752   :  { %v7804_v10 = vshrl.u32 %v7786_v35, %v7802_v36  ;;  %v7807_v23 = vadd.s32 127, %v7806_v45 }
0x1754   :  { %v7805_v24 = vor.u32 %v7804_v10, %v7803_v47  ;;  %v7808_v52 = vshll.u32 %v7807_v23, 23  ;;  %v7728_v10 = vmul.f32 1.442695, %v12647_v43 }
0x1756   :  { %v7809_v1 = vor.u32 4788187, %v7808_v52  ;;  %v7812_v29 = vcvt.s32.f32 %v7805_v24 }
0x1758   :  { %v7810_v46 = vand.u32 2147483647, %v7809_v1 }
0x175a   :  { %v7813_v5 = vmul.f32 %v7812_v29, %v7810_v46 }
0x175c   :  { %v7814_v8 = vxor.u32 2147483648, %v7813_v5 }
0x175e   :  { %v7815_v56 = vsel %vm7732_vm10, %v7814_v8, %v7813_v5 }
0x175f   :  { %v7818_v33 = vsel %vm7731_vm11, %v12647_v43, %v7815_v56 }
0x1760   :  { %11579 = vcosq.f32 %v7818_v33 }
0x1761   :  { %11581 = vsinq.f32 %v7818_v33 }
0x1762   :  { %11583 = vpow2.f32 %v7728_v10 }
0x176a   :  { %v11580_v60 = vpop.eup %11579 }
0x176b   :  { %v11582_v44 = vpop.eup %11581  ;;  %v7829_v39 = vxor.u32 2147483648, %v11580_v60 }
0x176c   :  { %v7826_v9 = vxor.u32 2147483648, %v11582_v44  ;;  %v11584_v23 = vpop.eup %11583 }
0x176d   :  { %v7830_v51 = vsel %vm7828_vm12, %v7829_v39, %v11582_v44 }
0x176e   :  { %v7827_v30 = vsel %vm7825_vm13, %v11580_v60, %v7826_v9  ;;  %v12837_v60 = vmov 920167782   ;;  %v12838_v9 = vmov 1326507024  }
0x176f   :  { %v7831_v50 = vsel %vm7824_vm14, %v7827_v30, %v7830_v51 }
0x1770   :  { %v7832_v31 = vsel %vm7822_vm15, nan, %v7831_v50  ;;  %vm8986_vm15 = vcmask 130048  }
0x1771   :  { %v7841_v35 = vmul.f32 %v7839_v25, %v7832_v31  ;;  %v7836_v36 = vmul.f32 %v7834_v53, %v7832_v31 }
0x1773   :  { %7843 = vrot.lane.b32.xlu0 %v7841_v35, %s11632_s16 }
0x17e5   :  { %v7844_v45 = vpop.permute.xlu0 %7843 }
0x17e6   :  { %v7846_v47 = vadd.f32 %v7844_v45, %v7836_v36 }
0x17e8   :  { %7848 = vrot.lane.b32.xlu1 %v7846_v47, %s11632_s16 }
0x185a   :  { %v7849_v24 = vpop.permute.xlu1 %7848 }
0x185b   :  { %v12682_v52 = vmul.f32 %v11584_v23, %v7849_v24 }
0x185d   :  { %v7853_v1 = vsel %vm26_vm0, %v12682_v52, 0  ;;  %8947 = vrot.lane.b32.xlu1 %v12682_v52, %s11625_s13 }
0x185e   :  { %v7921_v46 = vand.u32 4294901760, %v7853_v1 }
0x1860   :  { %v7922_v29 = vsub.f32 %v7853_v1, %v7921_v46 }
0x1862   :  { %v7923_v5 = vand.u32 4294901760, %v7922_v29 }
0x1864   :  { %v7924_v8 = vsub.f32 %v7922_v29, %v7923_v5 }
0x1866   :  { %v7925_v56 = vand.u32 4294901760, %v7924_v8 }
0x1868   :  { %10587 = vmatmul.mubr.f32.vlgmr.msra.gmra.mrb[14].mxu0 %v7925_v56 }
0x1869   :  { %10590 = vmatpush3.msra.mxu0 %v11705_v13  ;;  %10591 = vmatprep.mubr.msk.f32.mxu0 %vm11622_vm1, %v11621_v2 }
0x186a   :  { %10594 = vmatprep.subr.mxu0 %v11621_v2 }
0x1870   :  { %10592 = vmatmul.mubr.f32.vlgmr.msra.gmra.mrb[14].mxu0 %v7921_v46 }
0x1871   :  { %10595 = vmatpush3.msra.mxu0 %v11686_v4  ;;  %10596 = vmatprep.mubr.msk.f32.mxu0 %vm11622_vm1, %v11621_v2 }
0x1872   :  { %10599 = vmatprep.subr.mxu0 %v11621_v2 }
0x1878   :  { %10597 = vmatmul.mubr.f32.vlgmr.msra.gmra.mrb[14].mxu0 %v7922_v29 }
0x1879   :  { %10600 = vmatpush3.msra.mxu0 %v11677_v3  ;;  %10601 = vmatprep.mubr.msk.f32.mxu0 %vm11622_vm1, %v11621_v2 }
0x187a   :  { %10604 = vmatprep.subr.mxu0 %v11621_v2 }
0x1880   :  { %10602 = vmatmul.mubr.f32.vlgmr.msra.gmra.mrb[14].mxu0 %v7923_v5 }
0x1881   :  { %10605 = vmatpush3.msra.mxu0 %v11697_v7  ;;  %10606 = vmatprep.mubr.msk.f32.mxu0 %vm11622_vm1, %v11621_v2 }
0x1882   :  { %10609 = vmatprep.subr.mxu0 %v11621_v2 }
0x1888   :  { %10607 = vmatmul.mubr.f32.vlgmr.msra.gmra.mrb[14].mxu0 %v7921_v46 }
0x1889   :  { %10610 = vmatpush3.msra.mxu0 %v11677_v3  ;;  %10611 = vmatprep.mubr.msk.f32.mxu0 %vm11622_vm1, %v11621_v2 }
0x188a   :  { %11232 = vmatprep.subr.bf16.mxu0 %v11623_v18 }
0x1890   :  { %10612 = vmatmul.mubr.f32.vlgmr.msra.gmra.mrb[14].mxu0 %v7921_v46 }
0x1891   :  { %11234 = vmatpush3.bf16.msra.mxu0 %v11743_v26  ;;  %10630 = vmatprep.mubr.msk.f32.mxu0 %vm11622_vm1, %v11621_v2 }
0x1892   :  { %11235 = vmatprep.subr.bf16.mxu0 %v11623_v18 }
0x1895   :  { %11237 = vmatpush3.bf16.msra.mxu0 %v11746_v27 }
0x1896   :  { %11238 = vmatprep.subr.bf16.mxu0 %v11623_v18 }
0x1899   :  { %11240 = vmatpush3.bf16.msra.mxu0 %v11756_v32 }
0x189a   :  { %11241 = vmatprep.subr.bf16.mxu0 %v11623_v18 }
0x189d   :  { %11243 = vmatpush3.bf16.msra.mxu0 %v11760_v37 }
0x189e   :  { %11244 = vmatprep.subr.bf16.mxu0 %v11623_v18 }
0x1963   :  { %v8297_v3 = vpop.f32.mrb[14].mxu0 }
0x1964   :  { %v11320_v4 = vadd.f32 %v12587_v63, %v8297_v3  ;;  %v10613_v7 = vpop.f32.mrb[15].mxu0 }
0x1966   :  { %11585 = vtanh.f32 %v11320_v4  ;;  %8952 = vrot.lane.b32.xlu0 %v11320_v4, %s11624_s12 }
0x1970   :  { %v11586_v13 = vpop.eup %11585 }
0x1971   :  { %v8303_v43 = vsel %vm503_vm2, %v11586_v13, 0 }
0x1972   :  { %v8378_v34 = vand.u32 4294901760, %v8303_v43 }
0x1974   :  { %v8379_v33 = vsub.f32 %v8303_v43, %v8378_v34 }
0x1976   :  { %v8380_v42 = vand.u32 4294901760, %v8379_v33 }
0x1978   :  { %v8381_v62 = vsub.f32 %v8379_v33, %v8380_v42 }
0x197a   :  { %v8382_v54 = vand.u32 4294901760, %v8381_v62 }
0x197c   :  { %10631 = vmatmul.mubr.f32.vlgmr.msra.gmra.mrb[16].mxu0 %v8382_v54 }
0x197d   :  { %11246 = vmatpush3.bf16.msra.mxu0 %v11765_v48  ;;  %10649 = vmatprep.mubr.msk.f32.mxu0 %vm11622_vm1, %v11621_v2 }
0x197e   :  { %11247 = vmatprep.subr.bf16.mxu0 %v11623_v18 }
0x1981   :  { %11249 = vmatpush3.bf16.msra.mxu0 %v11767_v57 }
0x1982   :  { %11250 = vmatprep.subr.bf16.mxu0 %v11623_v18 }
0x1985   :  { %11252 = vmatpush3.bf16.msra.mxu0 %v11769_v6 }
0x1986   :  { %11253 = vmatprep.subr.bf16.mxu0 %v11623_v18 }
0x1989   :  { %11255 = vmatpush3.bf16.msra.mxu0 %v11771_v12 }
0x198a   :  { %11256 = vmatprep.subr.bf16.mxu0 %v11623_v18 }
0x198c   :  { %10650 = vmatmul.mubr.f32.vlgmr.msra.gmra.mrb[16].mxu0 %v8378_v34 }
0x198d   :  { %11258 = vmatpush3.bf16.msra.mxu0 %v11773_v14  ;;  %10668 = vmatprep.mubr.msk.f32.mxu0 %vm11622_vm1, %v11621_v2 }
0x198e   :  { %11259 = vmatprep.subr.bf16.mxu0 %v11623_v18 }
0x1991   :  { %11261 = vmatpush3.bf16.msra.mxu0 %v11775_v15 }
0x1992   :  { %11262 = vmatprep.subr.bf16.mxu0 %v11623_v18 }
0x1995   :  { %11264 = vmatpush3.bf16.msra.mxu0 %v11777_v16 }
0x1996   :  { %11265 = vmatprep.subr.bf16.mxu0 %v11623_v18 }
0x1999   :  { %11267 = vmatpush3.bf16.msra.mxu0 %v11779_v17 }
0x199a   :  { %11268 = vmatprep.subr.bf16.mxu0 %v11623_v18 }
0x199c   :  { %10669 = vmatmul.mubr.f32.vlgmr.msra.gmra.mrb[16].mxu0 %v8379_v33 }
0x199d   :  { %11270 = vmatpush3.bf16.msra.mxu0 %v11743_v26  ;;  %10687 = vmatprep.mubr.msk.f32.mxu0 %vm11622_vm1, %v11621_v2 }
0x199e   :  { %11271 = vmatprep.subr.bf16.mxu0 %v11623_v18 }
0x19a1   :  { %11273 = vmatpush3.bf16.msra.mxu0 %v11746_v27 }
0x19a2   :  { %11274 = vmatprep.subr.bf16.mxu0 %v11623_v18 }
0x19a5   :  { %11276 = vmatpush3.bf16.msra.mxu0 %v11756_v32 }
0x19a6   :  { %11277 = vmatprep.subr.bf16.mxu0 %v11623_v18 }
0x19a9   :  { %11279 = vmatpush3.bf16.msra.mxu0 %v11760_v37 }
0x19aa   :  { %11280 = vmatprep.subr.bf16.mxu0 %v11623_v18 }
0x19ac   :  { %10688 = vmatmul.mubr.f32.vlgmr.msra.gmra.mrb[16].mxu0 %v8380_v42 }
0x19ad   :  { %11282 = vmatpush3.bf16.msra.mxu0 %v11781_v19  ;;  %10706 = vmatprep.mubr.msk.f32.mxu0 %vm11622_vm1, %v11621_v2 }
0x19ae   :  { %11283 = vmatprep.subr.bf16.mxu0 %v11623_v18 }
0x19b1   :  { %11285 = vmatpush3.bf16.msra.mxu0 %v11783_v20 }
0x19b2   :  { %11286 = vmatprep.subr.bf16.mxu0 %v11623_v18 }
0x19b5   :  { %11288 = vmatpush3.bf16.msra.mxu0 %v11785_v21 }
0x19b6   :  { %11289 = vmatprep.subr.bf16.mxu0 %v11623_v18 }
0x19b9   :  { %11291 = vmatpush3.bf16.msra.mxu0 %v11787_v22 }
0x19ba   :  { %11292 = vmatprep.subr.bf16.mxu0 %v11623_v18 }
0x19bc   :  { %10707 = vmatmul.mubr.f32.vlgmr.msra.gmra.mrb[16].mxu0 %v8378_v34 }
0x19bd   :  { %11294 = vmatpush3.bf16.msra.mxu0 %v11743_v26  ;;  %10725 = vmatprep.mubr.msk.f32.mxu0 %vm11622_vm1, %v11621_v2 }
0x19be   :  { %11295 = vmatprep.subr.bf16.mxu0 %v11623_v18 }
0x19c1   :  { %11297 = vmatpush3.bf16.msra.mxu0 %v11746_v27 }
0x19c2   :  { %11298 = vmatprep.subr.bf16.mxu0 %v11623_v18 }
0x19c5   :  { %11300 = vmatpush3.bf16.msra.mxu0 %v11756_v32 }
0x19c6   :  { %11301 = vmatprep.subr.bf16.mxu0 %v11623_v18 }
0x19c9   :  { %11303 = vmatpush3.bf16.msra.mxu0 %v11760_v37 }
0x19cc   :  { %10726 = vmatmul.mubr.f32.vlgmr.msra.gmra.mrb[16].mxu0 %v8378_v34 }
0x1a9f   :  { %v8838_v48 = vpop.f32.mrb[16].mxu0 }
0x1aa0   :  { %v12771_v57 = vadd.f32 %v12644_v40, %v8838_v48  ;;  %v10727_v26 = vpop.f32.mrb[17].mxu0 }
0x1aa2   :  { %v8847_v2 = vand.u32 2139095040, %v12771_v57  ;;  %v8844_v27 = vand.u32 2147483647, %v12771_v57  ;;  %vm8846_vm9 = vcmp.lt.s32.totalorder %v12771_v57, 0  ;;  %vm8936_vm14 = vweird.f32 %v12771_v57 }
0x1aa4   :  { %v8848_v6 = vshrl.u32 %v8847_v2, 23  ;;  %v8851_v18 = vand.u32 8388607, %v8844_v27  ;;  %vm8845_vm10 = vcmp.le.f32.partialorder %v8844_v27, 0.7853982 }
0x1aa6   :  { %v9044_v12 = vadd.s32 4294967169, %v8848_v6  ;;  %v8852_v30 = vor.u32 8388608, %v8851_v18 }
0x1aa8   :  { %v8854_v14 = vadd.s32 1, %v9044_v12  ;;  %v8892_v24 = vshll.u32 %v8852_v30, 8 }
0x1aaa   :  { %vm8855_vm1 = vcmp.gt.s32.totalorder %v8854_v14, 0 }
0x1aab   :  { %v8856_v15 = vsel %vm8855_vm1, %v8854_v14, 0  ;;  %vm8988_vm1 = vcmask 195584  }
0x1aac   :  { %v8858_v32 = vand.u32 31, %v8856_v15  ;;  %v8857_v37 = vshrl.u32 %v8856_v15, 5 }
0x1aae   :  { %v8859_v16 = vsub.s32 32, %v8858_v32  ;;  %v8861_v17 = vshll.u32 %v11626_v55, %v8858_v32  ;;  %v8864_v19 = vshll.u32 %v11627_v58, %v8858_v32  ;;  %v8867_v22 = vshll.u32 %v11628_v61, %v8858_v32 }
0x1aaf   :  { %v8870_v40 = vshll.u32 %v11629_v0, %v8858_v32  ;;  %v8873_v39 = vshll.u32 %v12837_v60, %v8858_v32  ;;  %vm8876_vm3 = vcmp.lt.s32.totalorder %v8857_v37, 1  ;;  %vm8879_vm4 = vcmp.lt.s32.totalorder %v8857_v37, 4 }
0x1ab0   :  { %v8862_v20 = vshrl.u32 %v11627_v58, %v8859_v16  ;;  %v8865_v21 = vshrl.u32 %v11628_v61, %v8859_v16  ;;  %v8868_v63 = vshrl.u32 %v11629_v0, %v8859_v16  ;;  %v8871_v44 = vshrl.u32 %v12837_v60, %v8859_v16 }
0x1ab1   :  { %v8874_v51 = vshrl.u32 %v12838_v9, %v8859_v16  ;;  %v8860_v45 = vshrl.u32 %v11626_v55, %v8859_v16  ;;  %vm8878_vm5 = vcmp.lt.s32.totalorder %v8857_v37, 3  ;;  %vm8877_vm6 = vcmp.lt.s32.totalorder %v8857_v37, 2 }
0x1ab2   :  { %v8863_v50 = vor.u32 %v8862_v20, %v8861_v17  ;;  %v8866_v25 = vor.u32 %v8865_v21, %v8864_v19  ;;  %v8869_v31 = vor.u32 %v8868_v63, %v8867_v22  ;;  %v8872_v35 = vor.u32 %v8871_v44, %v8870_v40 }
0x1ab3   :  { %v8875_v58 = vor.u32 %v8874_v51, %v8873_v39 }
0x1ab4   :  { %v8881_v53 = vsel %vm8879_vm4, %v8869_v31, 2102212464  ;;  %v8884_v61 = vsel %vm8876_vm3, %v8863_v50, %v8866_v25  ;;  %v8888_v36 = vsel %vm8876_vm3, %v8866_v25, %v8869_v31  ;;  %v8885_v0 = vsel %vm8879_vm4, %v8872_v35, 920167782 }
0x1ab5   :  { %v8889_v47 = vsel %vm8879_vm4, %v8875_v58, 1326507024  ;;  %v8886_v10 = vsel %vm8878_vm5, %v8869_v31, %v8885_v0  ;;  %v8880_v1 = vsel %vm8876_vm3, %v8860_v45, %v8863_v50  ;;  %v8882_v46 = vsel %vm8878_vm5, %v8866_v25, %v8881_v53  ;;  %v8948_v0 = vpop.permute.xlu1 %8947 }
0x1ab6   :  { %v8890_v23 = vsel %vm8878_vm5, %v8872_v35, %v8889_v47  ;;  %v8887_v29 = vsel %vm8877_vm6, %v8884_v61, %v8886_v10  ;;  %v8883_v7 = vsel %vm8877_vm6, %v8880_v1, %v8882_v46  ;;  %v8953_v61 = vpop.permute.xlu0 %8952  ;;  %vm8990_vm3 = vcmask 261120  }
0x1ab7   :  { %v8891_v5 = vsel %vm8877_vm6, %v8888_v36, %v8890_v23  ;;  %v12791_v3 = vmul.u32.u64.low %v8892_v24, %v8887_v29  ;;  %v12792_v4 = vmul.u32.u64.high %v8892_v24, %v8887_v29, %v12791_v3  ;;  %v8899_v13 = vmul.u32 %v8892_v24, %v8883_v7 }
0x1ab8   :  { %v12788_v8 = vmul.u32.u64.low %v8892_v24, %v8891_v5  ;;  %v12789_v56 = vmul.u32.u64.high %v8892_v24, %v8891_v5, %v12788_v8  ;;  %vm8992_vm4 = vcmask 326656   ;;  %vm8994_vm5 = vcmask 392192  }
0x1ab9   :  { %v8902_v55 = vadd.s32 1, %v12792_v4  ;;  %vm8996_vm6 = vcmask 457728  }
0x1aba   :  { %vm8901_vm7 = vc.u32 %v12789_v56, %v12791_v3  ;;  %v8900_v14 = vadd.s32 %v12791_v3, %v12789_v56 }
0x1abb   :  { %v8903_v43 = vsel %vm8901_vm7, %v8902_v55, %v12792_v4 }
0x1abc   :  { %v8904_v34 = vadd.s32 %v8903_v43, %v8899_v13 }
0x1abe   :  { %v8905_v33 = vadd.s32 536870912, %v8904_v34 }
0x1ac0   :  { %v8906_v42 = vshrl.u32 %v8905_v33, 30 }
0x1ac2   :  { %v8907_v62 = vshll.u32 %v8906_v42, 30  ;;  %v8930_v44 = vsub.s32 4, %v8906_v42 }
0x1ac4   :  { %v8908_v54 = vsub.s32 %v8904_v34, %v8907_v62  ;;  %v8931_v9 = vsel %vm8846_vm9, %v8930_v44, %v8906_v42 }
0x1ac5   :  { %v8933_v51 = vsel %vm8845_vm10, 0, %v8931_v9 }
0x1ac6   :  { %v8910_v48 = vsub.s32 0, %v8908_v54  ;;  %v8937_v30 = vand.u32 3, %v8933_v51 }
0x1ac8   :  { %v9045_v26 = vmin.u32 %v8910_v48, %v8908_v54  ;;  %vm8942_vm11 = vcmp.eq.s32.totalorder %v8937_v30, 2  ;;  %vm8939_vm12 = vcmp.eq.s32.totalorder %v8937_v30, 0  ;;  %vm8938_vm13 = vcmp.lt.s32.totalorder %v8937_v30, 2 }
0x1aca   :  { %v8912_v2 = vclz %v9045_v26 }
0x1acc   :  { %v9046_v6 = vadd.s32 4294967294, %v8912_v2 }
0x1ace   :  { %vm9047_vm8 = vcmp.lt.s32.totalorder %v9046_v6, 0 }
0x1acf   :  { %v8915_v12 = vsel %vm9047_vm8, 0, %v9046_v6 }
0x1ad0   :  { %v8916_v15 = vsub.s32 32, %v8915_v12  ;;  %v8920_v32 = vsub.s32 4294967266, %v8915_v12  ;;  %v8917_v16 = vshll.u32 %v8908_v54, %v8915_v12 }
0x1ad2   :  { %v8918_v18 = vshrl.u32 %v8900_v14, %v8916_v15  ;;  %v8921_v37 = vadd.s32 127, %v8920_v32 }
0x1ad4   :  { %v8919_v17 = vor.u32 %v8918_v18, %v8917_v16  ;;  %v8922_v19 = vshll.u32 %v8921_v37, 23 }
0x1ad6   :  { %v8923_v20 = vor.u32 4788187, %v8922_v19  ;;  %v8926_v22 = vcvt.s32.f32 %v8919_v17 }
0x1ad8   :  { %v8924_v21 = vand.u32 2147483647, %v8923_v20 }
0x1ada   :  { %v8927_v63 = vmul.f32 %v8926_v22, %v8924_v21 }
0x1adc   :  { %v8928_v40 = vxor.u32 2147483648, %v8927_v63 }
0x1ade   :  { %v8929_v60 = vsel %vm8846_vm9, %v8928_v40, %v8927_v63 }
0x1adf   :  { %v8932_v39 = vsel %vm8845_vm10, %v12771_v57, %v8929_v60 }
0x1ae0   :  { %11587 = vcosq.f32 %v8932_v39 }
0x1ae1   :  { %11589 = vsinq.f32 %v8932_v39 }
0x1aea   :  { %v11588_v50 = vpop.eup %11587 }
0x1aeb   :  { %v11590_v25 = vpop.eup %11589  ;;  %v8943_v31 = vxor.u32 2147483648, %v11588_v50 }
0x1aec   :  { %v8940_v35 = vxor.u32 2147483648, %v11590_v25 }
0x1aed   :  { %v8944_v58 = vsel %vm8942_vm11, %v8943_v31, %v11590_v25 }
0x1aee   :  { %v8941_v53 = vsel %vm8939_vm12, %v11588_v50, %v8940_v35 }
0x1aef   :  { %v8945_v27 = vsel %vm8938_vm13, %v8941_v53, %v8944_v58 }
0x1af0   :  { %v8946_v36 = vsel %vm8936_vm14, nan, %v8945_v27 }
0x1af1   :  { %v8955_v45 = vmul.f32 %v8953_v61, %v8946_v36  ;;  %v8950_v47 = vmul.f32 %v8948_v0, %v8946_v36 }
0x1af3   :  { %8957 = vrot.lane.b32.xlu0 %v8955_v45, %s11632_s16 }
0x1af7   :  { %8966 = vrot.lane.b32.xlu0 %v12151_v41, %s11633_s4  ;;  %v8842_v41 = vmul.f32 1.442695, %v12771_v57 }
0x1af9   :  { %11591 = vpow2.f32 %v8842_v41 }
0x1afb   :  { %8972 = vrot.lane.b32.xlu0 %v12419_v49, %s11634_s22 }
0x1aff   :  { %8978 = vrot.lane.b32.xlu0 %v12682_v52, %s11635_s23 }
0x1b03   :  { %v11592_v24 = vpop.eup %11591 }
0x1b65   :  { %v8958_v10 = vpop.permute.xlu0 %8957 }
0x1b66   :  { %v8960_v23 = vadd.f32 %v8958_v10, %v8950_v47 }
0x1b68   :  { %8962 = vrot.lane.b32.xlu1 %v8960_v23, %s11632_s16 }
0x1b69   :  { %v8967_v52 = vpop.permute.xlu0 %8966 }
0x1b6c   :  { %8969 = vrot.lane.b32.xlu1 %v12290_v28, %s11636_s24  ;;  %v8985_v28 = vsel %vm26_vm0, %v11900_v38, %v12146_v11 }
0x1b6d   :  { %v8987_v29 = vsel %vm8986_vm15, %v8985_v28, %v8967_v52 }
0x1b70   :  { %8975 = vrot.lane.b32.xlu1 %v12548_v59, %s11637_s25  ;;  %v8973_v59 = vpop.permute.xlu0 %8972 }
0x1b74   :  { %v8979_v3 = vpop.permute.xlu0 %8978 }
0x1bda   :  { %v8963_v49 = vpop.permute.xlu1 %8962 }
0x1bdb   :  { %v8965_v1 = vmul.f32 %v11592_v24, %v8963_v49 }
0x1bdd   :  { %8999 = vst.msk [vmem:[#allocation2] sm:$0xff] %vm26_vm0, %v8965_v1  ;;  %8982 = vrot.lane.b32.xlu1 %v8965_v1, %s11638_s26 }
0x1bde   :  { %v8970_v46 = vpop.permute.xlu1 %8969 }
0x1bdf   :  { %v8989_v5 = vsel %vm8988_vm1, %v8987_v29, %v8970_v46 }
0x1be0   :  { %v8991_v8 = vsel %vm8990_vm3, %v8989_v5, %v8973_v59 }
0x1be2   :  { %v8976_v57 = vpop.permute.xlu1 %8975 }
0x1be3   :  { %v8993_v56 = vsel %vm8992_vm4, %v8991_v8, %v8976_v57 }
0x1be4   :  { %v8995_v4 = vsel %vm8994_vm5, %v8993_v56, %v8979_v3 }
0x1c4f   :  { %v8983_v7 = vpop.permute.xlu1 %8982 }
0x1c50   :  { %v8997_v55 = vsel %vm8996_vm6, %v8995_v4, %v8983_v7 }
0x1c51   :  { %8998 = vst.msk [vmem:[#allocation3] sm:$0xff] %vm503_vm2, %v8997_v55 }
0x1c52   :  { %11608 = shalt.err (!%p11605_p4)
}
0x1c53   :  { %s11609_s7 = scalar_lea.hbm %s12833_s5, 128 }
0x1c54   :  { %p11610_p5 = scmp.ne.s32.totalorder %s12833_s5, %s11609_s7  ;;  %p11613_p6 = scmp.lt.u32.totalorder %s11609_s7, %s12833_s5 }
0x1c56   :  { %p11615_p7 = pnand %p11613_p6, %p11610_p5 }
0x1c58   :  { %11618 = shalt.err (!%p11615_p7)
}
0x1c59   :  { %9009 = dma.vmem_to_hbm [thread:$0]  %s9007_s28, 128, %s12833_s5, [#allocation4]  }
0x1c5a   :  { %11619 = dma.done.wait [#allocation4], 128  }
0x1c5b   :  { %11620 = vsyncadd [#allocation4], 4294967168 }
0x1c5c   :  { %9013 = vsyncpa [#allocation4], 1 }

</bundles_post_ra>
